<compile_context>
chip_gen: v5e
topology: v5e:2x2
jax: 0.10.0
libtpu: 0.0.40
codegen_flags: <defaults>
</compile_context>

<pallas_src>
import functools

import jax
import jax.numpy as jnp
from jax.experimental import pallas as pl
from jax.experimental.pallas import tpu as pltpu

BN_EPS = 1e-3
NEG = -3.0e38  # finite stand-in for the max-pool's -inf padding


def _round_up(x, m):
    return (x + m - 1) // m * m


# ----------------------------------------------------------------------------
# The fused kernel: whole InceptionModule forward for one image per grid step.
# ----------------------------------------------------------------------------
def inception_kernel(x_ref, row_ref, col_ref, wa_ref, ba_ref, w4_ref, b4_ref,
                     w2_ref, b2_ref, w3_ref, b3_ref, o_ref,
                     xpad_ref, p3_ref, p5_ref, *, H, W, L, c1, r2):
    """
    x_ref:   (1, Cin, Lp)      one image, HW flattened (lane-padded to Lp)
    row/col: (1, Lp) int32     precomputed row / column index of each lane
    wa_ref:  (c1+r2+r3, Cin)   concat of the three 1x1 weights, BN scale folded
    ba_ref:  (c1+r2+r3, 1)     folded BN biases
    w4_ref:  (p4, Cin)         pool-projection 1x1 weight (BN folded)
    w2_ref:  (c3, 9*r2)        3x3 weight, rows ordered (kh, kw, cin)
    w3_ref:  (c5, 25*r3)       5x5 weight, rows ordered (kh, kw, cin)
    o_ref:   (1, c1+c3+c5+p4, Lp)
    xpad/p3/p5: VMEM margin scratch for the shifted-tap slices.
    """
    Lp = x_ref.shape[2]
    row = row_ref[...]                       # (1, Lp)
    col = col_ref[...]                       # (1, Lp)

    _mask_cache = {}

    def valid(dh, dw):
        # (1, Lp) mask: is (row+dh, col+dw) inside the HxW image?
        if dh == 0 and dw == 0 and Lp == L:
            return None                      # trivially all-valid
        key = (dh, dw)
        if key not in _mask_cache:
            _mask_cache[key] = ((row + dh >= 0) & (row + dh < H) &
                                (col + dw >= 0) & (col + dw < W))
        return _mask_cache[key]

    x = x_ref[0]                             # (Cin, Lp)

    # ---- stage A: branch1 | branch2-reduce | branch3-reduce 1x1 convs ----
    ya = jnp.dot(wa_ref[...], x, preferred_element_type=jnp.float32)
    ya = jnp.maximum(ya + ba_ref[...], 0.0)
    b1 = ya[:c1]                             # (c1, Lp)
    b2r = ya[c1:c1 + r2]                     # (r2, Lp)
    b3r = ya[c1 + r2:]                       # (r3, Lp)

    # ---- branch 4: 3x3/s1/p1 max-pool on x + 1x1 proj + BN + ReLU ----
    mp = W + 1
    xpad_ref[:, pl.ds(mp, Lp)] = x           # margins are never used unmasked
    pooled = None
    for dh in (-1, 0, 1):
        for dw in (-1, 0, 1):
            t = xpad_ref[:, pl.ds(mp + dh * W + dw, Lp)]
            v = valid(dh, dw)
            if v is not None:
                t = jnp.where(v, t, NEG)
            pooled = t if pooled is None else jnp.maximum(pooled, t)
    if Lp != L:
        # keep lane-padding columns finite (they are sliced off by the wrapper)
        pooled = jnp.where(row < H, pooled, 0.0)
    b4 = jnp.maximum(
        jnp.dot(w4_ref[...], pooled, preferred_element_type=jnp.float32)
        + b4_ref[...], 0.0)

    # ---- KxK conv on an in-VMEM activation (no HBM round trip, no pads) ----
    def conv_kxk(act, pad_ref, wk_ref, bk_ref, K):
        pad = K // 2
        m = pad * W + pad
        pad_ref[:, pl.ds(m, Lp)] = act
        taps = []
        for kh in range(K):
            for kw in range(K):
                dh, dw = kh - pad, kw - pad
                t = pad_ref[:, pl.ds(m + dh * W + dw, Lp)]
                v = valid(dh, dw)
                if v is not None:
                    t = jnp.where(v, t, 0.0)
                taps.append(t)
        # TODO(synk): for Cin >= 128 accumulate per-tap dots instead of the
        #             stacked concatenate; at these small reduce widths the
        #             single stacked dot keeps the MXU contraction full.
        stacked = jnp.concatenate(taps, axis=0)          # (K*K*Cin, Lp)
        y = jnp.dot(wk_ref[...], stacked, preferred_element_type=jnp.float32)
        return jnp.maximum(y + bk_ref[...], 0.0)

    b2 = conv_kxk(b2r, p3_ref, w2_ref, b2_ref, 3)        # branch2: 3x3
    b3 = conv_kxk(b3r, p5_ref, w3_ref, b3_ref, 5)        # branch3: 5x5

    # ---- torch.cat(outputs, 1): one lane-dense store of the whole block ----
    o_ref[0] = jnp.concatenate([b1, b2, b3, b4], axis=0).astype(o_ref.dtype)


# ----------------------------------------------------------------------------
# JAX glue
# ----------------------------------------------------------------------------
def _fold_bn_into_weights(blk, k):
    """Fold inference-mode BN into the conv weight; return (W', bias)."""
    scale = blk["gamma"] / jnp.sqrt(blk["var"] + BN_EPS)
    bias = (blk["beta"] - blk["mean"] * scale)[:, None]            # (Cout, 1)
    wt = blk["w"]
    cout, cin = wt.shape[0], wt.shape[1]
    if k == 1:
        wm = wt[:, :, 0, 0]
    else:
        # row order must match the kernel's (kh, kw, cin) tap stacking
        wm = jnp.transpose(wt, (0, 2, 3, 1)).reshape(cout, k * k * cin)
    return wm * scale[:, None], bias


def inception_forward_pallas(x_nchw, p):
    """InceptionModule.forward; input/output are NCHW exactly like PyTorch."""
    n, cin, h, w = x_nchw.shape
    L = h * w
    Lp = _round_up(L, 128)           # lane-dense stores (no-op when L % 128 == 0)

    wa1, ba1 = _fold_bn_into_weights(p["b1"], 1)
    wa2, ba2 = _fold_bn_into_weights(p["b2_red"], 1)
    wa3, ba3 = _fold_bn_into_weights(p["b3_red"], 1)
    w2, bb2 = _fold_bn_into_weights(p["b2"], 3)
    w3, bb3 = _fold_bn_into_weights(p["b3"], 5)
    w4, bb4 = _fold_bn_into_weights(p["b4"], 1)

    wa = jnp.concatenate([wa1, wa2, wa3], axis=0)
    ba = jnp.concatenate([ba1, ba2, ba3], axis=0)

    c1, r2, r3 = wa1.shape[0], wa2.shape[0], wa3.shape[0]
    c3, c5, p4 = w2.shape[0], w3.shape[0], w4.shape[0]
    ca = c1 + r2 + r3
    ctot = c1 + c3 + c5 + p4

    x_flat = x_nchw.reshape(n, cin, L)
    if Lp != L:
        x_flat = jnp.pad(x_flat, ((0, 0), (0, 0), (0, Lp - L)))

    lane_idx = jnp.arange(Lp, dtype=jnp.int32)
    row_idx = (lane_idx // w)[None, :]                   # (1, Lp)
    col_idx = (lane_idx % w)[None, :]                    # (1, Lp)

    mp = w + 1            # margin for 3x3 windows (pool + branch2)
    m5 = 2 * w + 2        # margin for the 5x5 window (branch3)

    kern = functools.partial(inception_kernel, H=h, W=w, L=L, c1=c1, r2=r2)

    # Explicit VMEM budget (v7x: 64 MiB physical / 32 MiB default scoped limit).
    est = 4 * (2 * cin * Lp + 2 * ctot * Lp                     # pipelined I/O
               + wa.size + w2.size + w3.size + w4.size + ca + c3 + c5 + p4
               + cin * (Lp + 2 * mp) + r2 * (Lp + 2 * mp) + r3 * (Lp + 2 * m5)
               + ca * Lp + 9 * r2 * Lp + 25 * r3 * Lp + cin * Lp)
    vmem_limit = int(min(max(4 * est, 32 * 1024 * 1024), 64 * 1024 * 1024))

    out = pl.pallas_call(
        kern,
        out_shape=jax.ShapeDtypeStruct((n, ctot, Lp), x_nchw.dtype),
        grid=(n,),
        in_specs=[
            pl.BlockSpec((1, cin, Lp), lambda i: (i, 0, 0)),
            pl.BlockSpec((1, Lp), lambda i: (0, 0)),     # row_idx
            pl.BlockSpec((1, Lp), lambda i: (0, 0)),     # col_idx
            pl.BlockSpec((ca, cin), lambda i: (0, 0)),
            pl.BlockSpec((ca, 1), lambda i: (0, 0)),
            pl.BlockSpec((p4, cin), lambda i: (0, 0)),
            pl.BlockSpec((p4, 1), lambda i: (0, 0)),
            pl.BlockSpec((c3, 9 * r2), lambda i: (0, 0)),
            pl.BlockSpec((c3, 1), lambda i: (0, 0)),
            pl.BlockSpec((c5, 25 * r3), lambda i: (0, 0)),
            pl.BlockSpec((c5, 1), lambda i: (0, 0)),
        ],
        out_specs=pl.BlockSpec((1, ctot, Lp), lambda i: (i, 0, 0)),
        scratch_shapes=[
            pltpu.VMEM((cin, Lp + 2 * mp), x_nchw.dtype),   # pool taps on x
            pltpu.VMEM((r2, Lp + 2 * mp), jnp.float32),     # 3x3 taps on b2r
            pltpu.VMEM((r3, Lp + 2 * m5), jnp.float32),     # 5x5 taps on b3r
        ],
        compiler_params=pltpu.CompilerParams(
            dimension_semantics=("parallel",),
            vmem_limit_bytes=vmem_limit),
    )(x_flat, row_idx, col_idx, wa, ba, w4, bb4, w2, bb2, w3, bb3)

    if Lp != L:
        out = out[:, :, :L]
    return out.reshape(n, ctot, h, w)


# ----------------------------------------------------------------------------
# Pure-JAX reference (for correctness check)
# ----------------------------------------------------------------------------
def _conv_bn_relu_ref(x, w, gamma, beta, mean, var, *, pad):
    y = jax.lax.conv_general_dilated(
        x, w, (1, 1), [(pad, pad), (pad, pad)],
        dimension_numbers=("NCHW", "OIHW", "NCHW"))
    scale = gamma / jnp.sqrt(var + BN_EPS)
    bias = beta - mean * scale
    return jnp.maximum(
        y * scale[None, :, None, None] + bias[None, :, None, None], 0.0)


def _maxpool3_ref(x):
    return jax.lax.reduce_window(
        x, -jnp.inf, jax.lax.max,
        (1, 1, 3, 3), (1, 1, 1, 1), [(0, 0), (0, 0), (1, 1), (1, 1)])


def inception_forward_ref(x, p):
    b1 = _conv_bn_relu_ref(x, **p["b1"], pad=0)
    b2 = _conv_bn_relu_ref(
        _conv_bn_relu_ref(x, **p["b2_red"], pad=0), **p["b2"], pad=1)
    b3 = _conv_bn_relu_ref(
        _conv_bn_relu_ref(x, **p["b3_red"], pad=0), **p["b3"], pad=2)
    b4 = _conv_bn_relu_ref(_maxpool3_ref(x), **p["b4"], pad=0)
    return jnp.concatenate([b1, b2, b3, b4], axis=1)


# ----------------------------------------------------------------------------
# Deterministic parameter init (shapes from InceptionModule.__init__)
# ----------------------------------------------------------------------------
def _init_basic_conv(key, cin, cout, k):
    kw, kg, kb, km, kv = jax.random.split(key, 5)
    return dict(
        w=0.1 * jax.random.normal(kw, (cout, cin, k, k), jnp.float32),
        gamma=1.0 + 0.1 * jax.random.normal(kg, (cout,), jnp.float32),
        beta=0.1 * jax.random.normal(kb, (cout,), jnp.float32),
        mean=0.1 * jax.random.normal(km, (cout,), jnp.float32),
        var=0.5 + jax.random.uniform(kv, (cout,), jnp.float32),
    )


def init_inception_params(key, in_channels, ch1x1, ch3x3red, ch3x3,
                          ch5x5red, ch5x5, pool_proj):
    keys = jax.random.split(key, 6)
    return dict(
        b1=_init_basic_conv(keys[0], in_channels, ch1x1, 1),
        b2_red=_init_basic_conv(keys[1], in_channels, ch3x3red, 1),
        b2=_init_basic_conv(keys[2], ch3x3red, ch3x3, 3),
        b3_red=_init_basic_conv(keys[3], in_channels, ch5x5red, 1),
        b3=_init_basic_conv(keys[4], ch5x5red, ch5x5, 5),
        b4=_init_basic_conv(keys[5], in_channels, pool_proj, 1),
    )


# ----------------------------------------------------------------------------
if __name__ == "__main__":
    key = jax.random.PRNGKey(0)
    k_params, k_x = jax.random.split(key)

    # Small synthetic config: InceptionModule(16, 16, 8, 16, 8, 16, 16)
    N, C_IN, H, W = 2, 16, 16, 16
    params = init_inception_params(k_params, C_IN, 16, 8, 16, 8, 16, 16)

    x = jax.random.normal(k_x, (N, C_IN, H, W), jnp.float32)  # NCHW, like PyTorch

    out = jax.block_until_ready(jax.jit(inception_forward_pallas)(x, params))
    ref = jax.block_until_ready(inception_forward_ref(x, params))

    assert out.shape == (N, 16 + 16 + 16 + 16, H, W), out.shape
    assert out.dtype == jnp.float32
    max_err = float(jnp.max(jnp.abs(out - ref)))
    assert bool(jnp.allclose(out, ref, rtol=2e-3, atol=2e-3)), (
        f"max abs err = {max_err}"
    )

    print("KERNEL_OK")
</pallas_src>

<mosaic_0001>
module attributes {stable_mosaic.version = 11 : i64} {
  func.func @inception_kernel(%arg0: i32, %arg1: memref<1x16x256xf32, #tpu.memory_space<vmem>>, %arg2: memref<1x256xi32, #tpu.memory_space<vmem>>, %arg3: memref<1x256xi32, #tpu.memory_space<vmem>>, %arg4: memref<32x16xf32, #tpu.memory_space<vmem>>, %arg5: memref<32x1xf32, #tpu.memory_space<vmem>>, %arg6: memref<16x16xf32, #tpu.memory_space<vmem>>, %arg7: memref<16x1xf32, #tpu.memory_space<vmem>>, %arg8: memref<16x72xf32, #tpu.memory_space<vmem>>, %arg9: memref<16x1xf32, #tpu.memory_space<vmem>>, %arg10: memref<16x200xf32, #tpu.memory_space<vmem>>, %arg11: memref<16x1xf32, #tpu.memory_space<vmem>>, %arg12: memref<1x64x256xf32, #tpu.memory_space<vmem>>, %arg13: memref<16x290xf32, #tpu.memory_space<vmem>>, %arg14: memref<8x290xf32, #tpu.memory_space<vmem>>, %arg15: memref<8x324xf32, #tpu.memory_space<vmem>>) attributes {dimension_semantics = [#tpu.dimension_semantics<parallel>], iteration_bounds = array<i64: 2>, scalar_prefetch = 0 : i64, scratch_operands = 3 : i64, tpu.core_type = #tpu.core_type<tc>, window_params = [{transform_indices = @transform_0, window_bounds = array<i64: 1, 16, 256>}, {pipeline_mode = #tpu.pipeline_mode<synchronous>, transform_indices = @transform_1, window_bounds = array<i64: 1, 256>}, {pipeline_mode = #tpu.pipeline_mode<synchronous>, transform_indices = @transform_2, window_bounds = array<i64: 1, 256>}, {pipeline_mode = #tpu.pipeline_mode<synchronous>, transform_indices = @transform_3, window_bounds = array<i64: 32, 16>}, {pipeline_mode = #tpu.pipeline_mode<synchronous>, transform_indices = @transform_4, window_bounds = array<i64: 32, 1>}, {pipeline_mode = #tpu.pipeline_mode<synchronous>, transform_indices = @transform_5, window_bounds = array<i64: 16, 16>}, {pipeline_mode = #tpu.pipeline_mode<synchronous>, transform_indices = @transform_6, window_bounds = array<i64: 16, 1>}, {pipeline_mode = #tpu.pipeline_mode<synchronous>, transform_indices = @transform_7, window_bounds = array<i64: 16, 72>}, {pipeline_mode = #tpu.pipeline_mode<synchronous>, transform_indices = @transform_8, window_bounds = array<i64: 16, 1>}, {pipeline_mode = #tpu.pipeline_mode<synchronous>, transform_indices = @transform_9, window_bounds = array<i64: 16, 200>}, {pipeline_mode = #tpu.pipeline_mode<synchronous>, transform_indices = @transform_10, window_bounds = array<i64: 16, 1>}, {transform_indices = @transform_11, window_bounds = array<i64: 1, 64, 256>}]} {
    %c0 = arith.constant 0 : index
    %c0_0 = arith.constant 0 : index
    %0 = vector.load %arg2[%c0, %c0_0] : memref<1x256xi32, #tpu.memory_space<vmem>>, vector<1x256xi32>
    %c0_1 = arith.constant 0 : index
    %c0_2 = arith.constant 0 : index
    %1 = vector.load %arg3[%c0_1, %c0_2] : memref<1x256xi32, #tpu.memory_space<vmem>>, vector<1x256xi32>
    %c0_3 = arith.constant 0 : index
    %c0_4 = arith.constant 0 : index
    %c0_5 = arith.constant 0 : index
    %2 = vector.load %arg1[%c0_3, %c0_4, %c0_5] : memref<1x16x256xf32, #tpu.memory_space<vmem>>, vector<1x16x256xf32>
    %3 = vector.shape_cast %2 : vector<1x16x256xf32> to vector<16x256xf32>
    %c0_6 = arith.constant 0 : index
    %c0_7 = arith.constant 0 : index
    %4 = vector.load %arg4[%c0_6, %c0_7] : memref<32x16xf32, #tpu.memory_space<vmem>>, vector<32x16xf32>
    %cst = arith.constant dense<0.000000e+00> : vector<32x256xf32>
    %5 = tpu.matmul %4, %3, %cst {dimension_numbers = #tpu.dot_dimension_numbers<[1], [0], [0], [1], [0, 0, 1, 1], [], []>} : vector<32x16xf32>, vector<16x256xf32>, vector<32x256xf32> -> vector<32x256xf32>
    %c0_8 = arith.constant 0 : index
    %c0_9 = arith.constant 0 : index
    %6 = vector.load %arg5[%c0_8, %c0_9] : memref<32x1xf32, #tpu.memory_space<vmem>>, vector<32x1xf32>
    %7 = vector.broadcast %6 : vector<32x1xf32> to vector<32x256xf32>
    %8 = arith.addf %5, %7 : vector<32x256xf32>
    %cst_10 = arith.constant 0.000000e+00 : f32
    %9 = vector.broadcast %cst_10 : f32 to vector<32x256xf32>
    %10 = arith.maximumf %8, %9 : vector<32x256xf32>
    %11 = vector.extract_strided_slice %10 {offsets = [0, 0], sizes = [16, 256], strides = [1, 1]} : vector<32x256xf32> to vector<16x256xf32>
    %12 = vector.extract_strided_slice %10 {offsets = [16, 0], sizes = [8, 256], strides = [1, 1]} : vector<32x256xf32> to vector<8x256xf32>
    %13 = vector.extract_strided_slice %10 {offsets = [24, 0], sizes = [8, 256], strides = [1, 1]} : vector<32x256xf32> to vector<8x256xf32>
    %c0_11 = arith.constant 0 : index
    %c17 = arith.constant 17 : index
    %14 = vector.load %arg13[%c0_11, %c17] : memref<16x290xf32, #tpu.memory_space<vmem>>, vector<16x256xf32>
    tpu.vector_store %arg13[%c0_11, %c17], %3 {strides = array<i32>} : memref<16x290xf32, #tpu.memory_space<vmem>>, vector<16x256xf32>,
    %c0_12 = arith.constant 0 : index
    %c0_13 = arith.constant 0 : index
    %15 = vector.load %arg13[%c0_12, %c0_13] : memref<16x290xf32, #tpu.memory_space<vmem>>, vector<16x256xf32>
    %c-1_i32 = arith.constant -1 : i32
    %16 = vector.broadcast %c-1_i32 : i32 to vector<1x256xi32>
    %17 = arith.addi %0, %16 : vector<1x256xi32>
    %c0_i32 = arith.constant 0 : i32
    %18 = vector.broadcast %c0_i32 : i32 to vector<1x256xi32>
    %19 = arith.cmpi sge, %17, %18 : vector<1x256xi32>
    %c-1_i32_14 = arith.constant -1 : i32
    %20 = vector.broadcast %c-1_i32_14 : i32 to vector<1x256xi32>
    %21 = arith.addi %0, %20 : vector<1x256xi32>
    %c16_i32 = arith.constant 16 : i32
    %22 = vector.broadcast %c16_i32 : i32 to vector<1x256xi32>
    %23 = arith.cmpi slt, %21, %22 : vector<1x256xi32>
    %24 = arith.andi %19, %23 : vector<1x256xi1>
    %c-1_i32_15 = arith.constant -1 : i32
    %25 = vector.broadcast %c-1_i32_15 : i32 to vector<1x256xi32>
    %26 = arith.addi %1, %25 : vector<1x256xi32>
    %c0_i32_16 = arith.constant 0 : i32
    %27 = vector.broadcast %c0_i32_16 : i32 to vector<1x256xi32>
    %28 = arith.cmpi sge, %26, %27 : vector<1x256xi32>
    %29 = arith.andi %24, %28 : vector<1x256xi1>
    %c-1_i32_17 = arith.constant -1 : i32
    %30 = vector.broadcast %c-1_i32_17 : i32 to vector<1x256xi32>
    %31 = arith.addi %1, %30 : vector<1x256xi32>
    %c16_i32_18 = arith.constant 16 : i32
    %32 = vector.broadcast %c16_i32_18 : i32 to vector<1x256xi32>
    %33 = arith.cmpi slt, %31, %32 : vector<1x256xi32>
    %34 = arith.andi %29, %33 : vector<1x256xi1>
    %cst_19 = arith.constant -3.000000e+38 : f32
    %35 = vector.shape_cast %34 : vector<1x256xi1> to vector<1x256xi1>
    %36 = vector.broadcast %35 : vector<1x256xi1> to vector<16x256xi1>
    %37 = vector.broadcast %cst_19 : f32 to vector<16x256xf32>
    %38 = arith.select %36, %15, %37 : vector<16x256xi1>, vector<16x256xf32>
    %c0_20 = arith.constant 0 : index
    %c1 = arith.constant 1 : index
    %39 = vector.load %arg13[%c0_20, %c1] : memref<16x290xf32, #tpu.memory_space<vmem>>, vector<16x256xf32>
    %c-1_i32_21 = arith.constant -1 : i32
    %40 = vector.broadcast %c-1_i32_21 : i32 to vector<1x256xi32>
    %41 = arith.addi %0, %40 : vector<1x256xi32>
    %c0_i32_22 = arith.constant 0 : i32
    %42 = vector.broadcast %c0_i32_22 : i32 to vector<1x256xi32>
    %43 = arith.cmpi sge, %41, %42 : vector<1x256xi32>
    %c-1_i32_23 = arith.constant -1 : i32
    %44 = vector.broadcast %c-1_i32_23 : i32 to vector<1x256xi32>
    %45 = arith.addi %0, %44 : vector<1x256xi32>
    %c16_i32_24 = arith.constant 16 : i32
    %46 = vector.broadcast %c16_i32_24 : i32 to vector<1x256xi32>
    %47 = arith.cmpi slt, %45, %46 : vector<1x256xi32>
    %48 = arith.andi %43, %47 : vector<1x256xi1>
    %c0_i32_25 = arith.constant 0 : i32
    %49 = vector.broadcast %c0_i32_25 : i32 to vector<1x256xi32>
    %50 = arith.addi %1, %49 : vector<1x256xi32>
    %c0_i32_26 = arith.constant 0 : i32
    %51 = vector.broadcast %c0_i32_26 : i32 to vector<1x256xi32>
    %52 = arith.cmpi sge, %50, %51 : vector<1x256xi32>
    %53 = arith.andi %48, %52 : vector<1x256xi1>
    %c0_i32_27 = arith.constant 0 : i32
    %54 = vector.broadcast %c0_i32_27 : i32 to vector<1x256xi32>
    %55 = arith.addi %1, %54 : vector<1x256xi32>
    %c16_i32_28 = arith.constant 16 : i32
    %56 = vector.broadcast %c16_i32_28 : i32 to vector<1x256xi32>
    %57 = arith.cmpi slt, %55, %56 : vector<1x256xi32>
    %58 = arith.andi %53, %57 : vector<1x256xi1>
    %cst_29 = arith.constant -3.000000e+38 : f32
    %59 = vector.shape_cast %58 : vector<1x256xi1> to vector<1x256xi1>
    %60 = vector.broadcast %59 : vector<1x256xi1> to vector<16x256xi1>
    %61 = vector.broadcast %cst_29 : f32 to vector<16x256xf32>
    %62 = arith.select %60, %39, %61 : vector<16x256xi1>, vector<16x256xf32>
    %63 = arith.maximumf %38, %62 : vector<16x256xf32>
    %c0_30 = arith.constant 0 : index
    %c2 = arith.constant 2 : index
    %64 = vector.load %arg13[%c0_30, %c2] : memref<16x290xf32, #tpu.memory_space<vmem>>, vector<16x256xf32>
    %c-1_i32_31 = arith.constant -1 : i32
    %65 = vector.broadcast %c-1_i32_31 : i32 to vector<1x256xi32>
    %66 = arith.addi %0, %65 : vector<1x256xi32>
    %c0_i32_32 = arith.constant 0 : i32
    %67 = vector.broadcast %c0_i32_32 : i32 to vector<1x256xi32>
    %68 = arith.cmpi sge, %66, %67 : vector<1x256xi32>
    %c-1_i32_33 = arith.constant -1 : i32
    %69 = vector.broadcast %c-1_i32_33 : i32 to vector<1x256xi32>
    %70 = arith.addi %0, %69 : vector<1x256xi32>
    %c16_i32_34 = arith.constant 16 : i32
    %71 = vector.broadcast %c16_i32_34 : i32 to vector<1x256xi32>
    %72 = arith.cmpi slt, %70, %71 : vector<1x256xi32>
    %73 = arith.andi %68, %72 : vector<1x256xi1>
    %c1_i32 = arith.constant 1 : i32
    %74 = vector.broadcast %c1_i32 : i32 to vector<1x256xi32>
    %75 = arith.addi %1, %74 : vector<1x256xi32>
    %c0_i32_35 = arith.constant 0 : i32
    %76 = vector.broadcast %c0_i32_35 : i32 to vector<1x256xi32>
    %77 = arith.cmpi sge, %75, %76 : vector<1x256xi32>
    %78 = arith.andi %73, %77 : vector<1x256xi1>
    %c1_i32_36 = arith.constant 1 : i32
    %79 = vector.broadcast %c1_i32_36 : i32 to vector<1x256xi32>
    %80 = arith.addi %1, %79 : vector<1x256xi32>
    %c16_i32_37 = arith.constant 16 : i32
    %81 = vector.broadcast %c16_i32_37 : i32 to vector<1x256xi32>
    %82 = arith.cmpi slt, %80, %81 : vector<1x256xi32>
    %83 = arith.andi %78, %82 : vector<1x256xi1>
    %cst_38 = arith.constant -3.000000e+38 : f32
    %84 = vector.shape_cast %83 : vector<1x256xi1> to vector<1x256xi1>
    %85 = vector.broadcast %84 : vector<1x256xi1> to vector<16x256xi1>
    %86 = vector.broadcast %cst_38 : f32 to vector<16x256xf32>
    %87 = arith.select %85, %64, %86 : vector<16x256xi1>, vector<16x256xf32>
    %88 = arith.maximumf %63, %87 : vector<16x256xf32>
    %c0_39 = arith.constant 0 : index
    %c16 = arith.constant 16 : index
    %89 = vector.load %arg13[%c0_39, %c16] : memref<16x290xf32, #tpu.memory_space<vmem>>, vector<16x256xf32>
    %c0_i32_40 = arith.constant 0 : i32
    %90 = vector.broadcast %c0_i32_40 : i32 to vector<1x256xi32>
    %91 = arith.addi %0, %90 : vector<1x256xi32>
    %c0_i32_41 = arith.constant 0 : i32
    %92 = vector.broadcast %c0_i32_41 : i32 to vector<1x256xi32>
    %93 = arith.cmpi sge, %91, %92 : vector<1x256xi32>
    %c0_i32_42 = arith.constant 0 : i32
    %94 = vector.broadcast %c0_i32_42 : i32 to vector<1x256xi32>
    %95 = arith.addi %0, %94 : vector<1x256xi32>
    %c16_i32_43 = arith.constant 16 : i32
    %96 = vector.broadcast %c16_i32_43 : i32 to vector<1x256xi32>
    %97 = arith.cmpi slt, %95, %96 : vector<1x256xi32>
    %98 = arith.andi %93, %97 : vector<1x256xi1>
    %c-1_i32_44 = arith.constant -1 : i32
    %99 = vector.broadcast %c-1_i32_44 : i32 to vector<1x256xi32>
    %100 = arith.addi %1, %99 : vector<1x256xi32>
    %c0_i32_45 = arith.constant 0 : i32
    %101 = vector.broadcast %c0_i32_45 : i32 to vector<1x256xi32>
    %102 = arith.cmpi sge, %100, %101 : vector<1x256xi32>
    %103 = arith.andi %98, %102 : vector<1x256xi1>
    %c-1_i32_46 = arith.constant -1 : i32
    %104 = vector.broadcast %c-1_i32_46 : i32 to vector<1x256xi32>
    %105 = arith.addi %1, %104 : vector<1x256xi32>
    %c16_i32_47 = arith.constant 16 : i32
    %106 = vector.broadcast %c16_i32_47 : i32 to vector<1x256xi32>
    %107 = arith.cmpi slt, %105, %106 : vector<1x256xi32>
    %108 = arith.andi %103, %107 : vector<1x256xi1>
    %cst_48 = arith.constant -3.000000e+38 : f32
    %109 = vector.shape_cast %108 : vector<1x256xi1> to vector<1x256xi1>
    %110 = vector.broadcast %109 : vector<1x256xi1> to vector<16x256xi1>
    %111 = vector.broadcast %cst_48 : f32 to vector<16x256xf32>
    %112 = arith.select %110, %89, %111 : vector<16x256xi1>, vector<16x256xf32>
    %113 = arith.maximumf %88, %112 : vector<16x256xf32>
    %c0_49 = arith.constant 0 : index
    %c17_50 = arith.constant 17 : index
    %114 = vector.load %arg13[%c0_49, %c17_50] : memref<16x290xf32, #tpu.memory_space<vmem>>, vector<16x256xf32>
    %115 = arith.maximumf %113, %114 : vector<16x256xf32>
    %c0_51 = arith.constant 0 : index
    %c18 = arith.constant 18 : index
    %116 = vector.load %arg13[%c0_51, %c18] : memref<16x290xf32, #tpu.memory_space<vmem>>, vector<16x256xf32>
    %c0_i32_52 = arith.constant 0 : i32
    %117 = vector.broadcast %c0_i32_52 : i32 to vector<1x256xi32>
    %118 = arith.addi %0, %117 : vector<1x256xi32>
    %c0_i32_53 = arith.constant 0 : i32
    %119 = vector.broadcast %c0_i32_53 : i32 to vector<1x256xi32>
    %120 = arith.cmpi sge, %118, %119 : vector<1x256xi32>
    %c0_i32_54 = arith.constant 0 : i32
    %121 = vector.broadcast %c0_i32_54 : i32 to vector<1x256xi32>
    %122 = arith.addi %0, %121 : vector<1x256xi32>
    %c16_i32_55 = arith.constant 16 : i32
    %123 = vector.broadcast %c16_i32_55 : i32 to vector<1x256xi32>
    %124 = arith.cmpi slt, %122, %123 : vector<1x256xi32>
    %125 = arith.andi %120, %124 : vector<1x256xi1>
    %c1_i32_56 = arith.constant 1 : i32
    %126 = vector.broadcast %c1_i32_56 : i32 to vector<1x256xi32>
    %127 = arith.addi %1, %126 : vector<1x256xi32>
    %c0_i32_57 = arith.constant 0 : i32
    %128 = vector.broadcast %c0_i32_57 : i32 to vector<1x256xi32>
    %129 = arith.cmpi sge, %127, %128 : vector<1x256xi32>
    %130 = arith.andi %125, %129 : vector<1x256xi1>
    %c1_i32_58 = arith.constant 1 : i32
    %131 = vector.broadcast %c1_i32_58 : i32 to vector<1x256xi32>
    %132 = arith.addi %1, %131 : vector<1x256xi32>
    %c16_i32_59 = arith.constant 16 : i32
    %133 = vector.broadcast %c16_i32_59 : i32 to vector<1x256xi32>
    %134 = arith.cmpi slt, %132, %133 : vector<1x256xi32>
    %135 = arith.andi %130, %134 : vector<1x256xi1>
    %cst_60 = arith.constant -3.000000e+38 : f32
    %136 = vector.shape_cast %135 : vector<1x256xi1> to vector<1x256xi1>
    %137 = vector.broadcast %136 : vector<1x256xi1> to vector<16x256xi1>
    %138 = vector.broadcast %cst_60 : f32 to vector<16x256xf32>
    %139 = arith.select %137, %116, %138 : vector<16x256xi1>, vector<16x256xf32>
    %140 = arith.maximumf %115, %139 : vector<16x256xf32>
    %c0_61 = arith.constant 0 : index
    %c32 = arith.constant 32 : index
    %141 = vector.load %arg13[%c0_61, %c32] : memref<16x290xf32, #tpu.memory_space<vmem>>, vector<16x256xf32>
    %c1_i32_62 = arith.constant 1 : i32
    %142 = vector.broadcast %c1_i32_62 : i32 to vector<1x256xi32>
    %143 = arith.addi %0, %142 : vector<1x256xi32>
    %c0_i32_63 = arith.constant 0 : i32
    %144 = vector.broadcast %c0_i32_63 : i32 to vector<1x256xi32>
    %145 = arith.cmpi sge, %143, %144 : vector<1x256xi32>
    %c1_i32_64 = arith.constant 1 : i32
    %146 = vector.broadcast %c1_i32_64 : i32 to vector<1x256xi32>
    %147 = arith.addi %0, %146 : vector<1x256xi32>
    %c16_i32_65 = arith.constant 16 : i32
    %148 = vector.broadcast %c16_i32_65 : i32 to vector<1x256xi32>
    %149 = arith.cmpi slt, %147, %148 : vector<1x256xi32>
    %150 = arith.andi %145, %149 : vector<1x256xi1>
    %c-1_i32_66 = arith.constant -1 : i32
    %151 = vector.broadcast %c-1_i32_66 : i32 to vector<1x256xi32>
    %152 = arith.addi %1, %151 : vector<1x256xi32>
    %c0_i32_67 = arith.constant 0 : i32
    %153 = vector.broadcast %c0_i32_67 : i32 to vector<1x256xi32>
    %154 = arith.cmpi sge, %152, %153 : vector<1x256xi32>
    %155 = arith.andi %150, %154 : vector<1x256xi1>
    %c-1_i32_68 = arith.constant -1 : i32
    %156 = vector.broadcast %c-1_i32_68 : i32 to vector<1x256xi32>
    %157 = arith.addi %1, %156 : vector<1x256xi32>
    %c16_i32_69 = arith.constant 16 : i32
    %158 = vector.broadcast %c16_i32_69 : i32 to vector<1x256xi32>
    %159 = arith.cmpi slt, %157, %158 : vector<1x256xi32>
    %160 = arith.andi %155, %159 : vector<1x256xi1>
    %cst_70 = arith.constant -3.000000e+38 : f32
    %161 = vector.shape_cast %160 : vector<1x256xi1> to vector<1x256xi1>
    %162 = vector.broadcast %161 : vector<1x256xi1> to vector<16x256xi1>
    %163 = vector.broadcast %cst_70 : f32 to vector<16x256xf32>
    %164 = arith.select %162, %141, %163 : vector<16x256xi1>, vector<16x256xf32>
    %165 = arith.maximumf %140, %164 : vector<16x256xf32>
    %c0_71 = arith.constant 0 : index
    %c33 = arith.constant 33 : index
    %166 = vector.load %arg13[%c0_71, %c33] : memref<16x290xf32, #tpu.memory_space<vmem>>, vector<16x256xf32>
    %c1_i32_72 = arith.constant 1 : i32
    %167 = vector.broadcast %c1_i32_72 : i32 to vector<1x256xi32>
    %168 = arith.addi %0, %167 : vector<1x256xi32>
    %c0_i32_73 = arith.constant 0 : i32
    %169 = vector.broadcast %c0_i32_73 : i32 to vector<1x256xi32>
    %170 = arith.cmpi sge, %168, %169 : vector<1x256xi32>
    %c1_i32_74 = arith.constant 1 : i32
    %171 = vector.broadcast %c1_i32_74 : i32 to vector<1x256xi32>
    %172 = arith.addi %0, %171 : vector<1x256xi32>
    %c16_i32_75 = arith.constant 16 : i32
    %173 = vector.broadcast %c16_i32_75 : i32 to vector<1x256xi32>
    %174 = arith.cmpi slt, %172, %173 : vector<1x256xi32>
    %175 = arith.andi %170, %174 : vector<1x256xi1>
    %c0_i32_76 = arith.constant 0 : i32
    %176 = vector.broadcast %c0_i32_76 : i32 to vector<1x256xi32>
    %177 = arith.addi %1, %176 : vector<1x256xi32>
    %c0_i32_77 = arith.constant 0 : i32
    %178 = vector.broadcast %c0_i32_77 : i32 to vector<1x256xi32>
    %179 = arith.cmpi sge, %177, %178 : vector<1x256xi32>
    %180 = arith.andi %175, %179 : vector<1x256xi1>
    %c0_i32_78 = arith.constant 0 : i32
    %181 = vector.broadcast %c0_i32_78 : i32 to vector<1x256xi32>
    %182 = arith.addi %1, %181 : vector<1x256xi32>
    %c16_i32_79 = arith.constant 16 : i32
    %183 = vector.broadcast %c16_i32_79 : i32 to vector<1x256xi32>
    %184 = arith.cmpi slt, %182, %183 : vector<1x256xi32>
    %185 = arith.andi %180, %184 : vector<1x256xi1>
    %cst_80 = arith.constant -3.000000e+38 : f32
    %186 = vector.shape_cast %185 : vector<1x256xi1> to vector<1x256xi1>
    %187 = vector.broadcast %186 : vector<1x256xi1> to vector<16x256xi1>
    %188 = vector.broadcast %cst_80 : f32 to vector<16x256xf32>
    %189 = arith.select %187, %166, %188 : vector<16x256xi1>, vector<16x256xf32>
    %190 = arith.maximumf %165, %189 : vector<16x256xf32>
    %c0_81 = arith.constant 0 : index
    %c34 = arith.constant 34 : index
    %191 = vector.load %arg13[%c0_81, %c34] : memref<16x290xf32, #tpu.memory_space<vmem>>, vector<16x256xf32>
    %c1_i32_82 = arith.constant 1 : i32
    %192 = vector.broadcast %c1_i32_82 : i32 to vector<1x256xi32>
    %193 = arith.addi %0, %192 : vector<1x256xi32>
    %c0_i32_83 = arith.constant 0 : i32
    %194 = vector.broadcast %c0_i32_83 : i32 to vector<1x256xi32>
    %195 = arith.cmpi sge, %193, %194 : vector<1x256xi32>
    %c1_i32_84 = arith.constant 1 : i32
    %196 = vector.broadcast %c1_i32_84 : i32 to vector<1x256xi32>
    %197 = arith.addi %0, %196 : vector<1x256xi32>
    %c16_i32_85 = arith.constant 16 : i32
    %198 = vector.broadcast %c16_i32_85 : i32 to vector<1x256xi32>
    %199 = arith.cmpi slt, %197, %198 : vector<1x256xi32>
    %200 = arith.andi %195, %199 : vector<1x256xi1>
    %c1_i32_86 = arith.constant 1 : i32
    %201 = vector.broadcast %c1_i32_86 : i32 to vector<1x256xi32>
    %202 = arith.addi %1, %201 : vector<1x256xi32>
    %c0_i32_87 = arith.constant 0 : i32
    %203 = vector.broadcast %c0_i32_87 : i32 to vector<1x256xi32>
    %204 = arith.cmpi sge, %202, %203 : vector<1x256xi32>
    %205 = arith.andi %200, %204 : vector<1x256xi1>
    %c1_i32_88 = arith.constant 1 : i32
    %206 = vector.broadcast %c1_i32_88 : i32 to vector<1x256xi32>
    %207 = arith.addi %1, %206 : vector<1x256xi32>
    %c16_i32_89 = arith.constant 16 : i32
    %208 = vector.broadcast %c16_i32_89 : i32 to vector<1x256xi32>
    %209 = arith.cmpi slt, %207, %208 : vector<1x256xi32>
    %210 = arith.andi %205, %209 : vector<1x256xi1>
    %cst_90 = arith.constant -3.000000e+38 : f32
    %211 = vector.shape_cast %210 : vector<1x256xi1> to vector<1x256xi1>
    %212 = vector.broadcast %211 : vector<1x256xi1> to vector<16x256xi1>
    %213 = vector.broadcast %cst_90 : f32 to vector<16x256xf32>
    %214 = arith.select %212, %191, %213 : vector<16x256xi1>, vector<16x256xf32>
    %215 = arith.maximumf %190, %214 : vector<16x256xf32>
    %c0_91 = arith.constant 0 : index
    %c0_92 = arith.constant 0 : index
    %216 = vector.load %arg6[%c0_91, %c0_92] : memref<16x16xf32, #tpu.memory_space<vmem>>, vector<16x16xf32>
    %cst_93 = arith.constant dense<0.000000e+00> : vector<16x256xf32>
    %217 = tpu.matmul %216, %215, %cst_93 {dimension_numbers = #tpu.dot_dimension_numbers<[1], [0], [0], [1], [0, 0, 1, 1], [], []>} : vector<16x16xf32>, vector<16x256xf32>, vector<16x256xf32> -> vector<16x256xf32>
    %c0_94 = arith.constant 0 : index
    %c0_95 = arith.constant 0 : index
    %218 = vector.load %arg7[%c0_94, %c0_95] : memref<16x1xf32, #tpu.memory_space<vmem>>, vector<16x1xf32>
    %219 = vector.broadcast %218 : vector<16x1xf32> to vector<16x256xf32>
    %220 = arith.addf %217, %219 : vector<16x256xf32>
    %cst_96 = arith.constant 0.000000e+00 : f32
    %221 = vector.broadcast %cst_96 : f32 to vector<16x256xf32>
    %222 = arith.maximumf %220, %221 : vector<16x256xf32>
    %c0_97 = arith.constant 0 : index
    %c17_98 = arith.constant 17 : index
    %223 = vector.load %arg14[%c0_97, %c17_98] : memref<8x290xf32, #tpu.memory_space<vmem>>, vector<8x256xf32>
    tpu.vector_store %arg14[%c0_97, %c17_98], %12 {strides = array<i32>} : memref<8x290xf32, #tpu.memory_space<vmem>>, vector<8x256xf32>,
    %c0_99 = arith.constant 0 : index
    %c0_100 = arith.constant 0 : index
    %224 = vector.load %arg14[%c0_99, %c0_100] : memref<8x290xf32, #tpu.memory_space<vmem>>, vector<8x256xf32>
    %cst_101 = arith.constant 0.000000e+00 : f32
    %225 = vector.shape_cast %34 : vector<1x256xi1> to vector<1x256xi1>
    %226 = vector.broadcast %225 : vector<1x256xi1> to vector<8x256xi1>
    %227 = vector.broadcast %cst_101 : f32 to vector<8x256xf32>
    %228 = arith.select %226, %224, %227 : vector<8x256xi1>, vector<8x256xf32>
    %c0_102 = arith.constant 0 : index
    %c1_103 = arith.constant 1 : index
    %229 = vector.load %arg14[%c0_102, %c1_103] : memref<8x290xf32, #tpu.memory_space<vmem>>, vector<8x256xf32>
    %cst_104 = arith.constant 0.000000e+00 : f32
    %230 = vector.shape_cast %58 : vector<1x256xi1> to vector<1x256xi1>
    %231 = vector.broadcast %230 : vector<1x256xi1> to vector<8x256xi1>
    %232 = vector.broadcast %cst_104 : f32 to vector<8x256xf32>
    %233 = arith.select %231, %229, %232 : vector<8x256xi1>, vector<8x256xf32>
    %c0_105 = arith.constant 0 : index
    %c2_106 = arith.constant 2 : index
    %234 = vector.load %arg14[%c0_105, %c2_106] : memref<8x290xf32, #tpu.memory_space<vmem>>, vector<8x256xf32>
    %cst_107 = arith.constant 0.000000e+00 : f32
    %235 = vector.shape_cast %83 : vector<1x256xi1> to vector<1x256xi1>
    %236 = vector.broadcast %235 : vector<1x256xi1> to vector<8x256xi1>
    %237 = vector.broadcast %cst_107 : f32 to vector<8x256xf32>
    %238 = arith.select %236, %234, %237 : vector<8x256xi1>, vector<8x256xf32>
    %c0_108 = arith.constant 0 : index
    %c16_109 = arith.constant 16 : index
    %239 = vector.load %arg14[%c0_108, %c16_109] : memref<8x290xf32, #tpu.memory_space<vmem>>, vector<8x256xf32>
    %cst_110 = arith.constant 0.000000e+00 : f32
    %240 = vector.shape_cast %108 : vector<1x256xi1> to vector<1x256xi1>
    %241 = vector.broadcast %240 : vector<1x256xi1> to vector<8x256xi1>
    %242 = vector.broadcast %cst_110 : f32 to vector<8x256xf32>
    %243 = arith.select %241, %239, %242 : vector<8x256xi1>, vector<8x256xf32>
    %c0_111 = arith.constant 0 : index
    %c17_112 = arith.constant 17 : index
    %244 = vector.load %arg14[%c0_111, %c17_112] : memref<8x290xf32, #tpu.memory_space<vmem>>, vector<8x256xf32>
    %c0_113 = arith.constant 0 : index
    %c18_114 = arith.constant 18 : index
    %245 = vector.load %arg14[%c0_113, %c18_114] : memref<8x290xf32, #tpu.memory_space<vmem>>, vector<8x256xf32>
    %cst_115 = arith.constant 0.000000e+00 : f32
    %246 = vector.shape_cast %135 : vector<1x256xi1> to vector<1x256xi1>
    %247 = vector.broadcast %246 : vector<1x256xi1> to vector<8x256xi1>
    %248 = vector.broadcast %cst_115 : f32 to vector<8x256xf32>
    %249 = arith.select %247, %245, %248 : vector<8x256xi1>, vector<8x256xf32>
    %c0_116 = arith.constant 0 : index
    %c32_117 = arith.constant 32 : index
    %250 = vector.load %arg14[%c0_116, %c32_117] : memref<8x290xf32, #tpu.memory_space<vmem>>, vector<8x256xf32>
    %cst_118 = arith.constant 0.000000e+00 : f32
    %251 = vector.shape_cast %160 : vector<1x256xi1> to vector<1x256xi1>
    %252 = vector.broadcast %251 : vector<1x256xi1> to vector<8x256xi1>
    %253 = vector.broadcast %cst_118 : f32 to vector<8x256xf32>
    %254 = arith.select %252, %250, %253 : vector<8x256xi1>, vector<8x256xf32>
    %c0_119 = arith.constant 0 : index
    %c33_120 = arith.constant 33 : index
    %255 = vector.load %arg14[%c0_119, %c33_120] : memref<8x290xf32, #tpu.memory_space<vmem>>, vector<8x256xf32>
    %cst_121 = arith.constant 0.000000e+00 : f32
    %256 = vector.shape_cast %185 : vector<1x256xi1> to vector<1x256xi1>
    %257 = vector.broadcast %256 : vector<1x256xi1> to vector<8x256xi1>
    %258 = vector.broadcast %cst_121 : f32 to vector<8x256xf32>
    %259 = arith.select %257, %255, %258 : vector<8x256xi1>, vector<8x256xf32>
    %c0_122 = arith.constant 0 : index
    %c34_123 = arith.constant 34 : index
    %260 = vector.load %arg14[%c0_122, %c34_123] : memref<8x290xf32, #tpu.memory_space<vmem>>, vector<8x256xf32>
    %cst_124 = arith.constant 0.000000e+00 : f32
    %261 = vector.shape_cast %210 : vector<1x256xi1> to vector<1x256xi1>
    %262 = vector.broadcast %261 : vector<1x256xi1> to vector<8x256xi1>
    %263 = vector.broadcast %cst_124 : f32 to vector<8x256xf32>
    %264 = arith.select %262, %260, %263 : vector<8x256xi1>, vector<8x256xf32>
    %265 = tpu.concatenate %228, %233, %238, %243, %244, %249, %254, %259, %264 in 0 : vector<8x256xf32>, vector<8x256xf32>, vector<8x256xf32>, vector<8x256xf32>, vector<8x256xf32>, vector<8x256xf32>, vector<8x256xf32>, vector<8x256xf32>, vector<8x256xf32> -> vector<72x256xf32>
    %c0_125 = arith.constant 0 : index
    %c0_126 = arith.constant 0 : index
    %266 = vector.load %arg8[%c0_125, %c0_126] : memref<16x72xf32, #tpu.memory_space<vmem>>, vector<16x72xf32>
    %cst_127 = arith.constant dense<0.000000e+00> : vector<16x256xf32>
    %267 = tpu.matmul %266, %265, %cst_127 {dimension_numbers = #tpu.dot_dimension_numbers<[1], [0], [0], [1], [0, 0, 1, 1], [], []>} : vector<16x72xf32>, vector<72x256xf32>, vector<16x256xf32> -> vector<16x256xf32>
    %c0_128 = arith.constant 0 : index
    %c0_129 = arith.constant 0 : index
    %268 = vector.load %arg9[%c0_128, %c0_129] : memref<16x1xf32, #tpu.memory_space<vmem>>, vector<16x1xf32>
    %269 = vector.broadcast %268 : vector<16x1xf32> to vector<16x256xf32>
    %270 = arith.addf %267, %269 : vector<16x256xf32>
    %cst_130 = arith.constant 0.000000e+00 : f32
    %271 = vector.broadcast %cst_130 : f32 to vector<16x256xf32>
    %272 = arith.maximumf %270, %271 : vector<16x256xf32>
    %c0_131 = arith.constant 0 : index
    %c34_132 = arith.constant 34 : index
    %273 = vector.load %arg15[%c0_131, %c34_132] : memref<8x324xf32, #tpu.memory_space<vmem>>, vector<8x256xf32>
    tpu.vector_store %arg15[%c0_131, %c34_132], %13 {strides = array<i32>} : memref<8x324xf32, #tpu.memory_space<vmem>>, vector<8x256xf32>,
    %c0_133 = arith.constant 0 : index
    %c0_134 = arith.constant 0 : index
    %274 = vector.load %arg15[%c0_133, %c0_134] : memref<8x324xf32, #tpu.memory_space<vmem>>, vector<8x256xf32>
    %c-2_i32 = arith.constant -2 : i32
    %275 = vector.broadcast %c-2_i32 : i32 to vector<1x256xi32>
    %276 = arith.addi %0, %275 : vector<1x256xi32>
    %c0_i32_135 = arith.constant 0 : i32
    %277 = vector.broadcast %c0_i32_135 : i32 to vector<1x256xi32>
    %278 = arith.cmpi sge, %276, %277 : vector<1x256xi32>
    %c-2_i32_136 = arith.constant -2 : i32
    %279 = vector.broadcast %c-2_i32_136 : i32 to vector<1x256xi32>
    %280 = arith.addi %0, %279 : vector<1x256xi32>
    %c16_i32_137 = arith.constant 16 : i32
    %281 = vector.broadcast %c16_i32_137 : i32 to vector<1x256xi32>
    %282 = arith.cmpi slt, %280, %281 : vector<1x256xi32>
    %283 = arith.andi %278, %282 : vector<1x256xi1>
    %c-2_i32_138 = arith.constant -2 : i32
    %284 = vector.broadcast %c-2_i32_138 : i32 to vector<1x256xi32>
    %285 = arith.addi %1, %284 : vector<1x256xi32>
    %c0_i32_139 = arith.constant 0 : i32
    %286 = vector.broadcast %c0_i32_139 : i32 to vector<1x256xi32>
    %287 = arith.cmpi sge, %285, %286 : vector<1x256xi32>
    %288 = arith.andi %283, %287 : vector<1x256xi1>
    %c-2_i32_140 = arith.constant -2 : i32
    %289 = vector.broadcast %c-2_i32_140 : i32 to vector<1x256xi32>
    %290 = arith.addi %1, %289 : vector<1x256xi32>
    %c16_i32_141 = arith.constant 16 : i32
    %291 = vector.broadcast %c16_i32_141 : i32 to vector<1x256xi32>
    %292 = arith.cmpi slt, %290, %291 : vector<1x256xi32>
    %293 = arith.andi %288, %292 : vector<1x256xi1>
    %cst_142 = arith.constant 0.000000e+00 : f32
    %294 = vector.shape_cast %293 : vector<1x256xi1> to vector<1x256xi1>
    %295 = vector.broadcast %294 : vector<1x256xi1> to vector<8x256xi1>
    %296 = vector.broadcast %cst_142 : f32 to vector<8x256xf32>
    %297 = arith.select %295, %274, %296 : vector<8x256xi1>, vector<8x256xf32>
    %c0_143 = arith.constant 0 : index
    %c1_144 = arith.constant 1 : index
    %298 = vector.load %arg15[%c0_143, %c1_144] : memref<8x324xf32, #tpu.memory_space<vmem>>, vector<8x256xf32>
    %c-2_i32_145 = arith.constant -2 : i32
    %299 = vector.broadcast %c-2_i32_145 : i32 to vector<1x256xi32>
    %300 = arith.addi %0, %299 : vector<1x256xi32>
    %c0_i32_146 = arith.constant 0 : i32
    %301 = vector.broadcast %c0_i32_146 : i32 to vector<1x256xi32>
    %302 = arith.cmpi sge, %300, %301 : vector<1x256xi32>
    %c-2_i32_147 = arith.constant -2 : i32
    %303 = vector.broadcast %c-2_i32_147 : i32 to vector<1x256xi32>
    %304 = arith.addi %0, %303 : vector<1x256xi32>
    %c16_i32_148 = arith.constant 16 : i32
    %305 = vector.broadcast %c16_i32_148 : i32 to vector<1x256xi32>
    %306 = arith.cmpi slt, %304, %305 : vector<1x256xi32>
    %307 = arith.andi %302, %306 : vector<1x256xi1>
    %c-1_i32_149 = arith.constant -1 : i32
    %308 = vector.broadcast %c-1_i32_149 : i32 to vector<1x256xi32>
    %309 = arith.addi %1, %308 : vector<1x256xi32>
    %c0_i32_150 = arith.constant 0 : i32
    %310 = vector.broadcast %c0_i32_150 : i32 to vector<1x256xi32>
    %311 = arith.cmpi sge, %309, %310 : vector<1x256xi32>
    %312 = arith.andi %307, %311 : vector<1x256xi1>
    %c-1_i32_151 = arith.constant -1 : i32
    %313 = vector.broadcast %c-1_i32_151 : i32 to vector<1x256xi32>
    %314 = arith.addi %1, %313 : vector<1x256xi32>
    %c16_i32_152 = arith.constant 16 : i32
    %315 = vector.broadcast %c16_i32_152 : i32 to vector<1x256xi32>
    %316 = arith.cmpi slt, %314, %315 : vector<1x256xi32>
    %317 = arith.andi %312, %316 : vector<1x256xi1>
    %cst_153 = arith.constant 0.000000e+00 : f32
    %318 = vector.shape_cast %317 : vector<1x256xi1> to vector<1x256xi1>
    %319 = vector.broadcast %318 : vector<1x256xi1> to vector<8x256xi1>
    %320 = vector.broadcast %cst_153 : f32 to vector<8x256xf32>
    %321 = arith.select %319, %298, %320 : vector<8x256xi1>, vector<8x256xf32>
    %c0_154 = arith.constant 0 : index
    %c2_155 = arith.constant 2 : index
    %322 = vector.load %arg15[%c0_154, %c2_155] : memref<8x324xf32, #tpu.memory_space<vmem>>, vector<8x256xf32>
    %c-2_i32_156 = arith.constant -2 : i32
    %323 = vector.broadcast %c-2_i32_156 : i32 to vector<1x256xi32>
    %324 = arith.addi %0, %323 : vector<1x256xi32>
    %c0_i32_157 = arith.constant 0 : i32
    %325 = vector.broadcast %c0_i32_157 : i32 to vector<1x256xi32>
    %326 = arith.cmpi sge, %324, %325 : vector<1x256xi32>
    %c-2_i32_158 = arith.constant -2 : i32
    %327 = vector.broadcast %c-2_i32_158 : i32 to vector<1x256xi32>
    %328 = arith.addi %0, %327 : vector<1x256xi32>
    %c16_i32_159 = arith.constant 16 : i32
    %329 = vector.broadcast %c16_i32_159 : i32 to vector<1x256xi32>
    %330 = arith.cmpi slt, %328, %329 : vector<1x256xi32>
    %331 = arith.andi %326, %330 : vector<1x256xi1>
    %c0_i32_160 = arith.constant 0 : i32
    %332 = vector.broadcast %c0_i32_160 : i32 to vector<1x256xi32>
    %333 = arith.addi %1, %332 : vector<1x256xi32>
    %c0_i32_161 = arith.constant 0 : i32
    %334 = vector.broadcast %c0_i32_161 : i32 to vector<1x256xi32>
    %335 = arith.cmpi sge, %333, %334 : vector<1x256xi32>
    %336 = arith.andi %331, %335 : vector<1x256xi1>
    %c0_i32_162 = arith.constant 0 : i32
    %337 = vector.broadcast %c0_i32_162 : i32 to vector<1x256xi32>
    %338 = arith.addi %1, %337 : vector<1x256xi32>
    %c16_i32_163 = arith.constant 16 : i32
    %339 = vector.broadcast %c16_i32_163 : i32 to vector<1x256xi32>
    %340 = arith.cmpi slt, %338, %339 : vector<1x256xi32>
    %341 = arith.andi %336, %340 : vector<1x256xi1>
    %cst_164 = arith.constant 0.000000e+00 : f32
    %342 = vector.shape_cast %341 : vector<1x256xi1> to vector<1x256xi1>
    %343 = vector.broadcast %342 : vector<1x256xi1> to vector<8x256xi1>
    %344 = vector.broadcast %cst_164 : f32 to vector<8x256xf32>
    %345 = arith.select %343, %322, %344 : vector<8x256xi1>, vector<8x256xf32>
    %c0_165 = arith.constant 0 : index
    %c3 = arith.constant 3 : index
    %346 = vector.load %arg15[%c0_165, %c3] : memref<8x324xf32, #tpu.memory_space<vmem>>, vector<8x256xf32>
    %c-2_i32_166 = arith.constant -2 : i32
    %347 = vector.broadcast %c-2_i32_166 : i32 to vector<1x256xi32>
    %348 = arith.addi %0, %347 : vector<1x256xi32>
    %c0_i32_167 = arith.constant 0 : i32
    %349 = vector.broadcast %c0_i32_167 : i32 to vector<1x256xi32>
    %350 = arith.cmpi sge, %348, %349 : vector<1x256xi32>
    %c-2_i32_168 = arith.constant -2 : i32
    %351 = vector.broadcast %c-2_i32_168 : i32 to vector<1x256xi32>
    %352 = arith.addi %0, %351 : vector<1x256xi32>
    %c16_i32_169 = arith.constant 16 : i32
    %353 = vector.broadcast %c16_i32_169 : i32 to vector<1x256xi32>
    %354 = arith.cmpi slt, %352, %353 : vector<1x256xi32>
    %355 = arith.andi %350, %354 : vector<1x256xi1>
    %c1_i32_170 = arith.constant 1 : i32
    %356 = vector.broadcast %c1_i32_170 : i32 to vector<1x256xi32>
    %357 = arith.addi %1, %356 : vector<1x256xi32>
    %c0_i32_171 = arith.constant 0 : i32
    %358 = vector.broadcast %c0_i32_171 : i32 to vector<1x256xi32>
    %359 = arith.cmpi sge, %357, %358 : vector<1x256xi32>
    %360 = arith.andi %355, %359 : vector<1x256xi1>
    %c1_i32_172 = arith.constant 1 : i32
    %361 = vector.broadcast %c1_i32_172 : i32 to vector<1x256xi32>
    %362 = arith.addi %1, %361 : vector<1x256xi32>
    %c16_i32_173 = arith.constant 16 : i32
    %363 = vector.broadcast %c16_i32_173 : i32 to vector<1x256xi32>
    %364 = arith.cmpi slt, %362, %363 : vector<1x256xi32>
    %365 = arith.andi %360, %364 : vector<1x256xi1>
    %cst_174 = arith.constant 0.000000e+00 : f32
    %366 = vector.shape_cast %365 : vector<1x256xi1> to vector<1x256xi1>
    %367 = vector.broadcast %366 : vector<1x256xi1> to vector<8x256xi1>
    %368 = vector.broadcast %cst_174 : f32 to vector<8x256xf32>
    %369 = arith.select %367, %346, %368 : vector<8x256xi1>, vector<8x256xf32>
    %c0_175 = arith.constant 0 : index
    %c4 = arith.constant 4 : index
    %370 = vector.load %arg15[%c0_175, %c4] : memref<8x324xf32, #tpu.memory_space<vmem>>, vector<8x256xf32>
    %c-2_i32_176 = arith.constant -2 : i32
    %371 = vector.broadcast %c-2_i32_176 : i32 to vector<1x256xi32>
    %372 = arith.addi %0, %371 : vector<1x256xi32>
    %c0_i32_177 = arith.constant 0 : i32
    %373 = vector.broadcast %c0_i32_177 : i32 to vector<1x256xi32>
    %374 = arith.cmpi sge, %372, %373 : vector<1x256xi32>
    %c-2_i32_178 = arith.constant -2 : i32
    %375 = vector.broadcast %c-2_i32_178 : i32 to vector<1x256xi32>
    %376 = arith.addi %0, %375 : vector<1x256xi32>
    %c16_i32_179 = arith.constant 16 : i32
    %377 = vector.broadcast %c16_i32_179 : i32 to vector<1x256xi32>
    %378 = arith.cmpi slt, %376, %377 : vector<1x256xi32>
    %379 = arith.andi %374, %378 : vector<1x256xi1>
    %c2_i32 = arith.constant 2 : i32
    %380 = vector.broadcast %c2_i32 : i32 to vector<1x256xi32>
    %381 = arith.addi %1, %380 : vector<1x256xi32>
    %c0_i32_180 = arith.constant 0 : i32
    %382 = vector.broadcast %c0_i32_180 : i32 to vector<1x256xi32>
    %383 = arith.cmpi sge, %381, %382 : vector<1x256xi32>
    %384 = arith.andi %379, %383 : vector<1x256xi1>
    %c2_i32_181 = arith.constant 2 : i32
    %385 = vector.broadcast %c2_i32_181 : i32 to vector<1x256xi32>
    %386 = arith.addi %1, %385 : vector<1x256xi32>
    %c16_i32_182 = arith.constant 16 : i32
    %387 = vector.broadcast %c16_i32_182 : i32 to vector<1x256xi32>
    %388 = arith.cmpi slt, %386, %387 : vector<1x256xi32>
    %389 = arith.andi %384, %388 : vector<1x256xi1>
    %cst_183 = arith.constant 0.000000e+00 : f32
    %390 = vector.shape_cast %389 : vector<1x256xi1> to vector<1x256xi1>
    %391 = vector.broadcast %390 : vector<1x256xi1> to vector<8x256xi1>
    %392 = vector.broadcast %cst_183 : f32 to vector<8x256xf32>
    %393 = arith.select %391, %370, %392 : vector<8x256xi1>, vector<8x256xf32>
    %c0_184 = arith.constant 0 : index
    %c16_185 = arith.constant 16 : index
    %394 = vector.load %arg15[%c0_184, %c16_185] : memref<8x324xf32, #tpu.memory_space<vmem>>, vector<8x256xf32>
    %c-1_i32_186 = arith.constant -1 : i32
    %395 = vector.broadcast %c-1_i32_186 : i32 to vector<1x256xi32>
    %396 = arith.addi %0, %395 : vector<1x256xi32>
    %c0_i32_187 = arith.constant 0 : i32
    %397 = vector.broadcast %c0_i32_187 : i32 to vector<1x256xi32>
    %398 = arith.cmpi sge, %396, %397 : vector<1x256xi32>
    %c-1_i32_188 = arith.constant -1 : i32
    %399 = vector.broadcast %c-1_i32_188 : i32 to vector<1x256xi32>
    %400 = arith.addi %0, %399 : vector<1x256xi32>
    %c16_i32_189 = arith.constant 16 : i32
    %401 = vector.broadcast %c16_i32_189 : i32 to vector<1x256xi32>
    %402 = arith.cmpi slt, %400, %401 : vector<1x256xi32>
    %403 = arith.andi %398, %402 : vector<1x256xi1>
    %c-2_i32_190 = arith.constant -2 : i32
    %404 = vector.broadcast %c-2_i32_190 : i32 to vector<1x256xi32>
    %405 = arith.addi %1, %404 : vector<1x256xi32>
    %c0_i32_191 = arith.constant 0 : i32
    %406 = vector.broadcast %c0_i32_191 : i32 to vector<1x256xi32>
    %407 = arith.cmpi sge, %405, %406 : vector<1x256xi32>
    %408 = arith.andi %403, %407 : vector<1x256xi1>
    %c-2_i32_192 = arith.constant -2 : i32
    %409 = vector.broadcast %c-2_i32_192 : i32 to vector<1x256xi32>
    %410 = arith.addi %1, %409 : vector<1x256xi32>
    %c16_i32_193 = arith.constant 16 : i32
    %411 = vector.broadcast %c16_i32_193 : i32 to vector<1x256xi32>
    %412 = arith.cmpi slt, %410, %411 : vector<1x256xi32>
    %413 = arith.andi %408, %412 : vector<1x256xi1>
    %cst_194 = arith.constant 0.000000e+00 : f32
    %414 = vector.shape_cast %413 : vector<1x256xi1> to vector<1x256xi1>
    %415 = vector.broadcast %414 : vector<1x256xi1> to vector<8x256xi1>
    %416 = vector.broadcast %cst_194 : f32 to vector<8x256xf32>
    %417 = arith.select %415, %394, %416 : vector<8x256xi1>, vector<8x256xf32>
    %c0_195 = arith.constant 0 : index
    %c17_196 = arith.constant 17 : index
    %418 = vector.load %arg15[%c0_195, %c17_196] : memref<8x324xf32, #tpu.memory_space<vmem>>, vector<8x256xf32>
    %cst_197 = arith.constant 0.000000e+00 : f32
    %419 = vector.shape_cast %34 : vector<1x256xi1> to vector<1x256xi1>
    %420 = vector.broadcast %419 : vector<1x256xi1> to vector<8x256xi1>
    %421 = vector.broadcast %cst_197 : f32 to vector<8x256xf32>
    %422 = arith.select %420, %418, %421 : vector<8x256xi1>, vector<8x256xf32>
    %c0_198 = arith.constant 0 : index
    %c18_199 = arith.constant 18 : index
    %423 = vector.load %arg15[%c0_198, %c18_199] : memref<8x324xf32, #tpu.memory_space<vmem>>, vector<8x256xf32>
    %cst_200 = arith.constant 0.000000e+00 : f32
    %424 = vector.shape_cast %58 : vector<1x256xi1> to vector<1x256xi1>
    %425 = vector.broadcast %424 : vector<1x256xi1> to vector<8x256xi1>
    %426 = vector.broadcast %cst_200 : f32 to vector<8x256xf32>
    %427 = arith.select %425, %423, %426 : vector<8x256xi1>, vector<8x256xf32>
    %c0_201 = arith.constant 0 : index
    %c19 = arith.constant 19 : index
    %428 = vector.load %arg15[%c0_201, %c19] : memref<8x324xf32, #tpu.memory_space<vmem>>, vector<8x256xf32>
    %cst_202 = arith.constant 0.000000e+00 : f32
    %429 = vector.shape_cast %83 : vector<1x256xi1> to vector<1x256xi1>
    %430 = vector.broadcast %429 : vector<1x256xi1> to vector<8x256xi1>
    %431 = vector.broadcast %cst_202 : f32 to vector<8x256xf32>
    %432 = arith.select %430, %428, %431 : vector<8x256xi1>, vector<8x256xf32>
    %c0_203 = arith.constant 0 : index
    %c20 = arith.constant 20 : index
    %433 = vector.load %arg15[%c0_203, %c20] : memref<8x324xf32, #tpu.memory_space<vmem>>, vector<8x256xf32>
    %c-1_i32_204 = arith.constant -1 : i32
    %434 = vector.broadcast %c-1_i32_204 : i32 to vector<1x256xi32>
    %435 = arith.addi %0, %434 : vector<1x256xi32>
    %c0_i32_205 = arith.constant 0 : i32
    %436 = vector.broadcast %c0_i32_205 : i32 to vector<1x256xi32>
    %437 = arith.cmpi sge, %435, %436 : vector<1x256xi32>
    %c-1_i32_206 = arith.constant -1 : i32
    %438 = vector.broadcast %c-1_i32_206 : i32 to vector<1x256xi32>
    %439 = arith.addi %0, %438 : vector<1x256xi32>
    %c16_i32_207 = arith.constant 16 : i32
    %440 = vector.broadcast %c16_i32_207 : i32 to vector<1x256xi32>
    %441 = arith.cmpi slt, %439, %440 : vector<1x256xi32>
    %442 = arith.andi %437, %441 : vector<1x256xi1>
    %c2_i32_208 = arith.constant 2 : i32
    %443 = vector.broadcast %c2_i32_208 : i32 to vector<1x256xi32>
    %444 = arith.addi %1, %443 : vector<1x256xi32>
    %c0_i32_209 = arith.constant 0 : i32
    %445 = vector.broadcast %c0_i32_209 : i32 to vector<1x256xi32>
    %446 = arith.cmpi sge, %444, %445 : vector<1x256xi32>
    %447 = arith.andi %442, %446 : vector<1x256xi1>
    %c2_i32_210 = arith.constant 2 : i32
    %448 = vector.broadcast %c2_i32_210 : i32 to vector<1x256xi32>
    %449 = arith.addi %1, %448 : vector<1x256xi32>
    %c16_i32_211 = arith.constant 16 : i32
    %450 = vector.broadcast %c16_i32_211 : i32 to vector<1x256xi32>
    %451 = arith.cmpi slt, %449, %450 : vector<1x256xi32>
    %452 = arith.andi %447, %451 : vector<1x256xi1>
    %cst_212 = arith.constant 0.000000e+00 : f32
    %453 = vector.shape_cast %452 : vector<1x256xi1> to vector<1x256xi1>
    %454 = vector.broadcast %453 : vector<1x256xi1> to vector<8x256xi1>
    %455 = vector.broadcast %cst_212 : f32 to vector<8x256xf32>
    %456 = arith.select %454, %433, %455 : vector<8x256xi1>, vector<8x256xf32>
    %c0_213 = arith.constant 0 : index
    %c32_214 = arith.constant 32 : index
    %457 = vector.load %arg15[%c0_213, %c32_214] : memref<8x324xf32, #tpu.memory_space<vmem>>, vector<8x256xf32>
    %c0_i32_215 = arith.constant 0 : i32
    %458 = vector.broadcast %c0_i32_215 : i32 to vector<1x256xi32>
    %459 = arith.addi %0, %458 : vector<1x256xi32>
    %c0_i32_216 = arith.constant 0 : i32
    %460 = vector.broadcast %c0_i32_216 : i32 to vector<1x256xi32>
    %461 = arith.cmpi sge, %459, %460 : vector<1x256xi32>
    %c0_i32_217 = arith.constant 0 : i32
    %462 = vector.broadcast %c0_i32_217 : i32 to vector<1x256xi32>
    %463 = arith.addi %0, %462 : vector<1x256xi32>
    %c16_i32_218 = arith.constant 16 : i32
    %464 = vector.broadcast %c16_i32_218 : i32 to vector<1x256xi32>
    %465 = arith.cmpi slt, %463, %464 : vector<1x256xi32>
    %466 = arith.andi %461, %465 : vector<1x256xi1>
    %c-2_i32_219 = arith.constant -2 : i32
    %467 = vector.broadcast %c-2_i32_219 : i32 to vector<1x256xi32>
    %468 = arith.addi %1, %467 : vector<1x256xi32>
    %c0_i32_220 = arith.constant 0 : i32
    %469 = vector.broadcast %c0_i32_220 : i32 to vector<1x256xi32>
    %470 = arith.cmpi sge, %468, %469 : vector<1x256xi32>
    %471 = arith.andi %466, %470 : vector<1x256xi1>
    %c-2_i32_221 = arith.constant -2 : i32
    %472 = vector.broadcast %c-2_i32_221 : i32 to vector<1x256xi32>
    %473 = arith.addi %1, %472 : vector<1x256xi32>
    %c16_i32_222 = arith.constant 16 : i32
    %474 = vector.broadcast %c16_i32_222 : i32 to vector<1x256xi32>
    %475 = arith.cmpi slt, %473, %474 : vector<1x256xi32>
    %476 = arith.andi %471, %475 : vector<1x256xi1>
    %cst_223 = arith.constant 0.000000e+00 : f32
    %477 = vector.shape_cast %476 : vector<1x256xi1> to vector<1x256xi1>
    %478 = vector.broadcast %477 : vector<1x256xi1> to vector<8x256xi1>
    %479 = vector.broadcast %cst_223 : f32 to vector<8x256xf32>
    %480 = arith.select %478, %457, %479 : vector<8x256xi1>, vector<8x256xf32>
    %c0_224 = arith.constant 0 : index
    %c33_225 = arith.constant 33 : index
    %481 = vector.load %arg15[%c0_224, %c33_225] : memref<8x324xf32, #tpu.memory_space<vmem>>, vector<8x256xf32>
    %cst_226 = arith.constant 0.000000e+00 : f32
    %482 = vector.shape_cast %108 : vector<1x256xi1> to vector<1x256xi1>
    %483 = vector.broadcast %482 : vector<1x256xi1> to vector<8x256xi1>
    %484 = vector.broadcast %cst_226 : f32 to vector<8x256xf32>
    %485 = arith.select %483, %481, %484 : vector<8x256xi1>, vector<8x256xf32>
    %c0_227 = arith.constant 0 : index
    %c34_228 = arith.constant 34 : index
    %486 = vector.load %arg15[%c0_227, %c34_228] : memref<8x324xf32, #tpu.memory_space<vmem>>, vector<8x256xf32>
    %c0_229 = arith.constant 0 : index
    %c35 = arith.constant 35 : index
    %487 = vector.load %arg15[%c0_229, %c35] : memref<8x324xf32, #tpu.memory_space<vmem>>, vector<8x256xf32>
    %cst_230 = arith.constant 0.000000e+00 : f32
    %488 = vector.shape_cast %135 : vector<1x256xi1> to vector<1x256xi1>
    %489 = vector.broadcast %488 : vector<1x256xi1> to vector<8x256xi1>
    %490 = vector.broadcast %cst_230 : f32 to vector<8x256xf32>
    %491 = arith.select %489, %487, %490 : vector<8x256xi1>, vector<8x256xf32>
    %c0_231 = arith.constant 0 : index
    %c36 = arith.constant 36 : index
    %492 = vector.load %arg15[%c0_231, %c36] : memref<8x324xf32, #tpu.memory_space<vmem>>, vector<8x256xf32>
    %c0_i32_232 = arith.constant 0 : i32
    %493 = vector.broadcast %c0_i32_232 : i32 to vector<1x256xi32>
    %494 = arith.addi %0, %493 : vector<1x256xi32>
    %c0_i32_233 = arith.constant 0 : i32
    %495 = vector.broadcast %c0_i32_233 : i32 to vector<1x256xi32>
    %496 = arith.cmpi sge, %494, %495 : vector<1x256xi32>
    %c0_i32_234 = arith.constant 0 : i32
    %497 = vector.broadcast %c0_i32_234 : i32 to vector<1x256xi32>
    %498 = arith.addi %0, %497 : vector<1x256xi32>
    %c16_i32_235 = arith.constant 16 : i32
    %499 = vector.broadcast %c16_i32_235 : i32 to vector<1x256xi32>
    %500 = arith.cmpi slt, %498, %499 : vector<1x256xi32>
    %501 = arith.andi %496, %500 : vector<1x256xi1>
    %c2_i32_236 = arith.constant 2 : i32
    %502 = vector.broadcast %c2_i32_236 : i32 to vector<1x256xi32>
    %503 = arith.addi %1, %502 : vector<1x256xi32>
    %c0_i32_237 = arith.constant 0 : i32
    %504 = vector.broadcast %c0_i32_237 : i32 to vector<1x256xi32>
    %505 = arith.cmpi sge, %503, %504 : vector<1x256xi32>
    %506 = arith.andi %501, %505 : vector<1x256xi1>
    %c2_i32_238 = arith.constant 2 : i32
    %507 = vector.broadcast %c2_i32_238 : i32 to vector<1x256xi32>
    %508 = arith.addi %1, %507 : vector<1x256xi32>
    %c16_i32_239 = arith.constant 16 : i32
    %509 = vector.broadcast %c16_i32_239 : i32 to vector<1x256xi32>
    %510 = arith.cmpi slt, %508, %509 : vector<1x256xi32>
    %511 = arith.andi %506, %510 : vector<1x256xi1>
    %cst_240 = arith.constant 0.000000e+00 : f32
    %512 = vector.shape_cast %511 : vector<1x256xi1> to vector<1x256xi1>
    %513 = vector.broadcast %512 : vector<1x256xi1> to vector<8x256xi1>
    %514 = vector.broadcast %cst_240 : f32 to vector<8x256xf32>
    %515 = arith.select %513, %492, %514 : vector<8x256xi1>, vector<8x256xf32>
    %c0_241 = arith.constant 0 : index
    %c48 = arith.constant 48 : index
    %516 = vector.load %arg15[%c0_241, %c48] : memref<8x324xf32, #tpu.memory_space<vmem>>, vector<8x256xf32>
    %c1_i32_242 = arith.constant 1 : i32
    %517 = vector.broadcast %c1_i32_242 : i32 to vector<1x256xi32>
    %518 = arith.addi %0, %517 : vector<1x256xi32>
    %c0_i32_243 = arith.constant 0 : i32
    %519 = vector.broadcast %c0_i32_243 : i32 to vector<1x256xi32>
    %520 = arith.cmpi sge, %518, %519 : vector<1x256xi32>
    %c1_i32_244 = arith.constant 1 : i32
    %521 = vector.broadcast %c1_i32_244 : i32 to vector<1x256xi32>
    %522 = arith.addi %0, %521 : vector<1x256xi32>
    %c16_i32_245 = arith.constant 16 : i32
    %523 = vector.broadcast %c16_i32_245 : i32 to vector<1x256xi32>
    %524 = arith.cmpi slt, %522, %523 : vector<1x256xi32>
    %525 = arith.andi %520, %524 : vector<1x256xi1>
    %c-2_i32_246 = arith.constant -2 : i32
    %526 = vector.broadcast %c-2_i32_246 : i32 to vector<1x256xi32>
    %527 = arith.addi %1, %526 : vector<1x256xi32>
    %c0_i32_247 = arith.constant 0 : i32
    %528 = vector.broadcast %c0_i32_247 : i32 to vector<1x256xi32>
    %529 = arith.cmpi sge, %527, %528 : vector<1x256xi32>
    %530 = arith.andi %525, %529 : vector<1x256xi1>
    %c-2_i32_248 = arith.constant -2 : i32
    %531 = vector.broadcast %c-2_i32_248 : i32 to vector<1x256xi32>
    %532 = arith.addi %1, %531 : vector<1x256xi32>
    %c16_i32_249 = arith.constant 16 : i32
    %533 = vector.broadcast %c16_i32_249 : i32 to vector<1x256xi32>
    %534 = arith.cmpi slt, %532, %533 : vector<1x256xi32>
    %535 = arith.andi %530, %534 : vector<1x256xi1>
    %cst_250 = arith.constant 0.000000e+00 : f32
    %536 = vector.shape_cast %535 : vector<1x256xi1> to vector<1x256xi1>
    %537 = vector.broadcast %536 : vector<1x256xi1> to vector<8x256xi1>
    %538 = vector.broadcast %cst_250 : f32 to vector<8x256xf32>
    %539 = arith.select %537, %516, %538 : vector<8x256xi1>, vector<8x256xf32>
    %c0_251 = arith.constant 0 : index
    %c49 = arith.constant 49 : index
    %540 = vector.load %arg15[%c0_251, %c49] : memref<8x324xf32, #tpu.memory_space<vmem>>, vector<8x256xf32>
    %cst_252 = arith.constant 0.000000e+00 : f32
    %541 = vector.shape_cast %160 : vector<1x256xi1> to vector<1x256xi1>
    %542 = vector.broadcast %541 : vector<1x256xi1> to vector<8x256xi1>
    %543 = vector.broadcast %cst_252 : f32 to vector<8x256xf32>
    %544 = arith.select %542, %540, %543 : vector<8x256xi1>, vector<8x256xf32>
    %c0_253 = arith.constant 0 : index
    %c50 = arith.constant 50 : index
    %545 = vector.load %arg15[%c0_253, %c50] : memref<8x324xf32, #tpu.memory_space<vmem>>, vector<8x256xf32>
    %cst_254 = arith.constant 0.000000e+00 : f32
    %546 = vector.shape_cast %185 : vector<1x256xi1> to vector<1x256xi1>
    %547 = vector.broadcast %546 : vector<1x256xi1> to vector<8x256xi1>
    %548 = vector.broadcast %cst_254 : f32 to vector<8x256xf32>
    %549 = arith.select %547, %545, %548 : vector<8x256xi1>, vector<8x256xf32>
    %c0_255 = arith.constant 0 : index
    %c51 = arith.constant 51 : index
    %550 = vector.load %arg15[%c0_255, %c51] : memref<8x324xf32, #tpu.memory_space<vmem>>, vector<8x256xf32>
    %cst_256 = arith.constant 0.000000e+00 : f32
    %551 = vector.shape_cast %210 : vector<1x256xi1> to vector<1x256xi1>
    %552 = vector.broadcast %551 : vector<1x256xi1> to vector<8x256xi1>
    %553 = vector.broadcast %cst_256 : f32 to vector<8x256xf32>
    %554 = arith.select %552, %550, %553 : vector<8x256xi1>, vector<8x256xf32>
    %c0_257 = arith.constant 0 : index
    %c52 = arith.constant 52 : index
    %555 = vector.load %arg15[%c0_257, %c52] : memref<8x324xf32, #tpu.memory_space<vmem>>, vector<8x256xf32>
    %c1_i32_258 = arith.constant 1 : i32
    %556 = vector.broadcast %c1_i32_258 : i32 to vector<1x256xi32>
    %557 = arith.addi %0, %556 : vector<1x256xi32>
    %c0_i32_259 = arith.constant 0 : i32
    %558 = vector.broadcast %c0_i32_259 : i32 to vector<1x256xi32>
    %559 = arith.cmpi sge, %557, %558 : vector<1x256xi32>
    %c1_i32_260 = arith.constant 1 : i32
    %560 = vector.broadcast %c1_i32_260 : i32 to vector<1x256xi32>
    %561 = arith.addi %0, %560 : vector<1x256xi32>
    %c16_i32_261 = arith.constant 16 : i32
    %562 = vector.broadcast %c16_i32_261 : i32 to vector<1x256xi32>
    %563 = arith.cmpi slt, %561, %562 : vector<1x256xi32>
    %564 = arith.andi %559, %563 : vector<1x256xi1>
    %c2_i32_262 = arith.constant 2 : i32
    %565 = vector.broadcast %c2_i32_262 : i32 to vector<1x256xi32>
    %566 = arith.addi %1, %565 : vector<1x256xi32>
    %c0_i32_263 = arith.constant 0 : i32
    %567 = vector.broadcast %c0_i32_263 : i32 to vector<1x256xi32>
    %568 = arith.cmpi sge, %566, %567 : vector<1x256xi32>
    %569 = arith.andi %564, %568 : vector<1x256xi1>
    %c2_i32_264 = arith.constant 2 : i32
    %570 = vector.broadcast %c2_i32_264 : i32 to vector<1x256xi32>
    %571 = arith.addi %1, %570 : vector<1x256xi32>
    %c16_i32_265 = arith.constant 16 : i32
    %572 = vector.broadcast %c16_i32_265 : i32 to vector<1x256xi32>
    %573 = arith.cmpi slt, %571, %572 : vector<1x256xi32>
    %574 = arith.andi %569, %573 : vector<1x256xi1>
    %cst_266 = arith.constant 0.000000e+00 : f32
    %575 = vector.shape_cast %574 : vector<1x256xi1> to vector<1x256xi1>
    %576 = vector.broadcast %575 : vector<1x256xi1> to vector<8x256xi1>
    %577 = vector.broadcast %cst_266 : f32 to vector<8x256xf32>
    %578 = arith.select %576, %555, %577 : vector<8x256xi1>, vector<8x256xf32>
    %c0_267 = arith.constant 0 : index
    %c64 = arith.constant 64 : index
    %579 = vector.load %arg15[%c0_267, %c64] : memref<8x324xf32, #tpu.memory_space<vmem>>, vector<8x256xf32>
    %c2_i32_268 = arith.constant 2 : i32
    %580 = vector.broadcast %c2_i32_268 : i32 to vector<1x256xi32>
    %581 = arith.addi %0, %580 : vector<1x256xi32>
    %c0_i32_269 = arith.constant 0 : i32
    %582 = vector.broadcast %c0_i32_269 : i32 to vector<1x256xi32>
    %583 = arith.cmpi sge, %581, %582 : vector<1x256xi32>
    %c2_i32_270 = arith.constant 2 : i32
    %584 = vector.broadcast %c2_i32_270 : i32 to vector<1x256xi32>
    %585 = arith.addi %0, %584 : vector<1x256xi32>
    %c16_i32_271 = arith.constant 16 : i32
    %586 = vector.broadcast %c16_i32_271 : i32 to vector<1x256xi32>
    %587 = arith.cmpi slt, %585, %586 : vector<1x256xi32>
    %588 = arith.andi %583, %587 : vector<1x256xi1>
    %c-2_i32_272 = arith.constant -2 : i32
    %589 = vector.broadcast %c-2_i32_272 : i32 to vector<1x256xi32>
    %590 = arith.addi %1, %589 : vector<1x256xi32>
    %c0_i32_273 = arith.constant 0 : i32
    %591 = vector.broadcast %c0_i32_273 : i32 to vector<1x256xi32>
    %592 = arith.cmpi sge, %590, %591 : vector<1x256xi32>
    %593 = arith.andi %588, %592 : vector<1x256xi1>
    %c-2_i32_274 = arith.constant -2 : i32
    %594 = vector.broadcast %c-2_i32_274 : i32 to vector<1x256xi32>
    %595 = arith.addi %1, %594 : vector<1x256xi32>
    %c16_i32_275 = arith.constant 16 : i32
    %596 = vector.broadcast %c16_i32_275 : i32 to vector<1x256xi32>
    %597 = arith.cmpi slt, %595, %596 : vector<1x256xi32>
    %598 = arith.andi %593, %597 : vector<1x256xi1>
    %cst_276 = arith.constant 0.000000e+00 : f32
    %599 = vector.shape_cast %598 : vector<1x256xi1> to vector<1x256xi1>
    %600 = vector.broadcast %599 : vector<1x256xi1> to vector<8x256xi1>
    %601 = vector.broadcast %cst_276 : f32 to vector<8x256xf32>
    %602 = arith.select %600, %579, %601 : vector<8x256xi1>, vector<8x256xf32>
    %c0_277 = arith.constant 0 : index
    %c65 = arith.constant 65 : index
    %603 = vector.load %arg15[%c0_277, %c65] : memref<8x324xf32, #tpu.memory_space<vmem>>, vector<8x256xf32>
    %c2_i32_278 = arith.constant 2 : i32
    %604 = vector.broadcast %c2_i32_278 : i32 to vector<1x256xi32>
    %605 = arith.addi %0, %604 : vector<1x256xi32>
    %c0_i32_279 = arith.constant 0 : i32
    %606 = vector.broadcast %c0_i32_279 : i32 to vector<1x256xi32>
    %607 = arith.cmpi sge, %605, %606 : vector<1x256xi32>
    %c2_i32_280 = arith.constant 2 : i32
    %608 = vector.broadcast %c2_i32_280 : i32 to vector<1x256xi32>
    %609 = arith.addi %0, %608 : vector<1x256xi32>
    %c16_i32_281 = arith.constant 16 : i32
    %610 = vector.broadcast %c16_i32_281 : i32 to vector<1x256xi32>
    %611 = arith.cmpi slt, %609, %610 : vector<1x256xi32>
    %612 = arith.andi %607, %611 : vector<1x256xi1>
    %c-1_i32_282 = arith.constant -1 : i32
    %613 = vector.broadcast %c-1_i32_282 : i32 to vector<1x256xi32>
    %614 = arith.addi %1, %613 : vector<1x256xi32>
    %c0_i32_283 = arith.constant 0 : i32
    %615 = vector.broadcast %c0_i32_283 : i32 to vector<1x256xi32>
    %616 = arith.cmpi sge, %614, %615 : vector<1x256xi32>
    %617 = arith.andi %612, %616 : vector<1x256xi1>
    %c-1_i32_284 = arith.constant -1 : i32
    %618 = vector.broadcast %c-1_i32_284 : i32 to vector<1x256xi32>
    %619 = arith.addi %1, %618 : vector<1x256xi32>
    %c16_i32_285 = arith.constant 16 : i32
    %620 = vector.broadcast %c16_i32_285 : i32 to vector<1x256xi32>
    %621 = arith.cmpi slt, %619, %620 : vector<1x256xi32>
    %622 = arith.andi %617, %621 : vector<1x256xi1>
    %cst_286 = arith.constant 0.000000e+00 : f32
    %623 = vector.shape_cast %622 : vector<1x256xi1> to vector<1x256xi1>
    %624 = vector.broadcast %623 : vector<1x256xi1> to vector<8x256xi1>
    %625 = vector.broadcast %cst_286 : f32 to vector<8x256xf32>
    %626 = arith.select %624, %603, %625 : vector<8x256xi1>, vector<8x256xf32>
    %c0_287 = arith.constant 0 : index
    %c66 = arith.constant 66 : index
    %627 = vector.load %arg15[%c0_287, %c66] : memref<8x324xf32, #tpu.memory_space<vmem>>, vector<8x256xf32>
    %c2_i32_288 = arith.constant 2 : i32
    %628 = vector.broadcast %c2_i32_288 : i32 to vector<1x256xi32>
    %629 = arith.addi %0, %628 : vector<1x256xi32>
    %c0_i32_289 = arith.constant 0 : i32
    %630 = vector.broadcast %c0_i32_289 : i32 to vector<1x256xi32>
    %631 = arith.cmpi sge, %629, %630 : vector<1x256xi32>
    %c2_i32_290 = arith.constant 2 : i32
    %632 = vector.broadcast %c2_i32_290 : i32 to vector<1x256xi32>
    %633 = arith.addi %0, %632 : vector<1x256xi32>
    %c16_i32_291 = arith.constant 16 : i32
    %634 = vector.broadcast %c16_i32_291 : i32 to vector<1x256xi32>
    %635 = arith.cmpi slt, %633, %634 : vector<1x256xi32>
    %636 = arith.andi %631, %635 : vector<1x256xi1>
    %c0_i32_292 = arith.constant 0 : i32
    %637 = vector.broadcast %c0_i32_292 : i32 to vector<1x256xi32>
    %638 = arith.addi %1, %637 : vector<1x256xi32>
    %c0_i32_293 = arith.constant 0 : i32
    %639 = vector.broadcast %c0_i32_293 : i32 to vector<1x256xi32>
    %640 = arith.cmpi sge, %638, %639 : vector<1x256xi32>
    %641 = arith.andi %636, %640 : vector<1x256xi1>
    %c0_i32_294 = arith.constant 0 : i32
    %642 = vector.broadcast %c0_i32_294 : i32 to vector<1x256xi32>
    %643 = arith.addi %1, %642 : vector<1x256xi32>
    %c16_i32_295 = arith.constant 16 : i32
    %644 = vector.broadcast %c16_i32_295 : i32 to vector<1x256xi32>
    %645 = arith.cmpi slt, %643, %644 : vector<1x256xi32>
    %646 = arith.andi %641, %645 : vector<1x256xi1>
    %cst_296 = arith.constant 0.000000e+00 : f32
    %647 = vector.shape_cast %646 : vector<1x256xi1> to vector<1x256xi1>
    %648 = vector.broadcast %647 : vector<1x256xi1> to vector<8x256xi1>
    %649 = vector.broadcast %cst_296 : f32 to vector<8x256xf32>
    %650 = arith.select %648, %627, %649 : vector<8x256xi1>, vector<8x256xf32>
    %c0_297 = arith.constant 0 : index
    %c67 = arith.constant 67 : index
    %651 = vector.load %arg15[%c0_297, %c67] : memref<8x324xf32, #tpu.memory_space<vmem>>, vector<8x256xf32>
    %c2_i32_298 = arith.constant 2 : i32
    %652 = vector.broadcast %c2_i32_298 : i32 to vector<1x256xi32>
    %653 = arith.addi %0, %652 : vector<1x256xi32>
    %c0_i32_299 = arith.constant 0 : i32
    %654 = vector.broadcast %c0_i32_299 : i32 to vector<1x256xi32>
    %655 = arith.cmpi sge, %653, %654 : vector<1x256xi32>
    %c2_i32_300 = arith.constant 2 : i32
    %656 = vector.broadcast %c2_i32_300 : i32 to vector<1x256xi32>
    %657 = arith.addi %0, %656 : vector<1x256xi32>
    %c16_i32_301 = arith.constant 16 : i32
    %658 = vector.broadcast %c16_i32_301 : i32 to vector<1x256xi32>
    %659 = arith.cmpi slt, %657, %658 : vector<1x256xi32>
    %660 = arith.andi %655, %659 : vector<1x256xi1>
    %c1_i32_302 = arith.constant 1 : i32
    %661 = vector.broadcast %c1_i32_302 : i32 to vector<1x256xi32>
    %662 = arith.addi %1, %661 : vector<1x256xi32>
    %c0_i32_303 = arith.constant 0 : i32
    %663 = vector.broadcast %c0_i32_303 : i32 to vector<1x256xi32>
    %664 = arith.cmpi sge, %662, %663 : vector<1x256xi32>
    %665 = arith.andi %660, %664 : vector<1x256xi1>
    %c1_i32_304 = arith.constant 1 : i32
    %666 = vector.broadcast %c1_i32_304 : i32 to vector<1x256xi32>
    %667 = arith.addi %1, %666 : vector<1x256xi32>
    %c16_i32_305 = arith.constant 16 : i32
    %668 = vector.broadcast %c16_i32_305 : i32 to vector<1x256xi32>
    %669 = arith.cmpi slt, %667, %668 : vector<1x256xi32>
    %670 = arith.andi %665, %669 : vector<1x256xi1>
    %cst_306 = arith.constant 0.000000e+00 : f32
    %671 = vector.shape_cast %670 : vector<1x256xi1> to vector<1x256xi1>
    %672 = vector.broadcast %671 : vector<1x256xi1> to vector<8x256xi1>
    %673 = vector.broadcast %cst_306 : f32 to vector<8x256xf32>
    %674 = arith.select %672, %651, %673 : vector<8x256xi1>, vector<8x256xf32>
    %c0_307 = arith.constant 0 : index
    %c68 = arith.constant 68 : index
    %675 = vector.load %arg15[%c0_307, %c68] : memref<8x324xf32, #tpu.memory_space<vmem>>, vector<8x256xf32>
    %c2_i32_308 = arith.constant 2 : i32
    %676 = vector.broadcast %c2_i32_308 : i32 to vector<1x256xi32>
    %677 = arith.addi %0, %676 : vector<1x256xi32>
    %c0_i32_309 = arith.constant 0 : i32
    %678 = vector.broadcast %c0_i32_309 : i32 to vector<1x256xi32>
    %679 = arith.cmpi sge, %677, %678 : vector<1x256xi32>
    %c2_i32_310 = arith.constant 2 : i32
    %680 = vector.broadcast %c2_i32_310 : i32 to vector<1x256xi32>
    %681 = arith.addi %0, %680 : vector<1x256xi32>
    %c16_i32_311 = arith.constant 16 : i32
    %682 = vector.broadcast %c16_i32_311 : i32 to vector<1x256xi32>
    %683 = arith.cmpi slt, %681, %682 : vector<1x256xi32>
    %684 = arith.andi %679, %683 : vector<1x256xi1>
    %c2_i32_312 = arith.constant 2 : i32
    %685 = vector.broadcast %c2_i32_312 : i32 to vector<1x256xi32>
    %686 = arith.addi %1, %685 : vector<1x256xi32>
    %c0_i32_313 = arith.constant 0 : i32
    %687 = vector.broadcast %c0_i32_313 : i32 to vector<1x256xi32>
    %688 = arith.cmpi sge, %686, %687 : vector<1x256xi32>
    %689 = arith.andi %684, %688 : vector<1x256xi1>
    %c2_i32_314 = arith.constant 2 : i32
    %690 = vector.broadcast %c2_i32_314 : i32 to vector<1x256xi32>
    %691 = arith.addi %1, %690 : vector<1x256xi32>
    %c16_i32_315 = arith.constant 16 : i32
    %692 = vector.broadcast %c16_i32_315 : i32 to vector<1x256xi32>
    %693 = arith.cmpi slt, %691, %692 : vector<1x256xi32>
    %694 = arith.andi %689, %693 : vector<1x256xi1>
    %cst_316 = arith.constant 0.000000e+00 : f32
    %695 = vector.shape_cast %694 : vector<1x256xi1> to vector<1x256xi1>
    %696 = vector.broadcast %695 : vector<1x256xi1> to vector<8x256xi1>
    %697 = vector.broadcast %cst_316 : f32 to vector<8x256xf32>
    %698 = arith.select %696, %675, %697 : vector<8x256xi1>, vector<8x256xf32>
    %699 = tpu.concatenate %297, %321, %345, %369, %393, %417, %422, %427, %432, %456, %480, %485, %486, %491, %515, %539 in 0 : vector<8x256xf32>, vector<8x256xf32>, vector<8x256xf32>, vector<8x256xf32>, vector<8x256xf32>, vector<8x256xf32>, vector<8x256xf32>, vector<8x256xf32>, vector<8x256xf32>, vector<8x256xf32>, vector<8x256xf32>, vector<8x256xf32>, vector<8x256xf32>, vector<8x256xf32>, vector<8x256xf32>, vector<8x256xf32> -> vector<128x256xf32>
    %700 = tpu.concatenate %544, %549, %554, %578, %602, %626, %650, %674, %698 in 0 : vector<8x256xf32>, vector<8x256xf32>, vector<8x256xf32>, vector<8x256xf32>, vector<8x256xf32>, vector<8x256xf32>, vector<8x256xf32>, vector<8x256xf32>, vector<8x256xf32> -> vector<72x256xf32>
    %701 = tpu.concatenate %699, %700 in 0 : vector<128x256xf32>, vector<72x256xf32> -> vector<200x256xf32>
    %c0_317 = arith.constant 0 : index
    %c0_318 = arith.constant 0 : index
    %702 = vector.load %arg10[%c0_317, %c0_318] : memref<16x200xf32, #tpu.memory_space<vmem>>, vector<16x200xf32>
    %cst_319 = arith.constant dense<0.000000e+00> : vector<16x256xf32>
    %703 = tpu.matmul %702, %701, %cst_319 {dimension_numbers = #tpu.dot_dimension_numbers<[1], [0], [0], [1], [0, 0, 1, 1], [], []>} : vector<16x200xf32>, vector<200x256xf32>, vector<16x256xf32> -> vector<16x256xf32>
    %c0_320 = arith.constant 0 : index
    %c0_321 = arith.constant 0 : index
    %704 = vector.load %arg11[%c0_320, %c0_321] : memref<16x1xf32, #tpu.memory_space<vmem>>, vector<16x1xf32>
    %705 = vector.broadcast %704 : vector<16x1xf32> to vector<16x256xf32>
    %706 = arith.addf %703, %705 : vector<16x256xf32>
    %cst_322 = arith.constant 0.000000e+00 : f32
    %707 = vector.broadcast %cst_322 : f32 to vector<16x256xf32>
    %708 = arith.maximumf %706, %707 : vector<16x256xf32>
    %709 = tpu.concatenate %11, %272, %708, %222 in 0 : vector<16x256xf32>, vector<16x256xf32>, vector<16x256xf32>, vector<16x256xf32> -> vector<64x256xf32>
    %c0_323 = arith.constant 0 : index
    %c0_324 = arith.constant 0 : index
    %c0_325 = arith.constant 0 : index
    %710 = vector.load %arg12[%c0_323, %c0_324, %c0_325] : memref<1x64x256xf32, #tpu.memory_space<vmem>>, vector<1x64x256xf32>
    %711 = vector.shape_cast %710 : vector<1x64x256xf32> to vector<64x256xf32>
    %712 = vector.shape_cast %709 : vector<64x256xf32> to vector<1x64x256xf32>
    tpu.vector_store %arg12[%c0_323, %c0_324, %c0_325], %712 {strides = array<i32>} : memref<1x64x256xf32, #tpu.memory_space<vmem>>, vector<1x64x256xf32>,
    return
  }
  func.func @transform_0(%arg0: i32) -> (i32, i32, i32) {
    %c0_i32 = arith.constant 0 : i32
    %c0_i32_0 = arith.constant 0 : i32
    %c0_i32_1 = arith.constant 0 : i32
    return %arg0, %c0_i32, %c0_i32_0 : i32, i32, i32
  }
  func.func @transform_1(%arg0: i32) -> (i32, i32) {
    %c0_i32 = arith.constant 0 : i32
    %c0_i32_0 = arith.constant 0 : i32
    %c0_i32_1 = arith.constant 0 : i32
    return %c0_i32, %c0_i32_0 : i32, i32
  }
  func.func @transform_2(%arg0: i32) -> (i32, i32) {
    %c0_i32 = arith.constant 0 : i32
    %c0_i32_0 = arith.constant 0 : i32
    %c0_i32_1 = arith.constant 0 : i32
    return %c0_i32, %c0_i32_0 : i32, i32
  }
  func.func @transform_3(%arg0: i32) -> (i32, i32) {
    %c0_i32 = arith.constant 0 : i32
    %c0_i32_0 = arith.constant 0 : i32
    %c0_i32_1 = arith.constant 0 : i32
    return %c0_i32, %c0_i32_0 : i32, i32
  }
  func.func @transform_4(%arg0: i32) -> (i32, i32) {
    %c0_i32 = arith.constant 0 : i32
    %c0_i32_0 = arith.constant 0 : i32
    %c0_i32_1 = arith.constant 0 : i32
    return %c0_i32, %c0_i32_0 : i32, i32
  }
  func.func @transform_5(%arg0: i32) -> (i32, i32) {
    %c0_i32 = arith.constant 0 : i32
    %c0_i32_0 = arith.constant 0 : i32
    %c0_i32_1 = arith.constant 0 : i32
    return %c0_i32, %c0_i32_0 : i32, i32
  }
  func.func @transform_6(%arg0: i32) -> (i32, i32) {
    %c0_i32 = arith.constant 0 : i32
    %c0_i32_0 = arith.constant 0 : i32
    %c0_i32_1 = arith.constant 0 : i32
    return %c0_i32, %c0_i32_0 : i32, i32
  }
  func.func @transform_7(%arg0: i32) -> (i32, i32) {
    %c0_i32 = arith.constant 0 : i32
    %c0_i32_0 = arith.constant 0 : i32
    %c0_i32_1 = arith.constant 0 : i32
    return %c0_i32, %c0_i32_0 : i32, i32
  }
  func.func @transform_8(%arg0: i32) -> (i32, i32) {
    %c0_i32 = arith.constant 0 : i32
    %c0_i32_0 = arith.constant 0 : i32
    %c0_i32_1 = arith.constant 0 : i32
    return %c0_i32, %c0_i32_0 : i32, i32
  }
  func.func @transform_9(%arg0: i32) -> (i32, i32) {
    %c0_i32 = arith.constant 0 : i32
    %c0_i32_0 = arith.constant 0 : i32
    %c0_i32_1 = arith.constant 0 : i32
    return %c0_i32, %c0_i32_0 : i32, i32
  }
  func.func @transform_10(%arg0: i32) -> (i32, i32) {
    %c0_i32 = arith.constant 0 : i32
    %c0_i32_0 = arith.constant 0 : i32
    %c0_i32_1 = arith.constant 0 : i32
    return %c0_i32, %c0_i32_0 : i32, i32
  }
  func.func @transform_11(%arg0: i32) -> (i32, i32, i32) {
    %c0_i32 = arith.constant 0 : i32
    %c0_i32_0 = arith.constant 0 : i32
    %c0_i32_1 = arith.constant 0 : i32
    return %arg0, %c0_i32, %c0_i32_0 : i32, i32, i32
  }
}

</mosaic_0001>

<bundles_post_ra>
// kernel: inception_forward_pallas.1
= control target key start
LH: loop header
LB: loop body
LE: loop exit
PB: predicated region body
PF: predicated region fallthrough
CT: control target
= control target key end

     0   :  { %s2105_s17 = smov 0   ;;  %s3517_s0 = inlined_call_operand.vmem [shape: f32[2,16,256], index: 0, kind: input, shape index: {}]   ;;  %s3518_s1 = inlined_call_operand.vmem [shape: s32[1,256], index: 1, kind: input, shape index: {}]   ;;  %s3519_s2 = inlined_call_operand.vmem [shape: s32[1,256], index: 2, kind: input, shape index: {}]   ;;  %s3520_s3 = inlined_call_operand.vmem [shape: f32[32,16], index: 3, kind: input, shape index: {}]   ;;  %s3521_s4 = inlined_call_operand.vmem [shape: f32[32,1], index: 4, kind: input, shape index: {}]   ;;  %s3522_s5 = inlined_call_operand.vmem [shape: f32[16,16], index: 5, kind: input, shape index: {}]   ;;  %s3523_s6 = inlined_call_operand.vmem [shape: f32[16,1], index: 6, kind: input, shape index: {}]   ;;  %s3524_s7 = inlined_call_operand.vmem [shape: f32[16,72], index: 7, kind: input, shape index: {}]   ;;  %s3525_s8 = inlined_call_operand.vmem [shape: f32[16,1], index: 8, kind: input, shape index: {}]   ;;  %s3526_s9 = inlined_call_operand.vmem [shape: f32[16,200], index: 9, kind: input, shape index: {}]   ;;  %s3527_s10 = inlined_call_operand.vmem [shape: f32[16,1], index: 10, kind: input, shape index: {}]   ;;  %s3528_s11 = inlined_call_operand.vmem [shape: f32[2,64,256], index: 11, kind: output, shape index: {}]  }
   0x1 LB: > { %s1743_s18 = sadd.s32 4294967295, %s2016_s17   ;;  %p1747_p0 = scmp.ge.s32.totalorder %s2016_s17, 1  ;;  %s2016_s17 = sphi %s2105_s17, %s21_s17  }
   0x2   : > { %p337_p1 = scmp.lt.s32.totalorder %s2016_s17, 3 }
   0x4   : > { %p338_p2 = pnand %p1747_p0, %p337_p1 }
   0x6   : > { %341 = sbr.rel (%p338_p2) target bundleno = 847 (0x34f), region = 64 }
   0xb   : > { %v399_v0 = vld [vmem:[%s3521_s4 + $0x10] sm:$0xff]  ;;  %v397_v1 = vld [vmem:[%s3521_s4] sm:$0xff]  ;;  %p377_p3 = scmp.lt.s32.totalorder %s1743_s18, 1  ;;  %v3572_v2 = vmov 0   ;;  %v400_v7 = vld [vmem:[%s3521_s4 + $0x18] sm:$0xff]  ;;  %s2019_s12 = smov 17  }
   0xc   : > { %1876 = vset.pattern.permute.xlu1 %v3572_v2  ;;  %1875 = vset.pattern.permute.xlu0 %v3572_v2  ;;  %v398_v8 = vld [vmem:[%s3521_s4 + $0x8] sm:$0xff]  ;;  %v393_v9 = vld [vmem:[%s3520_s3] sm:$0xff]  ;;  %vm3529_vm0 = vcmask 130048   ;;  %v395_v13 = vld [vmem:[%s3520_s3 + $0x10] sm:$0xff]  ;;  %vm3530_vm1 = vcmask 1047688   ;;  %vm3531_vm2 = vcmask 138240  }
   0xd   : > { %413 = vperm.xlu1 %1876, %v399_v0   ;;  %403 = vperm.xlu0 %1875, %v397_v1   ;;  %s3837_s18 = smov (!%p377_p3, %s1743_s18), 1  ;;  %v394_v10 = vld [vmem:[%s3520_s3 + $0x8] sm:$0xff]  ;;  %v1034_v11 = vld [vmem:[%s3525_s8] sm:$0xff]  ;;  %v396_v14 = vld [vmem:[%s3520_s3 + $0x18] sm:$0xff]  ;;  %s2020_s13 = smov 127   ;;  %v3599_v54 = vmov 0 }
   0xe   : > { %1877 = vset.pattern.permute.xlu2 %v3572_v2  ;;  %s1838_s23 = sshll.u32 %s3837_s18, 5  ;;  %v850_v12 = vld [vmem:[%s3523_s6 + $0x8] sm:$0xff]  ;;  %v849_v15 = vld [vmem:[%s3523_s6] sm:$0xff]  ;;  %s2021_s14 = smov 126   ;;  %v3602_v1 = vmov 0 }
   0xf   : > { %s381_s26 = scalar_lea.vmem %s3517_s0, %s1838_s23  ;;  %v1035_v16 = vld [vmem:[%s3525_s8 + $0x8] sm:$0xff]  ;;  %s2022_s15 = smov 112   ;;  %v2239_v49 = vld [vmem:[%s3518_s1] sm:$0x3] }
  0x10   : > { %v391_v3 = vld [vmem:[%s381_s26 + $0x10] sm:$0xff]  ;;  %v392_v4 = vld [vmem:[%s381_s26 + $0x18] sm:$0xff]  ;;  %v389_v5 = vld [vmem:[%s381_s26] sm:$0xff]  ;;  %s2023_s16 = smov 111   ;;  %s1839_s19 = sshll.u32 %s3837_s18, 7  ;;  %v532_v51 = vadd.s32 4294967295, %v2239_v49 }
  0x11   : > { %448 = vmatpush.msra.mxu0 %v391_v3  ;;  %477 = vmatpush.msra.mxu1 %v392_v4  ;;  %v390_v6 = vld [vmem:[%s381_s26 + $0x8] sm:$0xff]  ;;  %s2196_s22 = scalar_lea.vmem %s3528_s11, %s1839_s19  ;;  %s2024_s18 = smov 110   ;;  %v2247_v52 = vld [vmem:[%s3519_s2] sm:$0x3] }
  0x12   : > { %504 = vrot.lane.b32.xlu2 %v389_v5, %s2019_s12  ;;  %s2025_s23 = smov 96   ;;  %s2026_s24 = smov 95   ;;  %vm533_vm3 = vcmp.ge.s32.totalorder %v532_v51, 0  ;;  %vm534_vm4 = vcmp.lt.s32.totalorder %v532_v51, 16  ;;  %v2254_v53 = vadd.s32 4294967295, %v2247_v52  ;;  %vm3535_vm5 = vcmp.ge.s32.totalorder %v2247_v52, 0 }
  0x13   : > { %449 = vmatpush.msra.mxu0 %v389_v5  ;;  %478 = vmatpush.msra.mxu1 %v390_v6  ;;  %s2027_s25 = smov 94   ;;  %vm2257_vm6 = vmand %vm533_vm3, %vm534_vm4  ;;  %vm3534_vm8 = vcmp.lt.s32.totalorder %v2247_v52, 16  ;;  %v2268_v56 = vadd.s32 1, %v2247_v52  ;;  %vm635_vm4 = vcmp.ge.s32.totalorder %v2239_v49, 0  ;;  %v3604_v5 = vmov 0  ;;  %s2028_s30 = smov 34  }
  0x14   : > { %1752 = vmatmul.msk.f32.vlgmr.msra.gmra.mxu0 %vm3529_vm0, %v393_v9  ;;  %1756 = vmatmul.msk.f32.vlgmr.msra.gmra.mxu1 %vm3529_vm0, %v393_v9  ;;  %v3600_v54 = vsel %vm2257_vm6, 4294967295, %v3599_v54  ;;  %vm553_vm7 = vmand %vm2257_vm6, %vm3535_vm5  ;;  %vm3538_vm9 = vcmp.ge.s32.totalorder %v2254_v53, 0  ;;  %vm3537_vm12 = vcmp.lt.s32.totalorder %v2254_v53, 16  ;;  %vm3548_vm5 = vcmask 908288   ;;  %s2029_s26 = smov 80   ;;  %s2030_s27 = smov 92  }
  0x15   : > { %418 = vperm.xlu1 %1876, %v400_v7   ;;  %408 = vperm.xlu0 %1875, %v398_v8   ;;  %vm555_vm10 = vmand %vm553_vm7, %vm3534_vm8  ;;  %vm3543_vm13 = vcmp.ge.s32.totalorder %v2268_v56, 0  ;;  %vm3539_vm3 = vcmp.lt.s32.totalorder %v2268_v56, 16  ;;  %vm636_vm7 = vcmp.lt.s32.totalorder %v2239_v49, 16  ;;  %v3606_v8 = vmov 0  ;;  %s2031_s28 = smov 93   ;;  %s2032_s29 = smov 108  }
  0x16   : > { %vm538_vm11 = vmand %vm2257_vm6, %vm3538_vm9  ;;  %v2285_v58 = vsel %vm555_vm10, 1, %v3572_v2  ;;  %s2035_s19 = smov 61   ;;  %s2036_s20 = smov 60  }
  0x17   : > { %vm540_vm14 = vmand %vm538_vm11, %vm3537_vm12  ;;  %v557_v59 = vperm.slane %v2285_v58, 0  ;;  %vm3533_vm11 = vcmask 1039360   ;;  %s2037_s21 = smov 124  }
  0x18   : > { %vm598_vm15 = vmand %vm2257_vm6, %vm3543_vm13  ;;  %v2296_v60 = vsel %vm540_vm14, 1, %v3572_v2 }
  0x19   : > { %v542_v62 = vperm.slane %v2296_v60, 0  ;;  %vm600_vm10 = vmand %vm598_vm15, %vm3539_vm3  ;;  %vm2310_vm14 = vcmp.eq.s32.totalorder %v557_v59, 1 }
  0x1a   : > { %506 = vrot.lane.b32.xlu2 %v390_v6, %s2019_s12  ;;  %v3603_v1 = vsel %vm2310_vm14, 4294967295, %v3602_v1  ;;  %v2322_v7 = vsel %vm600_vm10, 1, %v3572_v2  ;;  %vm3532_vm10 = vcmask 1031168  }
  0x1b   : > { %vm2324_vm15 = vcmp.eq.s32.totalorder %v542_v62, 1 }
  0x1c   : > { %1753 = vmatmul.msk.f32.gmra.mxu0 %vm3529_vm0, %v394_v10  ;;  %1757 = vmatmul.msk.f32.gmra.mxu1 %vm3529_vm0, %v394_v10  ;;  %v3607_v8 = vsel %vm2324_vm15, 4294967295, %v3606_v8 }
  0x1d   : > { %510 = vrot.lane.b32.xlu1 %v392_v4, %s2019_s12  ;;  %508 = vrot.lane.b32.xlu0 %v391_v3, %s2019_s12 }
  0x22   : > { %853 = vperm.xlu2 %1877, %v849_v15  }
  0x24   : > { %1754 = vmatmul.msk.f32.gmra.mxu0 %vm3529_vm0, %v395_v13  ;;  %1758 = vmatmul.msk.f32.gmra.mxu1 %vm3529_vm0, %v395_v13 }
  0x25   : > { %1038 = vperm.xlu1 %1876, %v1034_v11   ;;  %858 = vperm.xlu0 %1875, %v850_v12  }
  0x2a   : > { %1043 = vperm.xlu2 %1877, %v1035_v16  }
  0x2c   : > { %1755 = vmatmul.msk.f32.gmra.mxu0 %vm3529_vm0, %v396_v14  ;;  %1759 = vmatmul.msk.f32.gmra.mxu1 %vm3529_vm0, %v396_v14  ;;  %vm2316_vm0 = vmand %vm635_vm4, %vm636_vm7  ;;  %v602_v14 = vperm.slane %v2322_v7, 0 }
  0x2d   : > { %v3605_v5 = vsel %vm2316_vm0, 4294967295, %v3604_v5  ;;  %vm638_vm4 = vmand %vm2316_vm0, %vm3538_vm9 }
  0x2e   : > { %vm639_vm7 = vmand %vm638_vm4, %vm3537_vm12  ;;  %vm3536_vm4 = vcmask 916480  }
  0x6c   : > { %v505_v17 = vpop.permute.xlu2 %504 }
  0x6d   : > { %522 = vst.msk [vmem:[#allocation2] sm:$0xff] %vm3530_vm1, %v505_v17 }
  0x74   : > { %v507_v18 = vpop.permute.xlu2 %506  ;;  %v2171_v19 = vld [vmem:[#allocation2] sm:$0xff] }
  0x75   : > { %v2174_v20 = vsel %vm3531_vm2, %v505_v17, %v507_v18  ;;  %524 = vst.msk [vmem:[#allocation2 + $0x10] sm:$0xff] %vm3531_vm2, %v507_v18  ;;  %v546_v10 = vsel %vm2324_vm15, %v2171_v19, -3e+38 }
  0x76   : > { %v1918_v21 = vpack.i.bf16 %v2174_v20, %v2171_v19  ;;  %v3608_v19 = vmov 0 }
  0x78   : > { %1919 = vrot.lane.b32.xlu2 %v1918_v21, %s2020_s13 }
  0x7c   : > { %v550_v35 = vld [vmem:[#allocation2 + $0x10] sm:$0xff]  ;;  %v2241_v50 = vpop.permute.xlu2 %853 }
  0x7f   : > { %v2180_v22 = vpop.permute.xlu1 %413  ;;  %v404_v23 = vpop.permute.xlu0 %403 }
  0x80   : > { %1929 = vrot.lane.b32.xlu2 %v1918_v21, %s2021_s14 }
  0x84   : > { %v2270_v57 = vpop.permute.xlu2 %1043 }
  0x85   : > { %3601 = vst [vmem:[#allocation5_spill] sm:$0xff] %v2270_v57 }
  0x87   : > { %v2183_v24 = vpop.permute.xlu1 %418  ;;  %v409_v25 = vpop.permute.xlu0 %408 }
  0x88   : > { %1939 = vrot.lane.b32.xlu2 %v1918_v21, %s2022_s15 }
  0x8f   : > { %v511_v26 = vpop.permute.xlu1 %510  ;;  %v509_v27 = vpop.permute.xlu0 %508 }
  0x90   : > { %527 = vst.msk [vmem:[#allocation2 + $0x28] sm:$0xff] %vm3531_vm2, %v511_v26  ;;  %v2188_v28 = vsel %vm3531_vm2, %v509_v27, %v511_v26  ;;  %1949 = vrot.lane.b32.xlu2 %v1918_v21, %s2023_s16 }
  0x91   : > { %525 = vst.msk [vmem:[#allocation2 + $0x18] sm:$0xff] %vm3530_vm1, %v509_v27  ;;  %v451_v29 = vpop.f32.mrf.mxu0  ;;  %v480_v30 = vpop.f32.mrf.mxu1  ;;  %vm2347_vm1 = vcmp.eq.s32.totalorder %v602_v14, 1 }
  0x92   : > { %v452_v31 = vadd.f32 %v451_v29, %v404_v23  ;;  %v481_v32 = vadd.f32 %v480_v30, %v404_v23  ;;  %v3609_v19 = vsel %vm2347_vm1, 4294967295, %v3608_v19  ;;  %v2354_v23 = vsel %vm639_vm7, 1, %v3572_v2  ;;  %vm699_vm7 = vmand %vm2316_vm0, %vm3543_vm13 }
  0x93   : > { %v641_v29 = vperm.slane %v2354_v23, 0  ;;  %vm700_vm8 = vmand %vm699_vm7, %vm3539_vm3 }
  0x94   : > { %v492_v33 = vmax.f32 %v452_v31, 0.0  ;;  %v493_v34 = vmax.f32 %v481_v32, 0.0  ;;  %v3610_v31 = vmov 0 }
  0x95   : > { %vm2364_vm2 = vcmp.eq.s32.totalorder %v641_v29, 1 }
  0x96   : > { %1672 = vst [vmem:[%s2196_s22] sm:$0xff] %v492_v33  ;;  %v3611_v31 = vsel %vm2364_vm2, 4294967295, %v3610_v31 }
  0x97   : > { %v551_v36 = vld [vmem:[#allocation2 + $0x28] sm:$0xff]  ;;  %1673 = vst [vmem:[%s2196_s22 + $0x8] sm:$0xff] %v493_v34  ;;  %v735_v34 = vadd.s32 1, %v2239_v49 }
  0x98   : > { %v2199_v37 = vld [vmem:[#allocation2 + $0x18] sm:$0xff]  ;;  %v2202_v38 = vpack.i.bf16 %v551_v36, %v2188_v28  ;;  %1959 = vrot.lane.b32.xlu2 %v1918_v21, %s2024_s18 }
  0x99   : > { %v2206_v39 = vpack.i.bf16 %v2199_v37, %v550_v35  ;;  %v483_v40 = vpop.f32.mrf.mxu1  ;;  %v454_v41 = vpop.f32.mrf.mxu0 }
  0x9a   : > { %1924 = vrot.lane.b32.xlu1 %v2202_v38, %s2020_s13  ;;  %v484_v42 = vadd.f32 %v483_v40, %v409_v25  ;;  %v455_v43 = vadd.f32 %v454_v41, %v409_v25 }
  0x9b   : > { %1879 = vrot.lane.b32.xlu0 %v2206_v39, %s2020_s13 }
  0x9c   : > { %v495_v44 = vmax.f32 %v484_v42, 0.0  ;;  %v494_v45 = vmax.f32 %v455_v43, 0.0  ;;  %v3612_v42 = vmov 0  ;;  %v2391_v43 = vsel %vm700_vm8, 1, %v3572_v2 }
  0x9e   : > { %1675 = vst [vmem:[%s2196_s22 + $0x18] sm:$0xff] %v495_v44 }
  0x9f   : > { %1674 = vst [vmem:[%s2196_s22 + $0x10] sm:$0xff] %v494_v45 }
  0xa0   : > { %1969 = vrot.lane.b32.xlu2 %v1918_v21, %s2025_s23 }
  0xa1   : > { %v486_v46 = vpop.f32.mrf.mxu1  ;;  %v457_v55 = vpop.f32.mrf.mxu0 }
  0xa2   : > { %1934 = vrot.lane.b32.xlu1 %v2202_v38, %s2021_s14  ;;  %v487_v47 = vadd.f32 %v486_v46, %v2180_v22  ;;  %v458_v0 = vadd.f32 %v457_v55, %v2180_v22  ;;  %v702_v46 = vperm.slane %v2391_v43, 0 }
  0xa3   : > { %1884 = vrot.lane.b32.xlu0 %v2206_v39, %s2021_s14 }
  0xa4   : > { %v497_v48 = vmax.f32 %v487_v47, 0.0  ;;  %v496_v12 = vmax.f32 %v458_v0, 0.0  ;;  %vm2405_vm8 = vcmp.eq.s32.totalorder %v702_v46, 1  ;;  %v3628_v46 = vmov 0 }
  0xa8   : > { %1979 = vrot.lane.b32.xlu2 %v1918_v21, %s2026_s24 }
  0xa9   : > { %v460_v61 = vpop.f32.mrf.mxu0  ;;  %v489_v15 = vpop.f32.mrf.mxu1 }
  0xaa   : > { %1944 = vrot.lane.b32.xlu1 %v2202_v38, %s2022_s15  ;;  %v461_v6 = vadd.f32 %v460_v61, %v2183_v24  ;;  %v490_v18 = vadd.f32 %v489_v15, %v2183_v24 }
  0xab   : > { %1889 = vrot.lane.b32.xlu0 %v2206_v39, %s2022_s15 }
  0xac   : > { %v498_v16 = vmax.f32 %v461_v6, 0.0  ;;  %v499_v27 = vmax.f32 %v490_v18, 0.0  ;;  %v2445_v18 = vpop.permute.xlu1 %1038 }
  0xad   : > { %3622 = vst [vmem:[#allocation8_spill] sm:$0xff] %v2445_v18 }
  0xb0   : > { %1989 = vrot.lane.b32.xlu2 %v1918_v21, %s2027_s25 }
  0xb2   : > { %1954 = vrot.lane.b32.xlu1 %v2202_v38, %s2023_s16 }
  0xb3   : > { %1894 = vrot.lane.b32.xlu0 %v2206_v39, %s2023_s16 }
  0xb8   : > { %921 = vrot.lane.b32.xlu2 %v497_v48, %s2019_s12  ;;  %v3615_v48 = vmov 0 }
  0xb9   : > { %v3616_v48 = vsel %vm2405_vm8, 4294967295, %v3615_v48 }
  0xba   : > { %1964 = vrot.lane.b32.xlu1 %v2202_v38, %s2024_s18 }
  0xbb   : > { %1899 = vrot.lane.b32.xlu0 %v2206_v39, %s2024_s18 }
  0xc2   : > { %1974 = vrot.lane.b32.xlu1 %v2202_v38, %s2025_s23 }
  0xc3   : > { %1904 = vrot.lane.b32.xlu0 %v2206_v39, %s2025_s23 }
  0xca   : > { %1984 = vrot.lane.b32.xlu1 %v2202_v38, %s2026_s24 }
  0xcb   : > { %1909 = vrot.lane.b32.xlu0 %v2206_v39, %s2026_s24 }
  0xd2   : > { %1994 = vrot.lane.b32.xlu1 %v2202_v38, %s2027_s25  ;;  %v2307_v63 = vpop.permute.xlu2 %1919 }
  0xd3   : > { %1914 = vrot.lane.b32.xlu0 %v2206_v39, %s2027_s25  ;;  %v1922_v3 = vunpack.i.h.bf16 %v2307_v63  ;;  %v1921_v4 = vunpack.i.l.bf16 %v2307_v63  ;;  %v3632_v63 = vmov 0 }
  0xd5   : > { %v580_v9 = vsel %vm3533_vm11, %v1921_v4, %v1922_v3  ;;  %vm737_vm11 = vcmp.lt.s32.totalorder %v735_v34, 16 }
  0xd6   : > { %v588_v11 = vsel %vm2310_vm14, %v580_v9, -3e+38 }
  0xd7   : > { %v592_v13 = vmax.f32 %v546_v10, %v588_v11  ;;  %v3619_v10 = vmov 0 }
  0xda   : > { %919 = vrot.lane.b32.xlu1 %v496_v12, %s2019_s12  ;;  %v2344_v17 = vpop.permute.xlu2 %1929  ;;  %s2034_s12 = smov 109  }
  0xdb   : > { %1105 = vrot.lane.b32.xlu0 %v498_v16, %s2028_s30  ;;  %v1932_v21 = vunpack.i.h.bf16 %v2344_v17  ;;  %v1931_v22 = vunpack.i.l.bf16 %v2344_v17  ;;  %v3635_v17 = vmov 0 }
  0xdd   : > { %v619_v25 = vsel %vm3532_vm10, %v1931_v22, %v1932_v21  ;;  %vm736_vm10 = vcmp.ge.s32.totalorder %v735_v34, 0  ;;  %v558_v34 = vperm.slane %v2285_v58, 1 }
  0xde   : > { %v627_v26 = vsel %vm2347_vm1, %v619_v25, -3e+38 }
  0xdf   : > { %v631_v24 = vmax.f32 %v592_v13, %v627_v26  ;;  %v3623_v26 = vmov 0 }
  0xe2   : > { %1107 = vrot.lane.b32.xlu1 %v499_v27, %s2028_s30  ;;  %v2362_v30 = vpop.permute.xlu2 %1939  ;;  %v2453_v27 = vpop.permute.xlu0 %858  ;;  %s2033_s30 = smov 62  }
  0xe3   : > { %v1942_v32 = vunpack.i.h.bf16 %v2362_v30  ;;  %v1941_v33 = vunpack.i.l.bf16 %v2362_v30 }
  0xe5   : > { %v658_v35 = vsel %vm3536_vm4, %v1941_v33, %v1942_v32  ;;  %vm2386_vm4 = vmand %vm736_vm10, %vm737_vm11  ;;  %vm3540_vm10 = vcmask 900096  }
  0xe6   : > { %v666_v36 = vsel %vm2364_vm2, %v658_v35, -3e+38  ;;  %v3613_v42 = vsel %vm2386_vm4, 4294967295, %v3612_v42  ;;  %vm739_vm7 = vmand %vm2386_vm4, %vm3538_vm9  ;;  %vm3618_vm9 = vcmp.lt.s32.totalorder %v2247_v52, 16 }
  0xe7   : > { %v670_v38 = vmax.f32 %v631_v24, %v666_v36  ;;  %3614 = vst [vmem:[#allocation6_spill] sm:$0xff] %v3613_v42  ;;  %vm740_vm11 = vmand %vm739_vm7, %vm3537_vm12  ;;  %vm3617_vm7 = vcmp.ge.s32.totalorder %v2247_v52, 0  ;;  %v543_v36 = vperm.slane %v2296_v60, 1 }
  0xe8   : > { %v2412_v55 = vsel %vm740_vm11, 1, %v3572_v2  ;;  %vm775_vm12 = vmand %vm2386_vm4, %vm3617_vm7  ;;  %vm3542_vm11 = vcmask 785408  }
  0xe9   : > { %v742_v62 = vperm.slane %v2412_v55, 0  ;;  %vm776_vm3 = vmand %vm775_vm12, %vm3618_vm9  ;;  %vm3541_vm9 = vcmask 777216   ;;  %vm2470_vm7 = vcmp.eq.s32.totalorder %v543_v36, 1 }
  0xea   : > { %v2382_v39 = vpop.permute.xlu2 %1949  ;;  %v2435_v11 = vsel %vm776_vm3, 1, %v3572_v2  ;;  %vm2466_vm3 = vcmp.eq.s32.totalorder %v558_v34, 1  ;;  %v3629_v46 = vsel %vm2470_vm7, 4294967295, %v3628_v46  ;;  %v547_v58 = vsel %vm2470_vm7, %v2174_v20, -3e+38 }
  0xeb   : > { %v1952_v40 = vunpack.i.h.bf16 %v2382_v39  ;;  %v1951_v41 = vunpack.i.l.bf16 %v2382_v39  ;;  %v778_v14 = vperm.slane %v2435_v11, 0  ;;  %v3639_v39 = vmov 0 }
  0xed   : > { %v687_v44 = vsel %vm3548_vm5, %v1951_v41, %v1952_v40  ;;  %vm2449_vm12 = vcmp.eq.s32.totalorder %v778_v14, 1 }
  0xee   : > { %v695_v45 = vmax.f32 %v670_v38, %v687_v44  ;;  %v3624_v26 = vsel %vm2449_vm12, 4294967295, %v3623_v26  ;;  %v3626_v44 = vmov 0 }
  0xef   : > { %3625 = vst [vmem:[#allocation9_spill] sm:$0xff] %v3624_v26  ;;  %v3627_v44 = vsel %vm2466_vm3, 4294967295, %v3626_v44 }
  0xf2   : > { %v2403_v47 = vpop.permute.xlu2 %1959 }
  0xf3   : > { %v1962_v49 = vunpack.i.h.bf16 %v2403_v47  ;;  %v1961_v51 = vunpack.i.l.bf16 %v2403_v47 }
  0xf5   : > { %v719_v59 = vsel %vm3540_vm10, %v1961_v51, %v1962_v49  ;;  %vm2430_vm10 = vcmp.eq.s32.totalorder %v742_v62, 1 }
  0xf6   : > { %v727_v61 = vsel %vm2405_vm8, %v719_v59, -3e+38  ;;  %v3620_v10 = vsel %vm2430_vm10, 4294967295, %v3619_v10 }
  0xf7   : > { %v731_v0 = vmax.f32 %v695_v45, %v727_v61  ;;  %3621 = vst [vmem:[#allocation7_spill] sm:$0xff] %v3620_v10  ;;  %v603_v61 = vperm.slane %v2322_v7, 1 }
  0xf9   : > { %vm2487_vm13 = vcmp.eq.s32.totalorder %v603_v61, 1 }
  0xfa   : > { %v2426_v4 = vpop.permute.xlu2 %1969  ;;  %v3633_v63 = vsel %vm2487_vm13, 4294967295, %v3632_v63 }
  0xfb   : > { %v1972_v6 = vunpack.i.h.bf16 %v2426_v4  ;;  %v1971_v9 = vunpack.i.l.bf16 %v2426_v4 }
  0xfd   : > { %v759_v12 = vsel %vm3542_vm11, %v1971_v9, %v1972_v6  ;;  %vm3631_vm11 = vcmask 138240  }
  0xfe   : > { %v767_v13 = vsel %vm2430_vm10, %v759_v12, -3e+38  ;;  %vm3643_vm10 = vcmp.lt.s32.totalorder %v2268_v56, 16 }
  0xff   : > { %v771_v15 = vmax.f32 %v731_v0, %v767_v13  ;;  %v642_v13 = vperm.slane %v2354_v23, 1 }
 0x102   : > { %v2443_v16 = vpop.permute.xlu2 %1979 }
 0x103   : > { %v1982_v22 = vunpack.i.h.bf16 %v2443_v16  ;;  %v1981_v25 = vunpack.i.l.bf16 %v2443_v16 }
 0x105   : > { %v795_v24 = vsel %vm3541_vm9, %v1981_v25, %v1982_v22  ;;  %vm3630_vm9 = vcmask 1039360  }
 0x106   : > { %v803_v29 = vsel %vm2449_vm12, %v795_v24, -3e+38  ;;  %vm3642_vm12 = vcmask 900096  }
 0x107   : > { %v2460_v33 = vmax.f32 %v771_v15, %v803_v29 }
 0x10a   : > { %v2463_v35 = vpop.permute.xlu2 %1989 }
 0x10c   : > { %v1925_v38 = vpop.permute.xlu1 %1924 }
 0x10d   : > { %v1880_v41 = vpop.permute.xlu0 %1879 }
 0x10e   : > { %v1881_v45 = vunpack.i.l.bf16 %v1880_v41  ;;  %v1882_v61 = vunpack.i.h.bf16 %v1880_v41 }
 0x110   : > { %v581_v51 = vsel %vm3630_vm9, %v1922_v3, %v1881_v45  ;;  %vm3634_vm9 = vcmask 1031168  }
 0x111   : > { %v589_v60 = vsel %vm2466_vm3, %v581_v51, -3e+38 }
 0x112   : > { %v593_v59 = vmax.f32 %v547_v58, %v589_v60  ;;  %v2483_v62 = vpop.permute.xlu2 %921  ;;  %v1927_v58 = vunpack.i.h.bf16 %v1925_v38  ;;  %v1926_v60 = vunpack.i.l.bf16 %v1925_v38 }
 0x113   : > { %929 = vst.msk [vmem:[#allocation3 + $0x10] sm:$0xff] %vm3631_vm11, %v2483_v62  ;;  %vm2503_vm11 = vcmp.eq.s32.totalorder %v642_v13, 1 }
 0x114   : > { %v1935_v0 = vpop.permute.xlu1 %1934  ;;  %v3636_v17 = vsel %vm2503_vm11, 4294967295, %v3635_v17 }
 0x115   : > { %v1885_v9 = vpop.permute.xlu0 %1884  ;;  %v1937_v38 = vunpack.i.h.bf16 %v1935_v0 }
 0x116   : > { %v1886_v3 = vunpack.i.l.bf16 %v1885_v9 }
 0x118   : > { %v620_v20 = vsel %vm3634_vm9, %v1932_v21, %v1886_v3  ;;  %vm3637_vm9 = vcmask 916480  }
 0x119   : > { %v628_v12 = vsel %vm2487_vm13, %v620_v20, -3e+38  ;;  %v1936_v20 = vunpack.i.l.bf16 %v1935_v0 }
 0x11a   : > { %v632_v7 = vmax.f32 %v593_v59, %v628_v12  ;;  %v2497_v14 = vld [vmem:[#allocation3 + $0x10] sm:$0xff] }
 0x11b   : > { %942 = vrot.lane.b32.xlu2 %v2497_v14, %s2020_s13  ;;  %1014 = vrot.lane.b32.xlu1 %v2497_v14, %s2027_s25 }
 0x11c   : > { %v1945_v15 = vpop.permute.xlu1 %1944 }
 0x11d   : > { %v1890_v25 = vpop.permute.xlu0 %1889 }
 0x11e   : > { %v1891_v21 = vunpack.i.l.bf16 %v1890_v25 }
 0x120   : > { %v659_v24 = vsel %vm3637_vm9, %v1942_v32, %v1891_v21  ;;  %v703_v32 = vperm.slane %v2391_v43, 1  ;;  %vm3638_vm9 = vcmp.ge.s32.totalorder %v2268_v56, 0  ;;  %v743_v21 = vperm.slane %v2412_v55, 1 }
 0x121   : > { %v667_v23 = vsel %vm2503_vm11, %v659_v24, -3e+38  ;;  %vm811_vm6 = vmand %vm2386_vm4, %vm3638_vm9  ;;  %v548_v55 = vsel %vm2324_vm15, %v2199_v37, -3e+38  ;;  %v1991_v37 = vunpack.i.l.bf16 %v2463_v35  ;;  %vm3653_vm9 = vnez %v3636_v17 }
 0x122   : > { %v671_v29 = vmax.f32 %v632_v7, %v667_v23  ;;  %vm2533_vm0 = vcmp.eq.s32.totalorder %v703_v32, 1  ;;  %vm812_vm8 = vmand %vm811_vm6, %vm3643_vm10  ;;  %v1887_v7 = vunpack.i.h.bf16 %v1885_v9  ;;  %v1892_v32 = vunpack.i.h.bf16 %v1890_v25 }
 0x123   : > { %954 = vrot.lane.b32.xlu2 %v2497_v14, %s2021_s14  ;;  %v3640_v39 = vsel %vm2533_vm0, 4294967295, %v3639_v39  ;;  %v2551_v0 = vsel %vm812_vm8, 1, %v3572_v2  ;;  %vm2567_vm10 = vcmp.eq.s32.totalorder %v743_v21, 1  ;;  %vm3650_vm8 = vcmask 916480  }
 0x124   : > { %v2512_v34 = vpop.permute.xlu1 %1954  ;;  %vm3661_vm4 = vcmask 785408   ;;  %vm1114_vm15 = vcmask 1047824  }
 0x125   : > { %v2516_v36 = vpop.permute.xlu0 %1894 }
 0x126   : > { %v1896_v45 = vunpack.i.l.bf16 %v2516_v36 }
 0x128   : > { %v688_v51 = vsel %vm3548_vm5, %v1952_v40, %v1896_v45  ;;  %vm3641_vm5 = vcmask 1039360   ;;  %v1946_v45 = vunpack.i.l.bf16 %v1945_v15 }
 0x129   : > { %v696_v30 = vmax.f32 %v671_v29, %v688_v51  ;;  %v583_v43 = vsel %vm3641_vm5, %v1926_v60, %v1927_v58  ;;  %vm3644_vm11 = vmmov %vm3641_vm5  ;;  %vm3645_vm5 = vcmask 1031168   ;;  %v1947_v29 = vunpack.i.h.bf16 %v1945_v15 }
 0x12a   : > { %v582_v12 = vsel %vm3644_vm11, %v1882_v61, %v1926_v60  ;;  %v591_v23 = vsel %vm2466_vm3, %v583_v43, -3e+38  ;;  %v549_v51 = vsel %vm2470_vm7, %v2188_v28, -3e+38  ;;  %vm3646_vm6 = vmmov %vm3645_vm5  ;;  %v1992_v60 = vunpack.i.h.bf16 %v2463_v35  ;;  %v847_v35 = vld [vmem:[%s3522_s5] sm:$0xff] }
 0x12b   : > { %966 = vrot.lane.b32.xlu2 %v2497_v14, %s2022_s15  ;;  %v590_v47 = vsel %vm2310_vm14, %v582_v12, -3e+38  ;;  %v814_v15 = vperm.slane %v2551_v0, 0  ;;  %v779_v12 = vperm.slane %v2435_v11, 1  ;;  %vm3652_vm11 = vmmov %vm3650_vm8  ;;  %vm3676_vm3 = vcmask 1047688  }
 0x12c   : > { %v2523_v59 = vpop.permute.xlu1 %1964  ;;  %v594_v43 = vmax.f32 %v548_v55, %v590_v47  ;;  %v1957_v47 = vunpack.i.h.bf16 %v2512_v34  ;;  %vm3677_vm14 = vcmask 130048  }
 0x12d   : > { %v2527_v3 = vpop.permute.xlu0 %1899  ;;  %v1966_v21 = vunpack.i.l.bf16 %v2523_v59 }
 0x12e   : > { %v1901_v40 = vunpack.i.l.bf16 %v2527_v3 }
 0x130   : > { %v720_v41 = vsel %vm3642_vm12, %v1962_v49, %v1901_v40  ;;  %v622_v49 = vsel %vm3645_vm5, %v1936_v20, %v1937_v38  ;;  %v3647_v40 = vmov 0  ;;  %v595_v38 = vmax.f32 %v549_v51, %v591_v23 }
 0x131   : > { %v728_v13 = vsel %vm2533_vm0, %v720_v41, -3e+38  ;;  %v3648_v40 = vsel %vm2567_vm10, 4294967295, %v3647_v40  ;;  %v630_v28 = vsel %vm2487_vm13, %v622_v49, -3e+38  ;;  %vm3651_vm12 = vcmask 785408   ;;  %vm3678_vm13 = vmmov %vm3677_vm14 }
 0x132   : > { %v732_v24 = vmax.f32 %v696_v30, %v728_v13  ;;  %v621_v30 = vsel %vm3646_vm6, %v1887_v7, %v1936_v20  ;;  %3649 = vst [vmem:[#allocation10_spill] sm:$0xff] %v3648_v40  ;;  %v661_v20 = vsel %vm3650_vm8, %v1946_v45, %v1947_v29  ;;  %v660_v7 = vsel %vm3652_vm11, %v1892_v32, %v1946_v45 }
 0x133   : > { %978 = vrot.lane.b32.xlu2 %v2497_v14, %s2024_s18  ;;  %v629_v25 = vsel %vm2347_vm1, %v621_v30, -3e+38  ;;  %v1967_v13 = vunpack.i.h.bf16 %v2523_v59  ;;  %v1956_v49 = vunpack.i.l.bf16 %v2512_v34  ;;  %v1902_v29 = vunpack.i.h.bf16 %v2527_v3 }
 0x134   : > { %v1975_v9 = vpop.permute.xlu1 %1974  ;;  %v634_v55 = vmax.f32 %v595_v38, %v630_v28  ;;  %v633_v45 = vmax.f32 %v594_v43, %v629_v25  ;;  %v668_v30 = vsel %vm2364_vm2, %v660_v7, -3e+38  ;;  %v669_v59 = vsel %vm3653_vm9, %v661_v20, -3e+38 }
 0x135   : > { %v1905_v58 = vpop.permute.xlu0 %1904  ;;  %v1977_v11 = vunpack.i.h.bf16 %v1975_v9  ;;  %v1976_v51 = vunpack.i.l.bf16 %v1975_v9  ;;  %vm3654_vm5 = vcmask 900096   ;;  %vm2597_vm6 = vcmp.eq.s32.totalorder %v779_v12, 1 }
 0x136   : > { %v1906_v61 = vunpack.i.l.bf16 %v1905_v58  ;;  %v1907_v32 = vunpack.i.h.bf16 %v1905_v58  ;;  %v722_v34 = vsel %vm3654_vm5, %v1966_v21, %v1967_v13  ;;  %vm3658_vm8 = vcmask 908288  }
 0x137   : > { %v690_v9 = vsel %vm3658_vm8, %v1956_v49, %v1957_v47  ;;  %v672_v58 = vmax.f32 %v633_v45, %v668_v30  ;;  %v673_v20 = vmax.f32 %v634_v55, %v669_v59  ;;  %vm3660_vm11 = vmmov %vm3658_vm8  ;;  %v762_v7 = vsel %vm3661_vm4, %v1976_v51, %v1977_v11 }
 0x138   : > { %v760_v41 = vsel %vm3651_vm12, %v1972_v6, %v1906_v61  ;;  %v1897_v6 = vunpack.i.h.bf16 %v2516_v36  ;;  %v3655_v36 = vmov 0  ;;  %vm3659_vm12 = vmmov %vm3654_vm5  ;;  %v730_v12 = vsel %vm2533_vm0, %v722_v34, -3e+38 }
 0x139   : > { %v768_v23 = vsel %vm2567_vm10, %v760_v41, -3e+38  ;;  %v3656_v36 = vsel %vm2597_vm6, 4294967295, %v3655_v36  ;;  %v721_v43 = vsel %vm3659_vm12, %v1902_v29, %v1966_v21  ;;  %vm3662_vm5 = vmmov %vm3661_vm4  ;;  %vm3663_vm8 = vcmask 777216  }
 0x13a   : > { %v772_v4 = vmax.f32 %v732_v24, %v768_v23  ;;  %3657 = vst [vmem:[#allocation11_spill] sm:$0xff] %v3656_v36  ;;  %v689_v41 = vsel %vm3660_vm11, %v1897_v6, %v1956_v49  ;;  %v761_v13 = vsel %vm3662_vm5, %v1907_v32, %v1976_v51  ;;  %v815_v23 = vperm.slane %v2551_v0, 1  ;;  %vm3665_vm7 = vmmov %vm3663_vm8 }
 0x13b   : > { %990 = vrot.lane.b32.xlu2 %v2497_v14, %s2025_s23  ;;  %v698_v21 = vmax.f32 %v673_v20, %v690_v9  ;;  %vm3664_vm12 = vnez %v3616_v48  ;;  %v697_v6 = vmax.f32 %v672_v58, %v689_v41  ;;  %vm3666_vm4 = vmmov %vm3665_vm7  ;;  %v770_v51 = vsel %vm2567_vm10, %v762_v7, -3e+38 }
 0x13c   : > { %v1985_v61 = vpop.permute.xlu1 %1984  ;;  %v729_v29 = vsel %vm3664_vm12, %v721_v43, -3e+38  ;;  %vm3667_vm11 = vnez %v3620_v10  ;;  %vm3563_vm5 = vcmask 769024   ;;  %v3668_v59 = vmov 0 }
 0x13d   : > { %v1910_v3 = vpop.permute.xlu0 %1909  ;;  %v1987_v24 = vunpack.i.h.bf16 %v1985_v61  ;;  %v1986_v38 = vunpack.i.l.bf16 %v1985_v61  ;;  %v769_v16 = vsel %vm3667_vm11, %v761_v13, -3e+38  ;;  %v733_v30 = vmax.f32 %v697_v6, %v729_v29 }
 0x13e   : > { %v1912_v28 = vunpack.i.h.bf16 %v1910_v3  ;;  %v1911_v25 = vunpack.i.l.bf16 %v1910_v3  ;;  %v3671_v61 = vmov 0  ;;  %vm1109_vm1 = vcmask 277504  }
 0x13f   : > { %v798_v55 = vsel %vm3665_vm7, %v1986_v38, %v1987_v24  ;;  %vm2624_vm7 = vcmp.eq.s32.totalorder %v814_v15, 1  ;;  %v773_v15 = vmax.f32 %v733_v30, %v769_v16  ;;  %v3714_v40 = vmov 0  }
 0x140   : > { %v796_v47 = vsel %vm3663_vm8, %v1982_v22, %v1911_v25  ;;  %v797_v11 = vsel %vm3666_vm4, %v1912_v28, %v1986_v38  ;;  %v734_v22 = vmax.f32 %v698_v21, %v730_v12  ;;  %v3669_v59 = vsel %vm2624_vm7, 4294967295, %v3668_v59 }
 0x141   : > { %v804_v49 = vsel %vm2597_vm6, %v796_v47, -3e+38  ;;  %3670 = vst [vmem:[#allocation12_spill] sm:$0xff] %v3669_v59  ;;  %v806_v32 = vsel %vm2597_vm6, %v798_v55, -3e+38  ;;  %vm2630_vm8 = vcmp.eq.s32.totalorder %v815_v23, 1  ;;  %vm3674_vm4 = vnez %v3624_v26 }
 0x142   : > { %v808_v0 = vmax.f32 %v772_v4, %v804_v49  ;;  %v3672_v61 = vsel %vm2630_vm8, 4294967295, %v3671_v61  ;;  %v805_v24 = vsel %vm3674_vm4, %v797_v11, -3e+38  ;;  %v774_v38 = vmax.f32 %v734_v22, %v770_v51  ;;  %v1559_v59 = vld [vmem:[%s3527_s10 + $0x8] sm:$0xff] }
 0x143   : > { %1002 = vrot.lane.b32.xlu2 %v2497_v14, %s2026_s24  ;;  %3673 = vst [vmem:[#allocation13_spill] sm:$0xff] %v3672_v61  ;;  %v831_v28 = vsel %vm3563_vm5, %v1991_v37, %v1992_v60  ;;  %v809_v20 = vmax.f32 %v773_v15, %v805_v24 }
 0x144   : > { %v1995_v45 = vpop.permute.xlu1 %1994  ;;  %v810_v25 = vmax.f32 %v774_v38, %v806_v32  ;;  %v839_v37 = vsel %vm2624_vm7, %v831_v28, -3e+38 }
 0x145   : > { %v1915_v4 = vpop.permute.xlu0 %1914  ;;  %v1997_v34 = vunpack.i.h.bf16 %v1995_v45  ;;  %v1996_v3 = vunpack.i.l.bf16 %v1995_v45  ;;  %v843_v55 = vmax.f32 %v2460_v33, %v839_v37  ;;  %v848_v33 = vld [vmem:[%s3522_s5 + $0x8] sm:$0xff] }
 0x146   : > { %v1917_v9 = vunpack.i.h.bf16 %v1915_v4  ;;  %v1916_v43 = vunpack.i.l.bf16 %v1915_v4 }
 0x147   : > { %v834_v58 = vsel %vm3563_vm5, %v1996_v3, %v1997_v34 }
 0x148   : > { %v833_v41 = vsel %vm3563_vm5, %v1917_v9, %v1996_v3  ;;  %v842_v7 = vsel %vm2630_vm8, %v834_v58, -3e+38  ;;  %v832_v13 = vsel %vm3563_vm5, %v1992_v60, %v1916_v43  ;;  %vm3675_vm5 = vcmask 138240  }
 0x149   : > { %v841_v12 = vsel %vm2624_vm7, %v833_v41, -3e+38  ;;  %v846_v23 = vmax.f32 %v810_v25, %v842_v7  ;;  %v840_v47 = vsel %vm2630_vm8, %v832_v13, -3e+38 }
 0x14a   : > { %v845_v21 = vmax.f32 %v809_v20, %v841_v12  ;;  %v844_v29 = vmax.f32 %v808_v0, %v840_v47 }
 0x14b   : > { %904 = vmatpush.msra.mxu3 %v846_v23 }
 0x14c   : > { %881 = vmatpush.msra.mxu2 %v845_v21  ;;  %v920_v60 = vpop.permute.xlu1 %919 }
 0x14d   : > { %v1106_v49 = vpop.permute.xlu0 %1105  ;;  %v2660_v6 = vsel %vm3675_vm5, %v920_v60, %v2483_v62  ;;  %927 = vst.msk [vmem:[#allocation3] sm:$0xff] %vm3676_vm3, %v920_v60  ;;  %905 = vmatpush.msra.mxu3 %v844_v29  ;;  %vm3686_vm5 = vcmask 777216  }
 0x14e   : > { %1115 = vst.msk [vmem:[#allocation4] sm:$0xff] %vm1114_vm15, %v1106_v49  ;;  %882 = vmatpush.msra.mxu2 %v843_v55  ;;  %1762 = vmatmul.msk.f32.vlgmr.msra.gmra.mxu3 %vm3677_vm14, %v847_v35  ;;  %vm3680_vm14 = vmmov %vm3678_vm13  ;;  %vm3684_vm15 = vcmask 769024  }
 0x14f   : > { %1760 = vmatmul.msk.f32.vlgmr.msra.gmra.mxu2 %vm3678_vm13, %v847_v35  ;;  %940 = vrot.lane.b32.xlu1 %v2660_v6, %s2020_s13  ;;  %vm3685_vm3 = vmmov %vm3684_vm15 }
 0x154   : > { %v1108_v11 = vpop.permute.xlu1 %1107  ;;  %v2670_v62 = vld [vmem:[#allocation3] sm:$0xff] }
 0x155   : > { %v2672_v51 = vsel %vm1109_vm1, %v1106_v49, %v1108_v11  ;;  %1117 = vst.msk [vmem:[#allocation4 + $0x10] sm:$0xff] %vm1109_vm1, %v1108_v11  ;;  %1010 = vrot.lane.b32.xlu2 %v2670_v62, %s2027_s25  ;;  %938 = vrot.lane.b32.xlu0 %v2670_v62, %s2020_s13  ;;  %v1998_v0 = vpack.i.bf16 %v2660_v6, %v2670_v62  ;;  %v2703_v22 = vld [vmem:[#allocation4] sm:$0xff]  ;;  %vm3683_vm1 = vcmask 1039360  }
 0x156   : > { %3679 = vst [vmem:[#allocation14_spill] sm:$0xff] %v2672_v51  ;;  %1763 = vmatmul.msk.f32.gmra.mxu3 %vm3678_vm13, %v848_v33  ;;  %vm3687_vm13 = vmmov %vm3686_vm5 }
 0x157   : > { %1761 = vmatmul.msk.f32.gmra.mxu2 %vm3680_vm14, %v848_v33  ;;  %952 = vrot.lane.b32.xlu1 %v2660_v6, %s2021_s14  ;;  %3681 = vst [vmem:[#allocation15_spill] sm:$0xff] %v2703_v22  ;;  %vm3688_vm14 = vcmask 785408  }
 0x15c   : > { %v2689_v16 = vld [vmem:[#allocation4 + $0x10] sm:$0xff] }
 0x15d   : > { %950 = vrot.lane.b32.xlu0 %v2670_v62, %s2021_s14  ;;  %1999 = vrot.lane.b32.xlu2 %v1998_v0, %s2023_s16  ;;  %v2003_v20 = vpack.i.bf16 %v2689_v16, %v2672_v51 }
 0x15f   : > { %964 = vrot.lane.b32.xlu1 %v2660_v6, %s2022_s15 }
 0x165   : > { %962 = vrot.lane.b32.xlu0 %v2670_v62, %s2022_s15  ;;  %1151 = vrot.lane.b32.xlu2 %v2689_v16, %s2020_s13 }
 0x167   : > { %976 = vrot.lane.b32.xlu1 %v2660_v6, %s2024_s18 }
 0x16d   : > { %974 = vrot.lane.b32.xlu0 %v2670_v62, %s2024_s18  ;;  %1372 = vrot.lane.b32.xlu2 %v2689_v16, %s2029_s26 }
 0x16f   : > { %988 = vrot.lane.b32.xlu1 %v2660_v6, %s2025_s23 }
 0x175   : > { %986 = vrot.lane.b32.xlu0 %v2670_v62, %s2025_s23  ;;  %1348 = vrot.lane.b32.xlu2 %v2703_v22, %s2030_s27  ;;  %v2709_v45 = vpop.permute.xlu2 %942 }
 0x177   : > { %1000 = vrot.lane.b32.xlu1 %v2660_v6, %s2026_s24 }
 0x17d   : > { %998 = vrot.lane.b32.xlu0 %v2670_v62, %s2026_s24  ;;  %1328 = vrot.lane.b32.xlu2 %v2703_v22, %s2031_s28  ;;  %v2717_v30 = vpop.permute.xlu2 %954 }
 0x17f   : > { %1352 = vrot.lane.b32.xlu1 %v2689_v16, %s2030_s27 }
 0x185   : > { %1026 = vrot.lane.b32.xlu0 %v2497_v14, %s2023_s16  ;;  %1544 = vrot.lane.b32.xlu2 %v2703_v22, %s2027_s25  ;;  %v2727_v32 = vpop.permute.xlu2 %966 }
 0x187   : > { %1368 = vrot.lane.b32.xlu1 %v2703_v22, %s2029_s26 }
 0x18d   : > { %1012 = vrot.lane.b32.xlu0 %v2660_v6, %s2027_s25  ;;  %1316 = vrot.lane.b32.xlu2 %v2703_v22, %s2026_s24  ;;  %v2735_v4 = vpop.permute.xlu2 %978  ;;  %v2775_v38 = vpop.permute.xlu1 %1014 }
 0x18f   : > { %1320 = vrot.lane.b32.xlu1 %v2689_v16, %s2026_s24 }
 0x195   : > { %1147 = vrot.lane.b32.xlu0 %v2703_v22, %s2020_s13  ;;  %1304 = vrot.lane.b32.xlu2 %v2703_v22, %s2025_s23  ;;  %v2743_v14 = vpop.permute.xlu2 %990 }
 0x197   : > { %1308 = vrot.lane.b32.xlu1 %v2689_v16, %s2025_s23 }
 0x19d   : > { %1166 = vrot.lane.b32.xlu0 %v2703_v22, %s2021_s14  ;;  %1232 = vrot.lane.b32.xlu2 %v2689_v16, %s2022_s15  ;;  %v2755_v34 = vpop.permute.xlu2 %1002 }
 0x19f   : > { %1288 = vrot.lane.b32.xlu1 %v2689_v16, %s2032_s29 }
 0x1a5   : > { %1332 = vrot.lane.b32.xlu0 %v2689_v16, %s2031_s28  ;;  %1495 = vrot.lane.b32.xlu2 %v2689_v16, %s2033_s30 }
 0x1a7   : > { %1268 = vrot.lane.b32.xlu1 %v2689_v16, %s2034_s12 }
 0x1ad   : > { %1244 = vrot.lane.b32.xlu0 %v2689_v16, %s2023_s16  ;;  %1252 = vrot.lane.b32.xlu2 %v2703_v22, %s2024_s18 }
 0x1af   : > { %v2763_v3 = vpop.permute.xlu2 %1010  ;;  %1256 = vrot.lane.b32.xlu1 %v2689_v16, %s2024_s18 }
 0x1b5   : > { %1515 = vrot.lane.b32.xlu0 %v2689_v16, %s2035_s19  ;;  %1531 = vrot.lane.b32.xlu2 %v2703_v22, %s2036_s20 }
 0x1b7   : > { %v2771_v24 = vpop.permute.xlu2 %1999  ;;  %1535 = vrot.lane.b32.xlu1 %v2689_v16, %s2036_s20 }
 0x1bd   : > { %1264 = vrot.lane.b32.xlu0 %v2703_v22, %s2034_s12  ;;  %1240 = vrot.lane.b32.xlu2 %v2703_v22, %s2023_s16 }
 0x1bf   : > { %v2781_v9 = vpop.permute.xlu2 %1151  ;;  %1284 = vrot.lane.b32.xlu1 %v2703_v22, %s2032_s29 }
 0x1c0   : > { %3682 = vst [vmem:[#allocation16_spill] sm:$0xff] %v2781_v9 }
 0x1c1   : > { %v2785_v43 = vpop.permute.xlu1 %940 }
 0x1c5   : > { %1330 = vrot.lane.b32.xlu2 %v2672_v51, %s2031_s28  ;;  %1350 = vrot.lane.b32.xlu0 %v2672_v51, %s2030_s27  ;;  %s2038_s27 = smov 63  }
 0x1c7   : > { %v939_v15 = vpop.permute.xlu0 %938  ;;  %v2791_v28 = vpop.permute.xlu2 %1372  ;;  %1212 = vrot.lane.b32.xlu1 %v2689_v16, %s2037_s21 }
 0x1c8   : > { %v2797_v25 = vsel %vm3683_vm1, %v939_v15, %v2785_v43  ;;  %vm3689_vm1 = vmmov %vm3688_vm14 }
 0x1c9   : > { %v2799_v58 = vpop.permute.xlu1 %952 }
 0x1cd   : > { %2004 = vrot.lane.b32.xlu2 %v2003_v20, %s2027_s25  ;;  %1318 = vrot.lane.b32.xlu0 %v2672_v51, %s2026_s24  ;;  %s2039_s24 = smov 125  }
 0x1cf   : > { %v2806_v41 = vpop.permute.xlu0 %950  ;;  %v2808_v7 = vpop.permute.xlu2 %1348  ;;  %1475 = vrot.lane.b32.xlu1 %v2689_v16, %s2038_s27 }
 0x1d1   : > { %v907_v13 = vpop.f32.mrf.mxu3  ;;  %v2812_v12 = vpop.permute.xlu1 %964 }
 0x1d2   : > { %v884_v23 = vpop.f32.mrf.mxu2  ;;  %v908_v37 = vadd.f32 %v907_v13, %v2241_v50 }
 0x1d3   : > { %v885_v47 = vadd.f32 %v884_v23, %v2241_v50 }
 0x1d4   : > { %v914_v21 = vmax.f32 %v908_v37, 0.0 }
 0x1d5   : > { %v913_v29 = vmax.f32 %v885_v47, 0.0  ;;  %1242 = vrot.lane.b32.xlu2 %v2672_v51, %s2023_s16  ;;  %1306 = vrot.lane.b32.xlu0 %v2672_v51, %s2025_s23  ;;  %s2042_s16 = smov 78   ;;  %s2044_s23 = smov 76  }
 0x1d6   : > { %1685 = vst [vmem:[%s2196_s22 + $0x68] sm:$0xff] %v914_v21 }
 0x1d7   : > { %1684 = vst [vmem:[%s2196_s22 + $0x60] sm:$0xff] %v913_v29  ;;  %v2822_v35 = vpop.permute.xlu0 %962  ;;  %v2824_v60 = vpop.permute.xlu2 %1328  ;;  %1189 = vrot.lane.b32.xlu1 %v2689_v16, %s2039_s24 }
 0x1d9   : > { %v910_v50 = vpop.f32.mrf.mxu3  ;;  %v977_v55 = vpop.permute.xlu1 %976 }
 0x1da   : > { %v887_v49 = vpop.f32.mrf.mxu2  ;;  %v911_v33 = vadd.f32 %v910_v50, %v2453_v27 }
 0x1db   : > { %v888_v11 = vadd.f32 %v887_v49, %v2453_v27 }
 0x1dc   : > { %v916_v0 = vmax.f32 %v911_v33, 0.0 }
 0x1dd   : > { %v915_v15 = vmax.f32 %v888_v11, 0.0  ;;  %1513 = vrot.lane.b32.xlu2 %v2672_v51, %s2035_s19  ;;  %1286 = vrot.lane.b32.xlu0 %v2672_v51, %s2032_s29 }
 0x1de   : > { %1687 = vst [vmem:[%s2196_s22 + $0x78] sm:$0xff] %v916_v0 }
 0x1df   : > { %1686 = vst [vmem:[%s2196_s22 + $0x70] sm:$0xff] %v915_v15  ;;  %v975_v20 = vpop.permute.xlu0 %974  ;;  %v2836_v13 = vpop.permute.xlu2 %1544  ;;  %1149 = vrot.lane.b32.xlu1 %v2672_v51, %s2020_s13  ;;  %s2040_s13 = smov 77  }
 0x1e1   : > { %v989_v23 = vpop.permute.xlu1 %988 }
 0x1e5   : > { %1511 = vrot.lane.b32.xlu2 %v2703_v22, %s2035_s19  ;;  %1266 = vrot.lane.b32.xlu0 %v2672_v51, %s2034_s12 }
 0x1e7   : > { %v987_v27 = vpop.permute.xlu0 %986  ;;  %1370 = vrot.lane.b32.xlu1 %v2672_v51, %s2029_s26  ;;  %v2846_v37 = vpop.permute.xlu2 %1316 }
 0x1e9   : > { %v1001_v47 = vpop.permute.xlu1 %1000 }
 0x1ea   : > { %v1005_v9 = vsel %vm3687_vm13, %v1001_v47, %v2755_v34  ;;  %v993_v34 = vsel %vm3689_vm1, %v989_v23, %v2743_v14 }
 0x1ed   : > { %1228 = vrot.lane.b32.xlu2 %v2703_v22, %s2022_s15  ;;  %1254 = vrot.lane.b32.xlu0 %v2672_v51, %s2024_s18  ;;  %s2043_s18 = smov 79  }
 0x1ef   : > { %v999_v21 = vpop.permute.xlu0 %998  ;;  %1230 = vrot.lane.b32.xlu1 %v2672_v51, %s2022_s15  ;;  %v2856_v50 = vpop.permute.xlu2 %1304  ;;  %s2041_s15 = smov 64  }
 0x1f0   : > { %v1004_v18 = vsel %vm3686_vm5, %v999_v21, %v1001_v47  ;;  %vm3693_vm5 = vcmask 908288  }
 0x1f1   : > { %v2854_v29 = vpop.permute.xlu1 %1352  ;;  %vm3694_vm13 = vmmov %vm3693_vm5 }
 0x1f5   : > { %1491 = vrot.lane.b32.xlu2 %v2703_v22, %s2033_s30  ;;  %1533 = vrot.lane.b32.xlu0 %v2672_v51, %s2036_s20 }
 0x1f7   : > { %v1027_v49 = vpop.permute.xlu0 %1026  ;;  %1493 = vrot.lane.b32.xlu1 %v2672_v51, %s2033_s30  ;;  %v2866_v11 = vpop.permute.xlu2 %1232 }
 0x1f9   : > { %v2864_v33 = vpop.permute.xlu1 %1368 }
 0x1fd   : > { %1411 = vrot.lane.b32.xlu2 %v2689_v16, %s2040_s13  ;;  %1210 = vrot.lane.b32.xlu0 %v2672_v51, %s2037_s21 }
 0x1ff   : > { %v1013_v0 = vpop.permute.xlu0 %1012  ;;  %1455 = vrot.lane.b32.xlu1 %v2689_v16, %s2041_s15 }
 0x200   : > { %v1016_v15 = vsel %vm3684_vm15, %v2763_v3, %v1013_v0  ;;  %v1017_v2 = vsel %vm3685_vm3, %v1013_v0, %v2775_v38  ;;  %v2002_v3 = vunpack.i.h.bf16 %v2771_v24  ;;  %v2001_v38 = vunpack.i.l.bf16 %v2771_v24 }
 0x201   : > { %1764 = vmatpush.msk.msrb.mxu2 %vm2624_vm7, %v1016_v15  ;;  %1774 = vmatpush.msk.msrb.mxu3 %vm2630_vm8, %v1017_v2  ;;  %v2882_v57 = vpop.permute.xlu1 %1320  ;;  %v992_v2 = vsel %vm3688_vm14, %v987_v27, %v989_v23  ;;  %vm3691_vm15 = vcmask 900096   ;;  %vm3695_vm14 = vcmask 916480  }
 0x202   : > { %vm3692_vm3 = vmmov %vm3691_vm15  ;;  %v1028_v14 = vsel %vm3693_vm5, %v2001_v38, %v2002_v3  ;;  %v1029_v23 = vsel %vm3694_vm13, %v2002_v3, %v1027_v49  ;;  %vm3699_vm5 = vnez %v3609_v19  ;;  %vm3700_vm13 = vnez %v3633_v63 }
 0x203   : > { %1765 = vmatpush.msk.msrb.mxu2 %vm3674_vm4, %v1004_v18  ;;  %1775 = vmatpush.msk.msrb.mxu3 %vm2597_vm6, %v1005_v9  ;;  %v2904_v18 = vpop.permute.xlu2 %1495  ;;  %v980_v9 = vsel %vm3691_vm15, %v975_v20, %v977_v55  ;;  %v981_v47 = vsel %vm3692_vm3, %v977_v55, %v2735_v4  ;;  %v968_v4 = vsel %vm3695_vm14, %v2822_v35, %v2812_v12  ;;  %vm3696_vm1 = vmmov %vm3695_vm14  ;;  %vm3697_vm15 = vcmask 1031168  }
 0x204   : > { %v969_v55 = vsel %vm3696_vm1, %v2812_v12, %v2727_v32  ;;  %v956_v35 = vsel %vm3697_vm15, %v2806_v41, %v2799_v58  ;;  %vm3698_vm3 = vmmov %vm3697_vm15  ;;  %vm3702_vm14 = vcmask 1039360   ;;  %vm3703_vm1 = vnez %v3603_v1 }
 0x205   : > { %1396 = vrot.lane.b32.xlu2 %v2672_v51, %s2042_s16  ;;  %1473 = vrot.lane.b32.xlu0 %v2672_v51, %s2038_s27  ;;  %v957_v32 = vsel %vm3698_vm3, %v2799_v58, %v2717_v30  ;;  %v945_v20 = vsel %vm3702_vm14, %v2785_v43, %v2709_v45  ;;  %vm3704_vm15 = vnez %v3627_v44  ;;  %v1032_v30 = vld [vmem:[%s3524_s7] sm:$0xff]  ;;  %vm3577_vm3 = vcmask 588800  }
 0x206   : > { %1766 = vmatpush.msk.msrb.mxu2 %vm3667_vm11, %v992_v2  ;;  %1776 = vmatpush.msk.msrb.mxu3 %vm2567_vm10, %v993_v34  ;;  %vm3705_vm14 = vnez %v3607_v8  ;;  %vm3706_vm11 = vnez %v3629_v46  ;;  %v1558_v43 = vld [vmem:[%s3527_s10] sm:$0xff]  ;;  %vm3710_vm6 = vnez %v3613_v42  ;;  %vm3711_vm10 = vnez %v3605_v5 }
 0x207   : > { %v2906_v24 = vpop.permute.xlu0 %1147  ;;  %1170 = vrot.lane.b32.xlu1 %v2689_v16, %s2021_s14 }
 0x208   : > { %3690 = vst [vmem:[#allocation17_spill] sm:$0xff] %v2906_v24  ;;  %1767 = vmatpush.msk.msrb.mxu2 %vm3664_vm12, %v980_v9  ;;  %1777 = vmatpush.msk.msrb.mxu3 %vm2533_vm0, %v981_v47 }
 0x209   : > { %v2919_v27 = vpop.permute.xlu1 %1308 }
 0x20a   : > { %1064 = vmatpush.msrb.mxu2 %v1028_v14  ;;  %1087 = vmatpush.msrb.mxu3 %v1029_v23 }
 0x20b   : > { %v2960_v58 = vpop.permute.xlu2 %1252 }
 0x20c   : > { %1768 = vmatpush.msk.msrb.mxu2 %vm2364_vm2, %v968_v4  ;;  %1778 = vmatpush.msk.msrb.mxu3 %vm3653_vm9, %v969_v55 }
 0x20d   : > { %1383 = vrot.lane.b32.xlu2 %v2672_v51, %s2043_s18  ;;  %1187 = vrot.lane.b32.xlu0 %v2672_v51, %s2039_s24 }
 0x20e   : > { %1769 = vmatpush.msk.msrb.mxu2 %vm3699_vm5, %v956_v35  ;;  %1779 = vmatpush.msk.msrb.mxu3 %vm3700_vm13, %v957_v32  ;;  %v2008_v35 = vld [vmem:[%s3519_s2] sm:$0x3]  ;;  %vm1354_vm13 = vcmask 752640  }
 0x20f   : > { %v2945_v12 = vpop.permute.xlu0 %1166  ;;  %1431 = vrot.lane.b32.xlu1 %v2689_v16, %s2044_s23  ;;  %v3041_v32 = vadd.s32 4294967294, %v2008_v35 }
 0x210   : > { %3701 = vst [vmem:[#allocation18_spill] sm:$0xff] %v2945_v12  ;;  %1770 = vmatpush.msk.msrb.mxu2 %vm3703_vm1, %v2797_v25  ;;  %1780 = vmatpush.msk.msrb.mxu3 %vm3704_vm15, %v945_v20  ;;  %v3045_v20 = vadd.s32 2, %v2008_v35 }
 0x211   : > { %v2962_v41 = vpop.permute.xlu1 %1288 }
 0x212   : > { %1771 = vmatpush.msk.msrb.mxu2 %vm3705_vm14, %v2670_v62  ;;  %1781 = vmatpush.msk.msrb.mxu3 %vm3706_vm11, %v2660_v6  ;;  %v1033_v62 = vld [vmem:[%s3524_s7 + $0x8] sm:$0xff]  ;;  %vm3590_vm4 = vcmp.ge.s32.totalorder %v3045_v20, 0  ;;  %vm3592_vm8 = vcmp.lt.s32.totalorder %v3045_v20, 16  ;;  %vm3712_vm14 = vcmp.lt.s32.totalorder %v3041_v32, 16  ;;  %vm3724_vm9 = vcmp.lt.s32.totalorder %v3045_v20, 16 }
 0x213   : > { %1772 = vmatmul.msk.f32.vlgmr.msrb.gmra.mxu2 %vm3577_vm3, %v1032_v30  ;;  %1782 = vmatmul.msk.f32.vlgmr.msrb.gmra.mxu3 %vm3577_vm3, %v1032_v30  ;;  %v2988_v25 = vpop.permute.xlu2 %1531  ;;  %vm1341_vm11 = vmand %vm3711_vm10, %vm3590_vm4 }
 0x215   : > { %1407 = vrot.lane.b32.xlu2 %v2703_v22, %s2040_s13  ;;  %1453 = vrot.lane.b32.xlu0 %v2672_v51, %s2041_s15 }
 0x217   : > { %v2976_v45 = vpop.permute.xlu0 %1332  ;;  %1409 = vrot.lane.b32.xlu1 %v2672_v51, %s2040_s13 }
 0x219   : > { %v2983_v6 = vpop.permute.xlu1 %1268 }
 0x21b   : > { %1773 = vmatmul.msk.f32.gmra.mxu2 %vm3577_vm3, %v1033_v62  ;;  %1783 = vmatmul.msk.f32.gmra.mxu3 %vm3577_vm3, %v1033_v62  ;;  %v3000_v0 = vpop.permute.xlu2 %1240  ;;  %vm3583_vm3 = vcmp.ge.s32.totalorder %v3041_v32, 0 }
 0x21c   : > { %vm1361_vm7 = vmand %vm3710_vm6, %vm3583_vm3 }
 0x21d   : > { %1562 = vperm.xlu2 %1877, %v1558_v43   ;;  %1168 = vrot.lane.b32.xlu0 %v2672_v51, %s2021_s14  ;;  %vm1362_vm3 = vmand %vm1361_vm7, %vm3712_vm14  ;;  %vm3719_vm14 = vnez %v3600_v54 }
 0x21e   : > { %vm1342_vm6 = vmand %vm1341_vm11, %vm3592_vm8  ;;  %v1363_v36 = vsel %vm1362_vm3, 1, %v3714_v40  ;;  %vm3717_vm11 = vcmp.ge.s32.totalorder %v3041_v32, 0  ;;  %vm3718_vm3 = vcmp.ge.s32.totalorder %v3045_v20, 0 }
 0x21f   : > { %v2994_v21 = vpop.permute.xlu0 %1244  ;;  %1185 = vrot.lane.b32.xlu1 %v2703_v22, %s2039_s24  ;;  %v1364_v12 = vperm.slane %v1363_v36, 0  ;;  %v1365_v61 = vperm.slane %v1363_v36, 1  ;;  %vm1297_vm7 = vmand %vm3711_vm10, %vm3717_vm11  ;;  %vm3721_vm10 = vcmp.lt.s32.totalorder %v3041_v32, 16 }
 0x220   : > { %vm1277_vm8 = vmand %vm3719_vm14, %vm3718_vm3 }
 0x221   : > { %v2998_v49 = vpop.permute.xlu1 %1256  ;;  %vm3105_vm11 = vmand %vm1297_vm7, %vm3721_vm10  ;;  %vm1367_vm5 = vcmp.eq.s32.totalorder %v1365_v61, 1 }
 0x222   : > { %vm3111_vm2 = vmand %vm1277_vm8, %vm3724_vm9 }
 0x223   : > { %v3012_v38 = vpop.permute.xlu2 %1330  ;;  %vm3727_vm14 = vmmov %vm3724_vm9  ;;  %vm3730_vm9 = vcmp.ge.s32.totalorder %v2268_v56, 0 }
 0x225   : > { %1429 = vrot.lane.b32.xlu0 %v2672_v51, %s2044_s23 }
 0x227   : > { %v3004_v15 = vpop.permute.xlu0 %1515  ;;  %1451 = vrot.lane.b32.xlu1 %v2703_v22, %s2041_s15 }
 0x229   : > { %v3008_v3 = vpop.permute.xlu1 %1535 }
 0x22b   : > { %v3026_v47 = vpop.permute.xlu2 %2004 }
 0x22d   : > { %1208 = vrot.lane.b32.xlu0 %v2703_v22, %s2037_s21 }
 0x22f   : > { %v3014_v2 = vpop.permute.xlu0 %1264  ;;  %1427 = vrot.lane.b32.xlu1 %v2703_v22, %s2044_s23 }
 0x231   : > { %v3018_v34 = vpop.permute.xlu1 %1284 }
 0x233   : > { %v3036_v55 = vpop.permute.xlu2 %1242 }
 0x235   : > { %1471 = vrot.lane.b32.xlu0 %v2703_v22, %s2038_s27 }
 0x237   : > { %v3022_v9 = vpop.permute.xlu0 %1350  ;;  %1381 = vrot.lane.b32.xlu1 %v2703_v22, %s2043_s18 }
 0x239   : > { %v3028_v14 = vpop.permute.xlu1 %1212 }
 0x23a   : > { %3707 = vst [vmem:[#allocation19_spill] sm:$0xff] %v3028_v14  ;;  %v2006_v14 = vunpack.i.l.bf16 %v3026_v47 }
 0x23b   : > { %v3061_v35 = vpop.permute.xlu2 %1513 }
 0x23d   : > { %1398 = vrot.lane.b32.xlu0 %v2689_v16, %s2042_s16 }
 0x23f   : > { %v3032_v23 = vpop.permute.xlu0 %1318 }
 0x241   : > { %v3034_v4 = vpop.permute.xlu1 %1475 }
 0x242   : > { %3708 = vst [vmem:[#allocation20_spill] sm:$0xff] %v3034_v4 }
 0x245   : > { %1385 = vrot.lane.b32.xlu0 %v2689_v16, %s2043_s18  ;;  %v2009_v16 = vld [vmem:[%s3518_s1] sm:$0x3] }
 0x246   : > { %v1440_v43 = vadd.s32 2, %v2009_v16 }
 0x247   : > { %v3047_v30 = vpop.permute.xlu0 %1306 }
 0x248   : > { %vm1441_vm15 = vcmp.ge.s32.totalorder %v1440_v43, 0  ;;  %vm1442_vm1 = vcmp.lt.s32.totalorder %v1440_v43, 16 }
 0x249   : > { %v3050_v62 = vpop.permute.xlu1 %1189  ;;  %vm3083_vm4 = vmand %vm1441_vm15, %vm1442_vm1  ;;  %vm1374_vm15 = vcmask 654336  }
 0x24a   : > { %3709 = vst [vmem:[#allocation21_spill] sm:$0xff] %v3050_v62  ;;  %vm3127_vm8 = vmand %vm3083_vm4, %vm3730_vm9  ;;  %vm3743_vm9 = vcmp.ge.s32.totalorder %v3041_v32, 0 }
 0x24d   : > { %1394 = vrot.lane.b32.xlu0 %v2703_v22, %s2042_s16  ;;  %v1343_v22 = vsel %vm1342_vm6, 1, %v3714_v40  ;;  %vm3720_vm6 = vmmov %vm3718_vm3  ;;  %vm1366_vm3 = vcmp.eq.s32.totalorder %v1364_v12, 1 }
 0x24e   : > { %v1344_v43 = vperm.slane %v1343_v22, 0  ;;  %v1345_v51 = vperm.slane %v1343_v22, 1  ;;  %vm1524_vm1 = vmand %vm3083_vm4, %vm3720_vm6  ;;  %v1120_v22 = vadd.s32 4294967294, %v2009_v16  ;;  %vm1334_vm6 = vcmask 760832  }
 0x24f   : > { %v3072_v10 = vpop.permute.xlu0 %1286  ;;  %vm3117_vm0 = vmand %vm1524_vm1, %vm3727_vm14  ;;  %v2007_v16 = vunpack.i.h.bf16 %v3026_v47  ;;  %vm3733_vm14 = vcmp.ge.s32.totalorder %v2247_v52, 0 }
 0x250   : > { %vm1346_vm7 = vcmp.eq.s32.totalorder %v1344_v43, 1  ;;  %vm1347_vm10 = vcmp.eq.s32.totalorder %v1345_v51, 1  ;;  %vm1484_vm1 = vmand %vm3083_vm4, %vm3733_vm14  ;;  %v1355_v51 = vsel %vm1354_vm13, %v2808_v7, %v3022_v9  ;;  %v1335_v7 = vsel %vm1334_vm6, %v2824_v60, %v3012_v38 }
 0x251   : > { %v3076_v26 = vpop.permute.xlu1 %1149  ;;  %vm3747_vm14 = vcmask 777216  }
 0x252   : > { %3713 = vst [vmem:[#allocation22_spill] sm:$0xff] %v3076_v26  ;;  %v3099_v26 = vpop.permute.xlu2 %1511 }
 0x255   : > { %1567 = vperm.xlu0 %1875, %v1559_v59  }
 0x257   : > { %v3101_v36 = vpop.permute.xlu0 %1266 }
 0x259   : > { %v1371_v42 = vpop.permute.xlu1 %1370 }
 0x25a   : > { %v1376_v4 = vsel %vm1374_vm15, %v1371_v42, %v2791_v28  ;;  %v1375_v12 = vsel %vm1374_vm15, %v2864_v33, %v1371_v42  ;;  %v1356_v28 = vsel %vm1354_vm13, %v3022_v9, %v2854_v29  ;;  %v1299_v42 = vsel %vm3105_vm11, 1, %v3714_v40 }
 0x25b   : > { %1784 = vmatpush.msk.msrb.mxu0 %vm1366_vm3, %v1375_v12  ;;  %1810 = vmatpush.msk.msra.mxu2 %vm1367_vm5, %v1376_v4  ;;  %v1279_v33 = vsel %vm3111_vm2, 1, %v3714_v40  ;;  %vm1121_vm15 = vcmp.ge.s32.totalorder %v1120_v22, 0  ;;  %vm1122_vm3 = vcmp.lt.s32.totalorder %v1120_v22, 16  ;;  %v1336_v29 = vsel %vm1334_vm6, %v3012_v38, %v2976_v45  ;;  %v3194_v22 = vpop.permute.xlu2 %1228  ;;  %v3805_v38 = vld [vmem:[#allocation6_spill] sm:$0xff]  ;;  %v3813_v45 = vld [vmem:[#allocation8_spill] sm:$0xff] }
 0x25c   : > { %vm3734_vm5 = vcmp.lt.s32.totalorder %v2268_v56, 16  ;;  %v1526_v9 = vsel %vm3117_vm0, 1, %v3714_v40  ;;  %v1300_v47 = vperm.slane %v1299_v42, 0  ;;  %v1301_v4 = vperm.slane %v1299_v42, 1  ;;  %vm3175_vm6 = vmand %vm1121_vm15, %vm1122_vm3 }
 0x25d   : > { %1785 = vmatpush.msk.msrb.mxu0 %vm1346_vm7, %v1355_v51  ;;  %1811 = vmatpush.msk.msra.mxu2 %vm1347_vm10, %v1356_v28  ;;  %vm1505_vm11 = vmand %vm3127_vm8, %vm3734_vm5  ;;  %vm3735_vm2 = vcmp.lt.s32.totalorder %v2247_v52, 16  ;;  %vm3738_vm7 = vnez %v3640_v39  ;;  %v1280_v60 = vperm.slane %v1279_v33, 0  ;;  %vm3741_vm0 = vcmask 769024  }
 0x25e   : > { %vm3164_vm13 = vmand %vm1484_vm1, %vm3735_vm2  ;;  %v1550_v62 = vsel %vm3741_vm0, %v2836_v13, %v2006_v14  ;;  %v1506_v59 = vsel %vm1505_vm11, 1, %v3714_v40  ;;  %v1281_v12 = vperm.slane %v1279_v33, 1  ;;  %v1323_v39 = vsel %vm3747_vm14, %v3032_v23, %v2882_v57 }
 0x25f   : > { %v3168_v43 = vpop.permute.xlu0 %1254  ;;  %1786 = vmatpush.msk.msrb.mxu0 %vm3664_vm12, %v1335_v7  ;;  %1812 = vmatpush.msk.msra.mxu2 %vm3738_vm7, %v1336_v29  ;;  %vm3742_vm10 = vmmov %vm3741_vm0  ;;  %vm3744_vm12 = vnez %v3600_v54  ;;  %v1528_v61 = vperm.slane %v1526_v9, 1  ;;  %vm3201_vm15 = vcmp.eq.s32.totalorder %v1300_v47, 1  ;;  %vm3205_vm3 = vcmp.eq.s32.totalorder %v1301_v4, 1  ;;  %v3809_v7 = vld [vmem:[#allocation16_spill] sm:$0xff] }
 0x260   : > { %v1551_v5 = vsel %vm3742_vm10, %v2006_v14, %v2007_v16  ;;  %vm3187_vm8 = vmand %vm3744_vm12, %vm3743_vm9  ;;  %v1527_v14 = vperm.slane %v1526_v9, 0  ;;  %v1486_v57 = vsel %vm3164_vm13, 1, %v3714_v40  ;;  %vm3753_vm5 = vcmp.ge.s32.totalorder %v3045_v20, 0 }
 0x261   : > { %1579 = vmatpush.msrb.mxu0 %v1550_v62  ;;  %1625 = vmatpush.msra.mxu2 %v1551_v5  ;;  %v3196_v13 = vpop.permute.xlu1 %1230  ;;  %vm3748_vm1 = vmmov %vm3747_vm14  ;;  %vm1290_vm2 = vcmask 883712   ;;  %vm3756_vm0 = vnez %v3611_v31  ;;  %vm3757_vm10 = vnez %v3636_v17  ;;  %vm3224_vm9 = vcmp.eq.s32.totalorder %v1280_v60, 1 }
 0x262   : > { %v1322_v54 = vsel %vm3748_vm1, %v2846_v37, %v3032_v23  ;;  %vm3216_vm11 = vmand %vm3175_vm6, %vm3753_vm5  ;;  %v1507_v37 = vperm.slane %v1506_v59, 0  ;;  %vm3760_vm13 = vcmp.lt.s32.totalorder %v3041_v32, 16  ;;  %vm3761_vm14 = vcmask 785408  }
 0x263   : > { %1787 = vmatpush.msk.msrb.mxu0 %vm3756_vm0, %v1322_v54  ;;  %1813 = vmatpush.msk.msra.mxu2 %vm3757_vm10, %v1323_v39  ;;  %vm1222_vm12 = vmand %vm3187_vm8, %vm3760_vm13  ;;  %v1311_v51 = vsel %vm3761_vm14, %v3047_v30, %v2919_v27  ;;  %v1508_v33 = vperm.slane %v1506_v59, 1  ;;  %vm3238_vm5 = vcmp.eq.s32.totalorder %v1281_v12, 1  ;;  %vm1537_vm0 = vcmask 490496  }
 0x264   : > { %vm3762_vm1 = vmmov %vm3761_vm14  ;;  %vm3242_vm10 = vcmp.eq.s32.totalorder %v1527_v14, 1  ;;  %vm3246_vm7 = vcmp.eq.s32.totalorder %v1528_v61, 1  ;;  %vm3769_vm8 = vcmp.lt.s32.totalorder %v3045_v20, 16  ;;  %v1292_v27 = vsel %vm1290_vm2, %v3072_v10, %v2962_v41  ;;  %v3798_v61 = vld [vmem:[#allocation21_spill] sm:$0xff] }
 0x265   : > { %v1310_v31 = vsel %vm3762_vm1, %v2856_v50, %v3047_v30  ;;  %1814 = vmatpush.msk.msra.mxu2 %vm3205_vm3, %v1311_v51  ;;  %v1487_v50 = vperm.slane %v1486_v57, 0  ;;  %vm1202_vm13 = vmand %vm3216_vm11, %vm3769_vm8  ;;  %v1291_v30 = vsel %vm1290_vm2, %v3018_v34, %v3072_v10  ;;  %v1488_v9 = vperm.slane %v1486_v57, 1 }
 0x266   : > { %1788 = vmatpush.msk.msrb.mxu0 %vm3201_vm15, %v1310_v31  ;;  %v1223_v47 = vsel %vm1222_vm12, 1, %v3714_v40  ;;  %vm1517_vm15 = vcmask 498688   ;;  %vm3265_vm3 = vcmp.eq.s32.totalorder %v1507_v37, 1  ;;  %vm1497_vm11 = vcmask 506880  }
 0x267   : > { %v1534_v4 = vpop.permute.xlu0 %1533  ;;  %1815 = vmatpush.msk.msra.mxu2 %vm3238_vm5, %v1292_v27  ;;  %vm3277_vm2 = vcmp.eq.s32.totalorder %v1508_v33, 1  ;;  %v3282_v60 = vsel %vm1202_vm13, 1, %v3714_v40  ;;  %v1224_v5 = vperm.slane %v1223_v47, 0  ;;  %v1225_v59 = vperm.slane %v1223_v47, 1 }
 0x268   : > { %1789 = vmatpush.msk.msrb.mxu0 %vm3224_vm9, %v1291_v30  ;;  %v1539_v41 = vsel %vm1537_vm0, %v1534_v4, %v3008_v3  ;;  %v1538_v10 = vsel %vm1537_vm0, %v2988_v25, %v1534_v4  ;;  %vm3774_vm9 = vcmask 891904   ;;  %vm3776_vm14 = vcmp.ge.s32.totalorder %v2254_v53, 0  ;;  %v1554_v30 = vld [vmem:[%s3526_s9] sm:$0xff] }
 0x269   : > { %v1272_v62 = vsel %vm3774_vm9, %v3101_v36, %v2983_v6  ;;  %1799 = vmatpush.msk.msrb.mxu1 %vm3242_vm10, %v1538_v10  ;;  %1825 = vmatpush.msk.msra.mxu3 %vm3246_vm7, %v1539_v41  ;;  %vm3775_vm12 = vmmov %vm3774_vm9  ;;  %v1494_v3 = vpop.permute.xlu1 %1493  ;;  %v1519_v6 = vsel %vm1517_vm15, %v3061_v35, %v3004_v15  ;;  %v1518_v48 = vsel %vm1517_vm15, %v3099_v26, %v3061_v35  ;;  %vm1489_vm0 = vcmp.eq.s32.totalorder %v1487_v50, 1  ;;  %v3810_v50 = vld [vmem:[#allocation22_spill] sm:$0xff] }
 0x26a   : > { %v1271_v25 = vsel %vm3775_vm12, %v3014_v2, %v3101_v36  ;;  %vm3298_vm1 = vmand %vm3083_vm4, %vm3776_vm14  ;;  %vm3779_vm7 = vnez %v3609_v19  ;;  %vm3780_vm5 = vnez %v3633_v63  ;;  %vm1490_vm10 = vcmp.eq.s32.totalorder %v1488_v9, 1  ;;  %v1492_v2 = vpop.permute.xlu2 %1491  ;;  %v3812_v9 = vld [vmem:[#allocation14_spill] sm:$0xff] }
 0x26b   : > { %1790 = vmatpush.msk.msrb.mxu0 %vm3779_vm7, %v1271_v25  ;;  %1816 = vmatpush.msk.msra.mxu2 %vm3780_vm5, %v1272_v62  ;;  %vm3781_vm8 = vcmask 900096   ;;  %v1205_v26 = vperm.slane %v3282_v60, 1  ;;  %vm3783_vm15 = vcmask 908288   ;;  %v1499_v15 = vsel %vm1497_vm11, %v1494_v3, %v2904_v18 }
 0x26c   : > { %v1259_v36 = vsel %vm3781_vm8, %v3168_v43, %v2998_v49  ;;  %1800 = vmatpush.msk.msrb.mxu1 %vm3265_vm3, %v1518_v48  ;;  %1826 = vmatpush.msk.msra.mxu3 %vm3277_vm2, %v1519_v6  ;;  %vm3782_vm13 = vmmov %vm3781_vm8  ;;  %v1247_v63 = vsel %vm3783_vm15, %v3036_v55, %v2994_v21  ;;  %vm3784_vm9 = vnez %v3603_v1  ;;  %v1498_v49 = vsel %vm1497_vm11, %v1492_v2, %v1494_v3  ;;  %v3814_v6 = vld [vmem:[#allocation13_spill] sm:$0xff]  ;;  %v1556_v48 = vld [vmem:[%s3526_s9 + $0x10] sm:$0xff] }
 0x26d   : > { %v1258_v19 = vsel %vm3782_vm13, %v2960_v58, %v3168_v43  ;;  %vm3785_vm3 = vnez %v3627_v44  ;;  %vm3786_vm2 = vcmp.lt.s32.totalorder %v2254_v53, 16  ;;  %vm1214_vm14 = vcmask 1014784   ;;  %vm3787_vm7 = vmmov %vm3783_vm15  ;;  %v3795_v43 = vld [vmem:[#allocation20_spill] sm:$0xff] }
 0x26e   : > { %1791 = vmatpush.msk.msrb.mxu0 %vm3784_vm9, %v1258_v19  ;;  %1817 = vmatpush.msk.msra.mxu2 %vm3785_vm3, %v1259_v36  ;;  %vm1465_vm12 = vmand %vm3298_vm1, %vm3786_vm2  ;;  %v1246_v18 = vsel %vm3787_vm7, %v3000_v0, %v3036_v55  ;;  %vm1226_vm5 = vcmp.eq.s32.totalorder %v1224_v5, 1  ;;  %vm1227_vm8 = vcmp.eq.s32.totalorder %v1225_v59, 1  ;;  %vm3788_vm13 = vnez %v3607_v8  ;;  %v3792_v0 = vld [vmem:[#allocation19_spill] sm:$0xff] }
 0x26f   : > { %1801 = vmatpush.msk.msrb.mxu1 %vm1489_vm0, %v1498_v49  ;;  %1827 = vmatpush.msk.msra.mxu3 %vm1490_vm10, %v1499_v15  ;;  %vm3789_vm11 = vnez %v3629_v46  ;;  %vm3790_vm15 = vcmask 916480   ;;  %v3347_v44 = vpop.permute.xlu0 %1210  ;;  %vm1207_vm0 = vcmp.eq.s32.totalorder %v1205_v26, 1  ;;  %v3353_v21 = vsel %vm1465_vm12, 1, %v3714_v40 }
 0x270   : > { %1792 = vmatpush.msk.msrb.mxu0 %vm3788_vm13, %v1246_v18  ;;  %1818 = vmatpush.msk.msra.mxu2 %vm3789_vm11, %v1247_v63  ;;  %v1235_v1 = vsel %vm3790_vm15, %v3196_v13, %v2866_v11  ;;  %vm3791_vm1 = vmmov %vm3790_vm15  ;;  %v1216_v8 = vsel %vm1214_vm14, %v3347_v44, %v3792_v0  ;;  %vm3793_vm10 = vcmp.ge.s32.totalorder %v2268_v56, 0  ;;  %v1468_v11 = vperm.slane %v3353_v21, 1  ;;  %v3816_v63 = vld [vmem:[#allocation5_spill] sm:$0xff] }
 0x271   : > { %v1234_v58 = vsel %vm3791_vm1, %v3194_v22, %v3196_v13  ;;  %v1456_v46 = vpop.permute.xlu1 %1455  ;;  %vm1178_vm9 = vmand %vm3175_vm6, %vm3793_vm10  ;;  %vm3794_vm3 = vcmp.lt.s32.totalorder %v2268_v56, 16  ;;  %vm1477_vm12 = vcmask 515072   ;;  %vm3797_vm13 = vcmp.lt.s32.totalorder %v3041_v32, 16 }
 0x272   : > { %1793 = vmatpush.msk.msrb.mxu0 %vm1226_vm5, %v1234_v58  ;;  %1819 = vmatpush.msk.msra.mxu2 %vm1227_vm8, %v1235_v1  ;;  %vm1179_vm2 = vmand %vm1178_vm9, %vm3794_vm3  ;;  %vm1470_vm7 = vcmp.eq.s32.totalorder %v1468_v11, 1  ;;  %vm3796_vm5 = vcmp.ge.s32.totalorder %v3041_v32, 0  ;;  %vm1191_vm15 = vcmask 1022976   ;;  %vm3800_vm10 = vcmp.ge.s32.totalorder %v2254_v53, 0  ;;  %v1412_v33 = vpop.permute.xlu2 %1411 }
 0x273   : > { %v3368_v35 = vsel %vm1179_vm2, 1, %v3714_v40  ;;  %vm1444_vm8 = vmand %vm3083_vm4, %vm3796_vm5  ;;  %vm3799_vm4 = vcmp.ge.s32.totalorder %v2247_v52, 0  ;;  %vm3801_vm3 = vcmp.lt.s32.totalorder %v2247_v52, 16  ;;  %v1204_v12 = vperm.slane %v3282_v60, 0 }
 0x274   : > { %1820 = vmatpush.msk.msra.mxu2 %vm1207_vm0, %v1216_v8  ;;  %v1182_v56 = vperm.slane %v3368_v35, 1  ;;  %vm1445_vm11 = vmand %vm1444_vm8, %vm3797_vm13  ;;  %v1181_v2 = vperm.slane %v3368_v35, 0  ;;  %v1467_v35 = vperm.slane %v3353_v21, 0 }
 0x275   : > { %v3383_v14 = vsel %vm1445_vm11, 1, %v3714_v40  ;;  %vm1159_vm0 = vmand %vm3175_vm6, %vm3799_vm4  ;;  %vm3802_vm11 = vcmp.lt.s32.totalorder %v2254_v53, 16  ;;  %vm3803_vm4 = vcmp.lt.s32.totalorder %v3041_v32, 16 }
 0x276   : > { %vm1184_vm1 = vcmp.eq.s32.totalorder %v1182_v56, 1  ;;  %v1448_v24 = vperm.slane %v3383_v14, 1  ;;  %vm1137_vm9 = vmand %vm3175_vm6, %vm3800_vm10  ;;  %vm3806_vm10 = vnez %v3805_v38  ;;  %v3819_v56 = vld [vmem:[#allocation17_spill] sm:$0xff]  ;;  %v3822_v38 = vld [vmem:[#allocation12_spill] sm:$0xff] }
 0x277   : > { %v3365_v55 = vpop.permute.xlu0 %1473  ;;  %vm1160_vm2 = vmand %vm1159_vm0, %vm3801_vm3  ;;  %vm3807_vm3 = vcmp.lt.s32.totalorder %v3045_v20, 16 }
 0x278   : > { %v1479_v39 = vsel %vm1477_vm12, %v3365_v55, %v3795_v43  ;;  %vm1126_vm8 = vmand %vm3175_vm6, %vm3796_vm5  ;;  %vm1450_vm13 = vcmp.eq.s32.totalorder %v1448_v24, 1  ;;  %v3408_v57 = vsel %vm1160_vm2, 1, %v3714_v40  ;;  %vm3804_vm6 = vcmp.ge.s32.totalorder %v3045_v20, 0  ;;  %v3821_v24 = vld [vmem:[#allocation15_spill] sm:$0xff] }
 0x279   : > { %1828 = vmatpush.msk.msra.mxu3 %vm1470_vm7, %v1479_v39  ;;  %v1171_v22 = vpop.permute.xlu1 %1170  ;;  %vm1457_vm7 = vcmask 523264   ;;  %vm1128_vm0 = vmand %vm1126_vm8, %vm3803_vm4  ;;  %v1163_v53 = vperm.slane %v3408_v57, 1  ;;  %vm3808_vm8 = vcmask 1031168   ;;  %vm1433_vm4 = vcmask 621568   ;;  %v3817_v39 = vld [vmem:[#allocation18_spill] sm:$0xff] }
 0x27a   : > { %v3425_v23 = vsel %vm1128_vm0, 1, %v3714_v40  ;;  %v3446_v25 = vpop.permute.xlu2 %1396  ;;  %v1162_v26 = vperm.slane %v3408_v57, 0 }
 0x27b   : > { %vm1165_vm5 = vcmp.eq.s32.totalorder %v1163_v53, 1  ;;  %v1131_v32 = vperm.slane %v3425_v23, 1  ;;  %v1130_v11 = vperm.slane %v3425_v23, 0  ;;  %v3824_v23 = vld [vmem:[#allocation11_spill] sm:$0xff] }
 0x27f   : > { %v3380_v13 = vpop.permute.xlu0 %1187 }
 0x280   : > { %v1193_v54 = vsel %vm1191_vm15, %v3380_v13, %v3798_v61 }
 0x281   : > { %1821 = vmatpush.msk.msra.mxu2 %vm1184_vm1, %v1193_v54  ;;  %v1432_v16 = vpop.permute.xlu1 %1431  ;;  %vm1138_vm1 = vmand %vm1137_vm9, %vm3802_vm11  ;;  %vm3811_vm11 = vcmask 1039360  }
 0x282   : > { %v3415_v52 = vsel %vm1138_vm1, 1, %v3714_v40  ;;  %vm1420_vm9 = vmand %vm3806_vm10, %vm3804_vm6  ;;  %v1154_v27 = vsel %vm3811_vm11, %v3810_v50, %v3809_v7  ;;  %vm1133_vm1 = vcmp.eq.s32.totalorder %v1131_v32, 1  ;;  %vm1413_vm6 = vcmask 629760   ;;  %v1384_v43 = vpop.permute.xlu2 %1383  ;;  %v3829_v7 = vld [vmem:[#allocation9_spill] sm:$0xff] }
 0x283   : > { %v1141_v51 = vperm.slane %v3415_v52, 1  ;;  %vm1421_vm2 = vmand %vm1420_vm9, %vm3807_vm3  ;;  %vm3815_vm10 = vnez %v3814_v6  ;;  %vm1206_vm9 = vcmp.eq.s32.totalorder %v1204_v12, 1  ;;  %vm1183_vm3 = vcmp.eq.s32.totalorder %v1181_v2, 1 }
 0x284   : > { %v3432_v17 = vsel %vm1421_vm2, 1, %v3714_v40  ;;  %v1140_v58 = vperm.slane %v3415_v52, 0  ;;  %vm1164_vm2 = vcmp.eq.s32.totalorder %v1162_v26, 1 }
 0x285   : > { %v1424_v20 = vperm.slane %v3432_v17, 1  ;;  %v1423_v61 = vperm.slane %v3432_v17, 0  ;;  %v1557_v17 = vld [vmem:[%s3526_s9 + $0x18] sm:$0xff] }
 0x287   : > { %v3405_v28 = vpop.permute.xlu0 %1453  ;;  %vm1426_vm0 = vcmp.eq.s32.totalorder %v1424_v20, 1 }
 0x288   : > { %v1459_v42 = vsel %vm1457_vm7, %v3405_v28, %v1456_v46 }
 0x289   : > { %1829 = vmatpush.msk.msra.mxu3 %vm1450_vm13, %v1459_v42  ;;  %v3422_v37 = vpop.permute.xlu1 %1409  ;;  %vm1143_vm13 = vcmp.eq.s32.totalorder %v1141_v51, 1  ;;  %v1555_v51 = vld [vmem:[%s3526_s9 + $0x8] sm:$0xff] }
 0x28a   : > { %v1415_v59 = vsel %vm1413_vm6, %v3422_v37, %v1412_v33  ;;  %v1408_v42 = vpop.permute.xlu2 %1407  ;;  %v3826_v33 = vld [vmem:[#allocation10_spill] sm:$0xff] }
 0x28b   : > { %v1414_v52 = vsel %vm1413_vm6, %v1408_v42, %v3422_v37  ;;  %vm3828_vm6 = vcmask 588800  }
 0x28f   : > { %v1169_v31 = vpop.permute.xlu0 %1168 }
 0x290   : > { %v1173_v29 = vsel %vm3808_vm8, %v1169_v31, %v1171_v22  ;;  %v1447_v22 = vperm.slane %v3383_v14, 0 }
 0x291   : > { %1822 = vmatpush.msk.msra.mxu2 %vm1165_vm5, %v1173_v29  ;;  %v1186_v40 = vpop.permute.xlu1 %1185  ;;  %vm1142_vm5 = vcmp.eq.s32.totalorder %v1140_v58, 1 }
 0x292   : > { %v1192_v46 = vsel %vm1191_vm15, %v1186_v40, %v3380_v13  ;;  %vm1132_vm15 = vcmp.eq.s32.totalorder %v1130_v11, 1 }
 0x293   : > { %1823 = vmatpush.msk.msra.mxu2 %vm1143_vm13, %v1154_v27  ;;  %vm1469_vm13 = vcmp.eq.s32.totalorder %v1467_v35, 1  ;;  %v3832_v27 = vld [vmem:[#allocation7_spill] sm:$0xff] }
 0x295   : > { %1824 = vmatpush.msk.msra.mxu2 %vm1133_vm1, %v3812_v9  ;;  %vm1425_vm1 = vcmp.eq.s32.totalorder %v1423_v61, 1 }
 0x296   : > { %v1070_v47 = vpop.f32.mrf.mxu2  ;;  %v1093_v4 = vpop.f32.mrf.mxu3  ;;  %1638 = vmatmul.f32.vlgmr.msra.gmra.mxu2 %v1554_v30 }
 0x297   : > { %v1071_v41 = vadd.f32 %v1070_v47, %v3813_v45  ;;  %v1094_v10 = vadd.f32 %v1093_v4, %v3813_v45  ;;  %v1430_v34 = vpop.permute.xlu0 %1429 }
 0x298   : > { %v1435_v62 = vsel %vm1433_vm4, %v1430_v34, %v1432_v16 }
 0x299   : > { %v1099_v3 = vmax.f32 %v1071_v41, 0.0  ;;  %v1100_v5 = vmax.f32 %v1094_v10, 0.0  ;;  %1830 = vmatpush.msk.msra.mxu3 %vm1426_vm0, %v1435_v62  ;;  %v1452_v18 = vpop.permute.xlu1 %1451  ;;  %vm1400_vm0 = vcmask 637952  }
 0x29a   : > { %v1458_v14 = vsel %vm1457_vm7, %v1452_v18, %v3405_v28  ;;  %vm1387_vm7 = vcmask 646144  }
 0x29b   : > { %1676 = vst [vmem:[%s2196_s22 + $0x20] sm:$0xff] %v1099_v3  ;;  %1831 = vmatpush.msk.msra.mxu3 %vm3815_vm10, %v1415_v59  ;;  %vm3825_vm10 = vnez %v3824_v23 }
 0x29c   : > { %1677 = vst [vmem:[%s2196_s22 + $0x28] sm:$0xff] %v1100_v5 }
 0x29e   : > { %v1073_v36 = vpop.f32.mrf.mxu2  ;;  %v1096_v19 = vpop.f32.mrf.mxu3  ;;  %1641 = vmatmul.f32.gmra.mxu2 %v1556_v48 }
 0x29f   : > { %v1074_v60 = vadd.f32 %v1073_v36, %v3816_v63  ;;  %v1097_v15 = vadd.f32 %v1096_v19, %v3816_v63  ;;  %v1209_v49 = vpop.permute.xlu0 %1208 }
 0x2a0   : > { %v1215_v1 = vsel %vm1214_vm14, %v1209_v49, %v3347_v44  ;;  %vm3818_vm14 = vmmov %vm3808_vm8 }
 0x2a1   : > { %v1101_v0 = vmax.f32 %v1074_v60, 0.0  ;;  %v1102_v8 = vmax.f32 %v1097_v15, 0.0  ;;  %1794 = vmatpush.msk.msrb.mxu0 %vm1206_vm9, %v1215_v1  ;;  %v1172_v44 = vsel %vm3818_vm14, %v3817_v39, %v1169_v31  ;;  %vm3820_vm8 = vmmov %vm3811_vm11  ;;  %vm1449_vm11 = vcmp.eq.s32.totalorder %v1447_v22, 1  ;;  %v1428_v16 = vpop.permute.xlu1 %1427 }
 0x2a2   : > { %v1153_v13 = vsel %vm3820_vm8, %v3819_v56, %v3810_v50  ;;  %v1434_v57 = vsel %vm1433_vm4, %v1428_v16, %v1430_v34  ;;  %vm3827_vm4 = vnez %v3826_v33  ;;  %vm3830_vm9 = vnez %v3829_v7 }
 0x2a3   : > { %1678 = vst [vmem:[%s2196_s22 + $0x30] sm:$0xff] %v1101_v0  ;;  %1795 = vmatpush.msk.msrb.mxu0 %vm1183_vm3, %v1192_v46  ;;  %vm3831_vm3 = vmmov %vm3828_vm6 }
 0x2a4   : > { %1679 = vst [vmem:[%s2196_s22 + $0x38] sm:$0xff] %v1102_v8  ;;  %vm3834_vm14 = vmmov %vm3831_vm3 }
 0x2a5   : > { %1796 = vmatpush.msk.msrb.mxu0 %vm1164_vm2, %v1172_v44  ;;  %vm3833_vm2 = vnez %v3832_v27 }
 0x2a7   : > { %v1472_v21 = vpop.permute.xlu0 %1471  ;;  %1797 = vmatpush.msk.msrb.mxu0 %vm1142_vm5, %v1153_v13  ;;  %vm3835_vm5 = vmmov %vm3831_vm3 }
 0x2a8   : > { %v1478_v54 = vsel %vm1477_vm12, %v1472_v21, %v3365_v55  ;;  %vm3823_vm12 = vnez %v3822_v38 }
 0x2a9   : > { %1798 = vmatpush.msk.msrb.mxu0 %vm1132_vm15, %v3821_v24  ;;  %1802 = vmatpush.msk.msrb.mxu1 %vm1469_vm13, %v1478_v54  ;;  %v1382_v37 = vpop.permute.xlu1 %1381 }
 0x2aa   : > { %1592 = vmatmul.f32.vlgmr.msrb.gmra.mxu0 %v1554_v30  ;;  %v1388_v50 = vsel %vm1387_vm7, %v1382_v37, %v1384_v43  ;;  %v1563_v30 = vpop.permute.xlu2 %1562 }
 0x2ab   : > { %1803 = vmatpush.msk.msrb.mxu1 %vm1449_vm11, %v1458_v14 }
 0x2ad   : > { %1804 = vmatpush.msk.msrb.mxu1 %vm1425_vm1, %v1434_v57 }
 0x2af   : > { %v1399_v55 = vpop.permute.xlu0 %1398  ;;  %1805 = vmatpush.msk.msrb.mxu1 %vm3823_vm12, %v1414_v52 }
 0x2b0   : > { %v1402_v53 = vsel %vm1400_vm0, %v3446_v25, %v1399_v55 }
 0x2b1   : > { %1832 = vmatpush.msk.msra.mxu3 %vm3825_vm10, %v1402_v53 }
 0x2b2   : > { %1595 = vmatmul.f32.gmra.mxu0 %v1556_v48 }
 0x2b7   : > { %v1386_v28 = vpop.permute.xlu0 %1385 }
 0x2b8   : > { %v1389_v32 = vsel %vm1387_vm7, %v1384_v43, %v1386_v28 }
 0x2b9   : > { %1833 = vmatpush.msk.msra.mxu3 %vm3827_vm4, %v1389_v32 }
 0x2ba   : > { %1834 = vmatmul.msk.f32.vlgmr.msra.gmra.mxu3 %vm3828_vm6, %v1555_v51 }
 0x2bf   : > { %v1395_v31 = vpop.permute.xlu0 %1394 }
 0x2c0   : > { %v1401_v29 = vsel %vm1400_vm0, %v1395_v31, %v3446_v25 }
 0x2c1   : > { %1806 = vmatpush.msk.msrb.mxu1 %vm3830_vm9, %v1401_v29 }
 0x2c2   : > { %1835 = vmatmul.msk.f32.gmra.mxu3 %vm3831_vm3, %v1557_v17 }
 0x2c3   : > { %1807 = vmatpush.msk.msrb.mxu1 %vm3833_vm2, %v1388_v50 }
 0x2c4   : > { %1808 = vmatmul.msk.f32.vlgmr.msrb.gmra.mxu1 %vm3834_vm14, %v1555_v51 }
 0x2c7   : > { %v1568_v25 = vpop.permute.xlu0 %1567 }
 0x2cc   : > { %1809 = vmatmul.msk.f32.gmra.mxu1 %vm3835_vm5, %v1557_v17 }
 0x319   : > { %v1639_v20 = vpop.f32.mrf.mxu2 }
 0x31a   : > { %v1640_v40 = vadd.f32 %v1639_v20, %v1563_v30 }
 0x321   : > { %v1642_v10 = vpop.f32.mrf.mxu2 }
 0x322   : > { %v1643_v3 = vadd.f32 %v1642_v10, %v1568_v25 }
 0x327   : > { %v1593_v9 = vpop.f32.mrf.mxu0 }
 0x328   : > { %v1594_v45 = vadd.f32 %v1593_v9, %v1563_v30 }
 0x32f   : > { %v1596_v59 = vpop.f32.mrf.mxu0 }
 0x330   : > { %v1597_v48 = vadd.f32 %v1596_v59, %v1568_v25 }
 0x33d   : > { %v1662_v47 = vpop.f32.mrf.mxu3 }
 0x33e   : > { %v1663_v4 = vadd.f32 %v1662_v47, %v1640_v40 }
 0x340   : > { %v1669_v41 = vmax.f32 %v1663_v4, 0.0 }
 0x341   : > { %v1616_v34 = vpop.f32.mrf.mxu1 }
 0x342   : > { %1681 = vst [vmem:[%s2196_s22 + $0x48] sm:$0xff] %v1669_v41  ;;  %v1617_v62 = vadd.f32 %v1616_v34, %v1594_v45 }
 0x344   : > { %v1668_v5 = vmax.f32 %v1617_v62, 0.0 }
 0x345   : > { %v1665_v12 = vpop.f32.mrf.mxu3 }
 0x346   : > { %1680 = vst [vmem:[%s2196_s22 + $0x40] sm:$0xff] %v1668_v5  ;;  %v1666_v6 = vadd.f32 %v1665_v12, %v1643_v3 }
 0x348   : > { %v1671_v2 = vmax.f32 %v1666_v6, 0.0 }
 0x349   : > { %v1619_v36 = vpop.f32.mrf.mxu1 }
 0x34a   : > { %1683 = vst [vmem:[%s2196_s22 + $0x58] sm:$0xff] %v1671_v2  ;;  %v1620_v19 = vadd.f32 %v1619_v36, %v1597_v48 }
 0x34c   : > { %v1670_v26 = vmax.f32 %v1620_v19, 0.0 }
 0x34e   : > { %1682 = vst [vmem:[%s2196_s22 + $0x50] sm:$0xff] %v1670_v26 }
 0x34f PF: > { %s21_s17 = sadd.s32 1, %s2016_s17  }
 0x350   : > { %p18_p4 = scmp.ge.s32.totalorder %s21_s17, 4  }
 0x352   :  { %20 = sbr.rel (!%p18_p4) target bundleno = 1 (0x1), region = 94 }

</bundles_post_ra>
